<compile_context>
chip_gen: v6e
topology: v6e:2x2x1
jax: 0.10.0
libtpu: 0.0.40
codegen_flags: <defaults>
</compile_context>

<pallas_src>
import jax
import jax.numpy as jnp
from jax import lax
from jax.experimental import pallas as pl
from jax.experimental.pallas import tpu as pltpu


def _bi_attention_kernel(x_ref, m_ref, mask_ref,
                         w_in1_ref, w_mem1_ref,
                         w_in2_ref, b_in2_ref,
                         w_mem2_ref, b_mem2_ref,
                         out_ref, mem2_ref,
                         m_scr, l_scr, acc_scr):
    """Grid = (batch group g [parallel], Lm chunk c [arbitrary]).

    Each (g, c) step consumes one (Bb, Ck, Dm) chunk of memory, projects it
    (m2), and folds it into an online softmax over the query axis.  The last
    chunk step computes x2 / o1 / o2 and writes the four output slabs.
    """
    c = pl.program_id(1)
    nc = pl.num_programs(1)

    Bb, Ld, Din = x_ref.shape
    _, Ck, Dm = m_ref.shape
    hid = w_mem2_ref.shape[1]

    @pl.when(c == 0)
    def _init():
        m_scr[...] = jnp.full(m_scr.shape, -jnp.inf, dtype=m_scr.dtype)
        l_scr[...] = jnp.zeros(l_scr.shape, dtype=l_scr.dtype)
        acc_scr[...] = jnp.zeros(acc_scr.shape, dtype=acc_scr.dtype)

    x = x_ref[...]                     # (Bb, Ld, Din) bf16, pre-scaled 1/sqrt(Din)
    mem = m_ref[...]                   # (Bb, Ck, Dm)  bf16
    msk = mask_ref[...]                # (Bb, 1, Ck)   f32
    x_flat = x.reshape(Bb * Ld, Din)
    mem_flat = mem.reshape(Bb * Ck, Dm)

    # memory projection for this chunk, fused over the batch block
    # (MXU M = Bb*Ck), bf16 operands, f32 accumulation, f32 bias.  The bf16
    # copy is reused for both the mem2 output store and the o1 matmul.
    m2 = lax.dot_general(mem_flat, w_mem2_ref[...],
                         dimension_numbers=(((1,), (0,)), ((), ())),
                         preferred_element_type=jnp.float32) + b_mem2_ref[...]
    m2_bf = m2.astype(jnp.bfloat16).reshape(Bb, Ck, hid)
    mem2_ref[...] = m2_bf.astype(mem2_ref.dtype)

    # input_dot (width-1 input projection), fused over the batch block.
    # w_in1 was pre-scaled by sqrt(Din) on the host, so this equals x @ w_in1.
    # Recomputed each chunk step: Ld*Din MACs vs Ld*Ck*Din for cross — noise.
    inp_dot = lax.dot_general(x_flat, w_in1_ref[...],
                              dimension_numbers=(((1,), (0,)), ((), ())),
                              preferred_element_type=jnp.float32)  # (Bb*Ld, 1)
    inp_dot = inp_dot.reshape(Bb, Ld, 1)

    # Per-batch-element attention update.  Bb is a small compile-time constant,
    # so this static Python loop is the fully unrolled per-b loop the review
    # asked for (equivalent to lax.fori_loop(..., unroll=True)).
    for b in range(Bb):
        # memory_dot row with the query-mask bias folded straight in
        # (saves a full (Ld, Ck) VALU pass; 1e30 stays f32).
        mdot = lax.dot_general(w_mem1_ref[...], mem[b],
                               dimension_numbers=(((1,), (1,)), ((), ())),
                               preferred_element_type=jnp.float32)   # (1, Ck)
        mdot = mdot - 1e30 * (1.0 - msk[b])

        # cross_dot: contract feature dims of both operands (no transpose);
        # x is pre-scaled, so this is already cross / sqrt(Din).
        cross = lax.dot_general(x[b], mem[b],
                                dimension_numbers=(((1,), (1,)), ((), ())),
                                preferred_element_type=jnp.float32)  # (Ld, Ck)
        att = cross + inp_dot[b] + mdot                              # (Ld, Ck)

        # Online softmax update (f32 state; bf16 probabilities on the MXU).
        m_prev = m_scr[b]                                            # (Ld, 1)
        m_new = jnp.maximum(m_prev, jnp.max(att, axis=-1, keepdims=True))
        alpha = jnp.exp(m_prev - m_new)                              # (Ld, 1)
        p = jnp.exp(att - m_new)                                     # (Ld, Ck)
        l_scr[b] = alpha * l_scr[b] + jnp.sum(p, axis=-1, keepdims=True)
        acc_scr[b] = alpha * acc_scr[b] + lax.dot_general(
            p.astype(jnp.bfloat16), m2_bf[b],
            dimension_numbers=(((1,), (0,)), ((), ())),
            preferred_element_type=jnp.float32)                      # (Ld, hid)
        m_scr[b] = m_new

    @pl.when(c == nc - 1)
    def _finalize():
        # x2 projection fused over the whole batch block (MXU M = Bb*Ld);
        # w_in2 was pre-scaled by sqrt(Din) to undo the x pre-scale.
        x2 = lax.dot_general(x_flat, w_in2_ref[...],
                             dimension_numbers=(((1,), (0,)), ((), ())),
                             preferred_element_type=jnp.float32) + b_in2_ref[...]
        x2 = x2.reshape(Bb, Ld, hid)

        o1 = acc_scr[...] * pl.reciprocal(l_scr[...], approx=True)   # (Bb,Ld,hid)

        # weight_two = softmax over Ld of the per-row maxima (= online max),
        # o2 = weight_two @ x2, done as a sublane reduction (off the MXU).
        row_max = m_scr[...]                                         # (Bb,Ld,1)
        t_max = jnp.max(row_max, axis=1, keepdims=True)              # (Bb,1,1)
        e2 = jnp.exp(row_max - t_max)                                # (Bb,Ld,1)
        l2 = jnp.sum(e2, axis=1, keepdims=True)                      # (Bb,1,1)
        o2 = (jnp.sum(e2 * x2, axis=1, keepdims=True)
              * pl.reciprocal(l2, approx=True))                      # (Bb,1,hid)

        # Lane-dense direct slab stores (no materialized concat), bf16 output.
        out_ref[:, :, pl.ds(0 * hid, hid)] = x2.astype(out_ref.dtype)
        out_ref[:, :, pl.ds(1 * hid, hid)] = o1.astype(out_ref.dtype)
        out_ref[:, :, pl.ds(2 * hid, hid)] = (x2 * o1).astype(out_ref.dtype)
        out_ref[:, :, pl.ds(3 * hid, hid)] = (o2 * o1).astype(out_ref.dtype)


def _choose_block_batch(n, ld, target_rows=256):
    """Largest divisor of n that (a) keeps the fused-projection MXU M-dim near
    target_rows and (b) leaves >= 2 parallel grid steps so both v7x
    TensorCores get work."""
    if n <= 1:
        return 1
    target = max(1, target_rows // max(ld, 1))
    best = 1
    for d in range(1, n + 1):
        if n % d == 0 and d <= target and n // d >= 2:
            best = d
    return best


def _choose_lm_chunk(lm, target=512):
    """Lm chunk: divides Lm and is a multiple of 128 (lane-aligned mask block),
    capped so the (Ld, chunk) logits temporaries stay small."""
    if lm <= target:
        return lm
    for ck in (512, 384, 256, 128):
        if lm % ck == 0:
            return ck
    return lm


def _vmem_limit_bytes(bb, ld, ck, din, dm, hid):
    """Explicit VMEM budget from the block shapes, clamped to the device's
    physical VMEM (v7x has only 64 MiB per TensorCore)."""
    bf16, f32 = 2, 4
    blocks = (bb * ld * din * bf16 + bb * ck * dm * bf16 + bb * ck * f32
              + din * bf16 + dm * bf16
              + din * hid * bf16 + dm * hid * bf16 + 2 * hid * f32
              + bb * ld * 4 * hid * bf16 + bb * ck * hid * bf16)
    scratch = bb * ld * (hid + 2) * f32
    temps = (3 * ld * ck * f32                      # cross / att / p
             + bb * ck * hid * (f32 + bf16)         # m2 (f32) + m2 (bf16)
             + 4 * bb * ld * hid * f32              # x2 / o1 / products / acc
             + bb * ld * din * bf16)                # reshape slack
    budget = 2 * blocks + scratch + temps + (8 << 20)

    cap = None
    try:
        cap = getattr(pltpu.get_tpu_info(), "vmem_capacity_bytes", None)
    except Exception:
        cap = None
    if not cap:
        cap = 64 << 20              # conservative fallback (fits every gen)
    cap = int(cap) - (8 << 20)      # leave compiler headroom
    return int(max(min(budget, cap), 16 << 20))


def bi_attention(x, memory, mask, params, *,
                 block_batch=None, lm_chunk=None, out_dtype=jnp.bfloat16):
    """Pallas BiAttention forward (eval mode). Returns (out, memory2).

    out     : (N, Ld, 4*hid) out_dtype  = cat([in2, o1, in2*o1, o2*o1], -1)
    memory2 : (N, Lm, hid)   out_dtype  (pass out_dtype=jnp.float32 if the
              downstream consumer needs f32)
    """
    N, Ld, Din = x.shape
    _, Lm, Dm = memory.shape
    hid = params["w_in2"].shape[-1]
    scale = float(Din) ** 0.5

    Bb = block_batch if block_batch is not None else _choose_block_batch(N, Ld)
    assert N % Bb == 0, (N, Bb)
    Ck = lm_chunk if lm_chunk is not None else _choose_lm_chunk(Lm)
    assert Lm % Ck == 0 and (Ck == Lm or Ck % 128 == 0), (Lm, Ck)

    # bf16 DMA operands (halves HBM traffic and the double-buffered VMEM
    # blocks).  1/sqrt(Din) is folded into the bf16 cast of x (fuses with the
    # cast) and compensated in the two input-side weights, so the kernel never
    # scales the logits and never casts weights per step.
    x_bf = (x.astype(jnp.float32) * (1.0 / scale)).astype(jnp.bfloat16)
    mem_bf = memory.astype(jnp.bfloat16)
    mask3 = mask.astype(jnp.float32).reshape(N, 1, Lm)

    w_in1 = (params["w_in1"].astype(jnp.float32).reshape(Din, 1)
             * scale).astype(jnp.bfloat16)                      # (Din, 1)
    w_mem1 = params["w_mem1"].astype(jnp.float32).reshape(1, Dm).astype(jnp.bfloat16)
    w_in2 = (params["w_in2"].astype(jnp.float32) * scale).astype(jnp.bfloat16)
    w_mem2 = params["w_mem2"].astype(jnp.bfloat16)
    b_in2 = params["b_in2"].astype(jnp.float32).reshape(1, hid)
    b_mem2 = params["b_mem2"].astype(jnp.float32).reshape(1, hid)

    grid = (N // Bb, Lm // Ck)

    grid_spec = pltpu.PrefetchScalarGridSpec(
        num_scalar_prefetch=0,
        grid=grid,
        in_specs=[
            pl.BlockSpec((Bb, Ld, Din), lambda g, c: (g, 0, 0)),   # x (bf16, pre-scaled)
            pl.BlockSpec((Bb, Ck, Dm), lambda g, c: (g, c, 0)),    # memory (bf16)
            pl.BlockSpec((Bb, 1, Ck), lambda g, c: (g, 0, c)),     # mask (f32)
            pl.BlockSpec((Din, 1), lambda g, c: (0, 0)),           # w_in1 (bf16, *sqrt(Din))
            pl.BlockSpec((1, Dm), lambda g, c: (0, 0)),            # w_mem1 (bf16)
            pl.BlockSpec((Din, hid), lambda g, c: (0, 0)),         # w_in2 (bf16, *sqrt(Din))
            pl.BlockSpec((1, hid), lambda g, c: (0, 0)),           # b_in2 (f32)
            pl.BlockSpec((Dm, hid), lambda g, c: (0, 0)),          # w_mem2 (bf16)
            pl.BlockSpec((1, hid), lambda g, c: (0, 0)),           # b_mem2 (f32)
        ],
        out_specs=[
            pl.BlockSpec((Bb, Ld, 4 * hid), lambda g, c: (g, 0, 0)),
            pl.BlockSpec((Bb, Ck, hid), lambda g, c: (g, c, 0)),
        ],
        scratch_shapes=[
            pltpu.VMEM((Bb, Ld, 1), jnp.float32),    # running max
            pltpu.VMEM((Bb, Ld, 1), jnp.float32),    # running sum
            pltpu.VMEM((Bb, Ld, hid), jnp.float32),  # running o1 accumulator
        ],
    )

    out, mem2 = pl.pallas_call(
        _bi_attention_kernel,
        grid_spec=grid_spec,
        out_shape=(
            jax.ShapeDtypeStruct((N, Ld, 4 * hid), out_dtype),
            jax.ShapeDtypeStruct((N, Lm, hid), out_dtype),
        ),
        compiler_params=pltpu.CompilerParams(
            dimension_semantics=("parallel", "arbitrary"),
            vmem_limit_bytes=_vmem_limit_bytes(Bb, Ld, Ck, Din, Dm, hid)),
    )(x_bf, mem_bf, mask3,
      w_in1, w_mem1, w_in2, b_in2, w_mem2, b_mem2)
    return out, mem2


def bi_attention_reference(x, memory, mask, params):
    """Plain-JAX f32 reference mirroring the PyTorch forward (eval mode)."""
    N, Ld, Din = x.shape
    _, Lm, Dm = memory.shape
    dot_scale = jnp.sqrt(jnp.float32(Din))
    mask_f = mask.astype(jnp.float32)

    input_dot = x @ params["w_in1"]                            # (N, Ld, 1)
    memory_dot = (memory @ params["w_mem1"]).reshape(N, 1, Lm)
    cross_dot = jnp.einsum("nld,nmd->nlm", x, memory) / dot_scale
    att = input_dot + memory_dot + cross_dot
    att = att - 1e30 * (1.0 - mask_f[:, None, :])

    x2 = x @ params["w_in2"] + params["b_in2"]                 # (N, Ld, hid)
    m2 = memory @ params["w_mem2"] + params["b_mem2"]          # (N, Lm, hid)

    w1 = jax.nn.softmax(att, axis=-1)
    o1 = jnp.einsum("nlm,nmh->nlh", w1, m2)
    w2 = jax.nn.softmax(jnp.max(att, axis=-1), axis=-1)[:, None, :]  # (N,1,Ld)
    o2 = jnp.einsum("nkl,nlh->nkh", w2, x2)                    # (N, 1, hid)
    out = jnp.concatenate([x2, o1, x2 * o1, o2 * o1], axis=-1)
    return out, m2


if __name__ == "__main__":
    # Small shapes consistent with the module, chosen so both the Bb=2 batched
    # grid step and the 2-chunk online-softmax path are exercised.
    N, Ld, Lm = 4, 64, 256
    Din = Dm = 128
    hid = 128

    key = jax.random.PRNGKey(0)
    k = jax.random.split(key, 8)

    x = jax.random.normal(k[0], (N, Ld, Din), jnp.float32)
    memory = jax.random.normal(k[1], (N, Lm, Dm), jnp.float32)
    # query mask: last 32 query positions masked everywhere; the first batch
    # element masks 64 (covers an entire Lm chunk).
    mask = jnp.ones((N, Lm), jnp.float32)
    mask = mask.at[:, -32:].set(0.0)
    mask = mask.at[0, -64:].set(0.0)

    # nn.Linear-style parameters, stored transposed so math is x @ W [+ b].
    params = {
        "w_in1": jax.random.normal(k[2], (Din, 1), jnp.float32) * 0.1,
        "w_mem1": jax.random.normal(k[3], (Dm, 1), jnp.float32) * 0.1,
        "w_in2": jax.random.normal(k[4], (Din, hid), jnp.float32) * 0.1,
        "b_in2": jax.random.normal(k[5], (1, hid), jnp.float32) * 0.1,
        "w_mem2": jax.random.normal(k[6], (Dm, hid), jnp.float32) * 0.1,
        "b_mem2": jax.random.normal(k[7], (1, hid), jnp.float32) * 0.1,
    }

    out, mem2 = bi_attention(x, memory, mask, params, lm_chunk=128)
    jax.block_until_ready((out, mem2))

    assert out.shape == (N, Ld, 4 * hid) and out.dtype == jnp.bfloat16
    assert mem2.shape == (N, Lm, hid) and mem2.dtype == jnp.bfloat16

    ref_out, ref_mem2 = bi_attention_reference(x, memory, mask, params)
    out_f32 = out.astype(jnp.float32)
    mem2_f32 = mem2.astype(jnp.float32)
    # Tolerances account for bf16 inputs/weights/outputs (f32 MXU accumulation)
    # and the EUP approx reciprocals in the two softmax normalizations.
    assert jnp.allclose(out_f32, ref_out, rtol=5e-2, atol=5e-2), (
        float(jnp.max(jnp.abs(out_f32 - ref_out))))
    assert jnp.allclose(mem2_f32, ref_mem2, rtol=5e-2, atol=5e-2), (
        float(jnp.max(jnp.abs(mem2_f32 - ref_mem2))))

    print("KERNEL_OK")
</pallas_src>

<mosaic_0001>
module attributes {stable_mosaic.version = 11 : i64} {
  func.func @_bi_attention_kernel(%arg0: i32, %arg1: i32, %arg2: memref<2x64x128xbf16, #tpu.memory_space<vmem>>, %arg3: memref<2x128x128xbf16, #tpu.memory_space<vmem>>, %arg4: memref<2x1x128xf32, #tpu.memory_space<vmem>>, %arg5: memref<128x1xbf16, #tpu.memory_space<vmem>>, %arg6: memref<1x128xbf16, #tpu.memory_space<vmem>>, %arg7: memref<128x128xbf16, #tpu.memory_space<vmem>>, %arg8: memref<1x128xf32, #tpu.memory_space<vmem>>, %arg9: memref<128x128xbf16, #tpu.memory_space<vmem>>, %arg10: memref<1x128xf32, #tpu.memory_space<vmem>>, %arg11: memref<2x64x512xbf16, #tpu.memory_space<vmem>>, %arg12: memref<2x128x128xbf16, #tpu.memory_space<vmem>>, %arg13: memref<2x64x1xf32, #tpu.memory_space<vmem>>, %arg14: memref<2x64x1xf32, #tpu.memory_space<vmem>>, %arg15: memref<2x64x128xf32, #tpu.memory_space<vmem>>) attributes {dimension_semantics = [#tpu.dimension_semantics<parallel>, #tpu.dimension_semantics<arbitrary>], iteration_bounds = array<i64: 2, 2>, scalar_prefetch = 0 : i64, scratch_operands = 3 : i64, tpu.core_type = #tpu.core_type<tc>, window_params = [{transform_indices = @transform_0, window_bounds = array<i64: 2, 64, 128>}, {transform_indices = @transform_1, window_bounds = array<i64: 2, 128, 128>}, {transform_indices = @transform_2, window_bounds = array<i64: 2, 1, 128>}, {pipeline_mode = #tpu.pipeline_mode<synchronous>, transform_indices = @transform_3, window_bounds = array<i64: 128, 1>}, {pipeline_mode = #tpu.pipeline_mode<synchronous>, transform_indices = @transform_4, window_bounds = array<i64: 1, 128>}, {pipeline_mode = #tpu.pipeline_mode<synchronous>, transform_indices = @transform_5, window_bounds = array<i64: 128, 128>}, {pipeline_mode = #tpu.pipeline_mode<synchronous>, transform_indices = @transform_6, window_bounds = array<i64: 1, 128>}, {pipeline_mode = #tpu.pipeline_mode<synchronous>, transform_indices = @transform_7, window_bounds = array<i64: 128, 128>}, {pipeline_mode = #tpu.pipeline_mode<synchronous>, transform_indices = @transform_8, window_bounds = array<i64: 1, 128>}, {transform_indices = @transform_9, window_bounds = array<i64: 2, 64, 512>}, {transform_indices = @transform_10, window_bounds = array<i64: 2, 128, 128>}]} {
    %c0_i32 = arith.constant 0 : i32
    %0 = arith.cmpi eq, %arg1, %c0_i32 : i32
    %1 = arith.extui %0 : i1 to i32
    %c0_i32_0 = arith.constant 0 : i32
    %2 = arith.cmpi ne, %1, %c0_i32_0 : i32
    scf.if %2 {
      %cst_73 = arith.constant 0xFF800000 : f32
      %134 = vector.broadcast %cst_73 : f32 to vector<2x64x1xf32>
      %c0_74 = arith.constant 0 : index
      %c0_75 = arith.constant 0 : index
      %c0_76 = arith.constant 0 : index
      %135 = vector.load %arg13[%c0_74, %c0_75, %c0_76] : memref<2x64x1xf32, #tpu.memory_space<vmem>>, vector<2x64x1xf32>
      tpu.vector_store %arg13[%c0_74, %c0_75, %c0_76], %134 {strides = array<i32>} : memref<2x64x1xf32, #tpu.memory_space<vmem>>, vector<2x64x1xf32>,
      %cst_77 = arith.constant 0.000000e+00 : f32
      %136 = vector.broadcast %cst_77 : f32 to vector<2x64x1xf32>
      %c0_78 = arith.constant 0 : index
      %c0_79 = arith.constant 0 : index
      %c0_80 = arith.constant 0 : index
      %137 = vector.load %arg14[%c0_78, %c0_79, %c0_80] : memref<2x64x1xf32, #tpu.memory_space<vmem>>, vector<2x64x1xf32>
      tpu.vector_store %arg14[%c0_78, %c0_79, %c0_80], %136 {strides = array<i32>} : memref<2x64x1xf32, #tpu.memory_space<vmem>>, vector<2x64x1xf32>,
      %cst_81 = arith.constant 0.000000e+00 : f32
      %138 = vector.broadcast %cst_81 : f32 to vector<2x64x128xf32>
      %c0_82 = arith.constant 0 : index
      %c0_83 = arith.constant 0 : index
      %c0_84 = arith.constant 0 : index
      %139 = vector.load %arg15[%c0_82, %c0_83, %c0_84] : memref<2x64x128xf32, #tpu.memory_space<vmem>>, vector<2x64x128xf32>
      tpu.vector_store %arg15[%c0_82, %c0_83, %c0_84], %138 {strides = array<i32>} : memref<2x64x128xf32, #tpu.memory_space<vmem>>, vector<2x64x128xf32>,
    } else {
    }
    %c0 = arith.constant 0 : index
    %c0_1 = arith.constant 0 : index
    %c0_2 = arith.constant 0 : index
    %3 = vector.load %arg2[%c0, %c0_1, %c0_2] : memref<2x64x128xbf16, #tpu.memory_space<vmem>>, vector<2x64x128xbf16>
    %c0_3 = arith.constant 0 : index
    %c0_4 = arith.constant 0 : index
    %c0_5 = arith.constant 0 : index
    %4 = vector.load %arg3[%c0_3, %c0_4, %c0_5] : memref<2x128x128xbf16, #tpu.memory_space<vmem>>, vector<2x128x128xbf16>
    %c0_6 = arith.constant 0 : index
    %c0_7 = arith.constant 0 : index
    %c0_8 = arith.constant 0 : index
    %5 = vector.load %arg4[%c0_6, %c0_7, %c0_8] : memref<2x1x128xf32, #tpu.memory_space<vmem>>, vector<2x1x128xf32>
    %6 = vector.shape_cast %3 : vector<2x64x128xbf16> to vector<128x128xbf16>
    %7 = vector.shape_cast %4 : vector<2x128x128xbf16> to vector<256x128xbf16>
    %c0_9 = arith.constant 0 : index
    %c0_10 = arith.constant 0 : index
    %8 = vector.load %arg9[%c0_9, %c0_10] : memref<128x128xbf16, #tpu.memory_space<vmem>>, vector<128x128xbf16>
    %cst = arith.constant dense<0.000000e+00> : vector<256x128xf32>
    %9 = tpu.matmul %7, %8, %cst {dimension_numbers = #tpu.dot_dimension_numbers<[1], [0], [0], [1], [0, 0, 1, 1], [], []>} : vector<256x128xbf16>, vector<128x128xbf16>, vector<256x128xf32> -> vector<256x128xf32>
    %c0_11 = arith.constant 0 : index
    %c0_12 = arith.constant 0 : index
    %10 = vector.load %arg10[%c0_11, %c0_12] : memref<1x128xf32, #tpu.memory_space<vmem>>, vector<1x128xf32>
    %11 = vector.broadcast %10 : vector<1x128xf32> to vector<256x128xf32>
    %12 = arith.addf %9, %11 : vector<256x128xf32>
    %13 = arith.truncf %12 : vector<256x128xf32> to vector<256x128xbf16>
    %14 = vector.shape_cast %13 : vector<256x128xbf16> to vector<2x128x128xbf16>
    %c0_13 = arith.constant 0 : index
    %c0_14 = arith.constant 0 : index
    %c0_15 = arith.constant 0 : index
    %15 = vector.load %arg12[%c0_13, %c0_14, %c0_15] : memref<2x128x128xbf16, #tpu.memory_space<vmem>>, vector<2x128x128xbf16>
    tpu.vector_store %arg12[%c0_13, %c0_14, %c0_15], %14 {strides = array<i32>} : memref<2x128x128xbf16, #tpu.memory_space<vmem>>, vector<2x128x128xbf16>,
    %c0_16 = arith.constant 0 : index
    %c0_17 = arith.constant 0 : index
    %16 = vector.load %arg5[%c0_16, %c0_17] : memref<128x1xbf16, #tpu.memory_space<vmem>>, vector<128x1xbf16>
    %cst_18 = arith.constant dense<0.000000e+00> : vector<128x1xf32>
    %17 = tpu.matmul %6, %16, %cst_18 {dimension_numbers = #tpu.dot_dimension_numbers<[1], [0], [0], [1], [0, 0, 1, 1], [], []>} : vector<128x128xbf16>, vector<128x1xbf16>, vector<128x1xf32> -> vector<128x1xf32>
    %18 = vector.shape_cast %17 : vector<128x1xf32> to vector<2x64x1xf32>
    %c0_19 = arith.constant 0 : index
    %c0_20 = arith.constant 0 : index
    %19 = vector.load %arg6[%c0_19, %c0_20] : memref<1x128xbf16, #tpu.memory_space<vmem>>, vector<1x128xbf16>
    %20 = vector.extract_strided_slice %4 {offsets = [0, 0, 0], sizes = [1, 128, 128], strides = [1, 1, 1]} : vector<2x128x128xbf16> to vector<1x128x128xbf16>
    %21 = vector.shape_cast %20 : vector<1x128x128xbf16> to vector<128x128xbf16>
    %cst_21 = arith.constant dense<0.000000e+00> : vector<1x128xf32>
    %22 = tpu.matmul %19, %21, %cst_21 {dimension_numbers = #tpu.dot_dimension_numbers<[1], [1], [0], [0], [0, 0, 1, 0], [], []>} : vector<1x128xbf16>, vector<128x128xbf16>, vector<1x128xf32> -> vector<1x128xf32>
    %23 = vector.extract_strided_slice %5 {offsets = [0, 0, 0], sizes = [1, 1, 128], strides = [1, 1, 1]} : vector<2x1x128xf32> to vector<1x1x128xf32>
    %24 = vector.shape_cast %23 : vector<1x1x128xf32> to vector<1x128xf32>
    %cst_22 = arith.constant 1.000000e+00 : f32
    %25 = vector.broadcast %cst_22 : f32 to vector<1x128xf32>
    %26 = arith.subf %25, %24 : vector<1x128xf32>
    %cst_23 = arith.constant 1.000000e+30 : f32
    %27 = vector.broadcast %cst_23 : f32 to vector<1x128xf32>
    %28 = arith.mulf %27, %26 : vector<1x128xf32>
    %29 = arith.subf %22, %28 : vector<1x128xf32>
    %30 = vector.extract_strided_slice %3 {offsets = [0, 0, 0], sizes = [1, 64, 128], strides = [1, 1, 1]} : vector<2x64x128xbf16> to vector<1x64x128xbf16>
    %31 = vector.shape_cast %30 : vector<1x64x128xbf16> to vector<64x128xbf16>
    %32 = vector.extract_strided_slice %4 {offsets = [0, 0, 0], sizes = [1, 128, 128], strides = [1, 1, 1]} : vector<2x128x128xbf16> to vector<1x128x128xbf16>
    %33 = vector.shape_cast %32 : vector<1x128x128xbf16> to vector<128x128xbf16>
    %cst_24 = arith.constant dense<0.000000e+00> : vector<64x128xf32>
    %34 = tpu.matmul %31, %33, %cst_24 {dimension_numbers = #tpu.dot_dimension_numbers<[1], [1], [0], [0], [0, 0, 1, 0], [], []>} : vector<64x128xbf16>, vector<128x128xbf16>, vector<64x128xf32> -> vector<64x128xf32>
    %35 = vector.extract_strided_slice %18 {offsets = [0, 0, 0], sizes = [1, 64, 1], strides = [1, 1, 1]} : vector<2x64x1xf32> to vector<1x64x1xf32>
    %36 = vector.shape_cast %35 : vector<1x64x1xf32> to vector<64x1xf32>
    %37 = vector.broadcast %36 : vector<64x1xf32> to vector<64x128xf32>
    %38 = arith.addf %34, %37 : vector<64x128xf32>
    %39 = vector.broadcast %29 : vector<1x128xf32> to vector<64x128xf32>
    %40 = arith.addf %38, %39 : vector<64x128xf32>
    %c0_25 = arith.constant 0 : index
    %c0_26 = arith.constant 0 : index
    %c0_27 = arith.constant 0 : index
    %41 = vector.load %arg13[%c0_25, %c0_26, %c0_27] : memref<2x64x1xf32, #tpu.memory_space<vmem>>, vector<1x64x1xf32>
    %42 = vector.shape_cast %41 : vector<1x64x1xf32> to vector<64x1xf32>
    %cst_28 = arith.constant dense<0xFF800000> : vector<64xf32>
    %43 = vector.multi_reduction <maximumf>, %40, %cst_28 [1] : vector<64x128xf32> to vector<64xf32>
    %44 = vector.shape_cast %43 : vector<64xf32> to vector<64x1xf32>
    %45 = arith.maximumf %42, %44 : vector<64x1xf32>
    %46 = arith.subf %42, %45 : vector<64x1xf32>
    %47 = math.exp %46 : vector<64x1xf32>
    %48 = vector.broadcast %45 : vector<64x1xf32> to vector<64x128xf32>
    %49 = arith.subf %40, %48 : vector<64x128xf32>
    %50 = math.exp %49 : vector<64x128xf32>
    %c0_29 = arith.constant 0 : index
    %c0_30 = arith.constant 0 : index
    %c0_31 = arith.constant 0 : index
    %51 = vector.load %arg14[%c0_29, %c0_30, %c0_31] : memref<2x64x1xf32, #tpu.memory_space<vmem>>, vector<1x64x1xf32>
    %52 = vector.shape_cast %51 : vector<1x64x1xf32> to vector<64x1xf32>
    %53 = arith.mulf %47, %52 : vector<64x1xf32>
    %cst_32 = arith.constant dense<0.000000e+00> : vector<64xf32>
    %54 = vector.multi_reduction <add>, %50, %cst_32 [1] : vector<64x128xf32> to vector<64xf32>
    %55 = vector.shape_cast %54 : vector<64xf32> to vector<64x1xf32>
    %56 = arith.addf %53, %55 : vector<64x1xf32>
    %c0_33 = arith.constant 0 : index
    %c0_34 = arith.constant 0 : index
    %c0_35 = arith.constant 0 : index
    %57 = vector.load %arg14[%c0_33, %c0_34, %c0_35] : memref<2x64x1xf32, #tpu.memory_space<vmem>>, vector<1x64x1xf32>
    %58 = vector.shape_cast %57 : vector<1x64x1xf32> to vector<64x1xf32>
    %59 = vector.shape_cast %56 : vector<64x1xf32> to vector<1x64x1xf32>
    tpu.vector_store %arg14[%c0_33, %c0_34, %c0_35], %59 {strides = array<i32>} : memref<2x64x1xf32, #tpu.memory_space<vmem>>, vector<1x64x1xf32>,
    %c0_36 = arith.constant 0 : index
    %c0_37 = arith.constant 0 : index
    %c0_38 = arith.constant 0 : index
    %60 = vector.load %arg15[%c0_36, %c0_37, %c0_38] : memref<2x64x128xf32, #tpu.memory_space<vmem>>, vector<1x64x128xf32>
    %61 = vector.shape_cast %60 : vector<1x64x128xf32> to vector<64x128xf32>
    %62 = vector.broadcast %47 : vector<64x1xf32> to vector<64x128xf32>
    %63 = arith.mulf %62, %61 : vector<64x128xf32>
    %64 = arith.truncf %50 : vector<64x128xf32> to vector<64x128xbf16>
    %65 = vector.extract_strided_slice %14 {offsets = [0, 0, 0], sizes = [1, 128, 128], strides = [1, 1, 1]} : vector<2x128x128xbf16> to vector<1x128x128xbf16>
    %66 = vector.shape_cast %65 : vector<1x128x128xbf16> to vector<128x128xbf16>
    %cst_39 = arith.constant dense<0.000000e+00> : vector<64x128xf32>
    %67 = tpu.matmul %64, %66, %cst_39 {dimension_numbers = #tpu.dot_dimension_numbers<[1], [0], [0], [1], [0, 0, 1, 1], [], []>} : vector<64x128xbf16>, vector<128x128xbf16>, vector<64x128xf32> -> vector<64x128xf32>
    %68 = arith.addf %63, %67 : vector<64x128xf32>
    %c0_40 = arith.constant 0 : index
    %c0_41 = arith.constant 0 : index
    %c0_42 = arith.constant 0 : index
    %69 = vector.load %arg15[%c0_40, %c0_41, %c0_42] : memref<2x64x128xf32, #tpu.memory_space<vmem>>, vector<1x64x128xf32>
    %70 = vector.shape_cast %69 : vector<1x64x128xf32> to vector<64x128xf32>
    %71 = vector.shape_cast %68 : vector<64x128xf32> to vector<1x64x128xf32>
    tpu.vector_store %arg15[%c0_40, %c0_41, %c0_42], %71 {strides = array<i32>} : memref<2x64x128xf32, #tpu.memory_space<vmem>>, vector<1x64x128xf32>,
    %c0_43 = arith.constant 0 : index
    %c0_44 = arith.constant 0 : index
    %c0_45 = arith.constant 0 : index
    %72 = vector.load %arg13[%c0_43, %c0_44, %c0_45] : memref<2x64x1xf32, #tpu.memory_space<vmem>>, vector<1x64x1xf32>
    %73 = vector.shape_cast %72 : vector<1x64x1xf32> to vector<64x1xf32>
    %74 = vector.shape_cast %45 : vector<64x1xf32> to vector<1x64x1xf32>
    tpu.vector_store %arg13[%c0_43, %c0_44, %c0_45], %74 {strides = array<i32>} : memref<2x64x1xf32, #tpu.memory_space<vmem>>, vector<1x64x1xf32>,
    %c0_46 = arith.constant 0 : index
    %c0_47 = arith.constant 0 : index
    %75 = vector.load %arg6[%c0_46, %c0_47] : memref<1x128xbf16, #tpu.memory_space<vmem>>, vector<1x128xbf16>
    %76 = vector.extract_strided_slice %4 {offsets = [1, 0, 0], sizes = [1, 128, 128], strides = [1, 1, 1]} : vector<2x128x128xbf16> to vector<1x128x128xbf16>
    %77 = vector.shape_cast %76 : vector<1x128x128xbf16> to vector<128x128xbf16>
    %cst_48 = arith.constant dense<0.000000e+00> : vector<1x128xf32>
    %78 = tpu.matmul %75, %77, %cst_48 {dimension_numbers = #tpu.dot_dimension_numbers<[1], [1], [0], [0], [0, 0, 1, 0], [], []>} : vector<1x128xbf16>, vector<128x128xbf16>, vector<1x128xf32> -> vector<1x128xf32>
    %79 = vector.extract_strided_slice %5 {offsets = [1, 0, 0], sizes = [1, 1, 128], strides = [1, 1, 1]} : vector<2x1x128xf32> to vector<1x1x128xf32>
    %80 = vector.shape_cast %79 : vector<1x1x128xf32> to vector<1x128xf32>
    %cst_49 = arith.constant 1.000000e+00 : f32
    %81 = vector.broadcast %cst_49 : f32 to vector<1x128xf32>
    %82 = arith.subf %81, %80 : vector<1x128xf32>
    %cst_50 = arith.constant 1.000000e+30 : f32
    %83 = vector.broadcast %cst_50 : f32 to vector<1x128xf32>
    %84 = arith.mulf %83, %82 : vector<1x128xf32>
    %85 = arith.subf %78, %84 : vector<1x128xf32>
    %86 = vector.extract_strided_slice %3 {offsets = [1, 0, 0], sizes = [1, 64, 128], strides = [1, 1, 1]} : vector<2x64x128xbf16> to vector<1x64x128xbf16>
    %87 = vector.shape_cast %86 : vector<1x64x128xbf16> to vector<64x128xbf16>
    %88 = vector.extract_strided_slice %4 {offsets = [1, 0, 0], sizes = [1, 128, 128], strides = [1, 1, 1]} : vector<2x128x128xbf16> to vector<1x128x128xbf16>
    %89 = vector.shape_cast %88 : vector<1x128x128xbf16> to vector<128x128xbf16>
    %cst_51 = arith.constant dense<0.000000e+00> : vector<64x128xf32>
    %90 = tpu.matmul %87, %89, %cst_51 {dimension_numbers = #tpu.dot_dimension_numbers<[1], [1], [0], [0], [0, 0, 1, 0], [], []>} : vector<64x128xbf16>, vector<128x128xbf16>, vector<64x128xf32> -> vector<64x128xf32>
    %91 = vector.extract_strided_slice %18 {offsets = [1, 0, 0], sizes = [1, 64, 1], strides = [1, 1, 1]} : vector<2x64x1xf32> to vector<1x64x1xf32>
    %92 = vector.shape_cast %91 : vector<1x64x1xf32> to vector<64x1xf32>
    %93 = vector.broadcast %92 : vector<64x1xf32> to vector<64x128xf32>
    %94 = arith.addf %90, %93 : vector<64x128xf32>
    %95 = vector.broadcast %85 : vector<1x128xf32> to vector<64x128xf32>
    %96 = arith.addf %94, %95 : vector<64x128xf32>
    %c1 = arith.constant 1 : index
    %c0_52 = arith.constant 0 : index
    %c0_53 = arith.constant 0 : index
    %97 = vector.load %arg13[%c1, %c0_52, %c0_53] : memref<2x64x1xf32, #tpu.memory_space<vmem>>, vector<1x64x1xf32>
    %98 = vector.shape_cast %97 : vector<1x64x1xf32> to vector<64x1xf32>
    %cst_54 = arith.constant dense<0xFF800000> : vector<64xf32>
    %99 = vector.multi_reduction <maximumf>, %96, %cst_54 [1] : vector<64x128xf32> to vector<64xf32>
    %100 = vector.shape_cast %99 : vector<64xf32> to vector<64x1xf32>
    %101 = arith.maximumf %98, %100 : vector<64x1xf32>
    %102 = arith.subf %98, %101 : vector<64x1xf32>
    %103 = math.exp %102 : vector<64x1xf32>
    %104 = vector.broadcast %101 : vector<64x1xf32> to vector<64x128xf32>
    %105 = arith.subf %96, %104 : vector<64x128xf32>
    %106 = math.exp %105 : vector<64x128xf32>
    %c1_55 = arith.constant 1 : index
    %c0_56 = arith.constant 0 : index
    %c0_57 = arith.constant 0 : index
    %107 = vector.load %arg14[%c1_55, %c0_56, %c0_57] : memref<2x64x1xf32, #tpu.memory_space<vmem>>, vector<1x64x1xf32>
    %108 = vector.shape_cast %107 : vector<1x64x1xf32> to vector<64x1xf32>
    %109 = arith.mulf %103, %108 : vector<64x1xf32>
    %cst_58 = arith.constant dense<0.000000e+00> : vector<64xf32>
    %110 = vector.multi_reduction <add>, %106, %cst_58 [1] : vector<64x128xf32> to vector<64xf32>
    %111 = vector.shape_cast %110 : vector<64xf32> to vector<64x1xf32>
    %112 = arith.addf %109, %111 : vector<64x1xf32>
    %c1_59 = arith.constant 1 : index
    %c0_60 = arith.constant 0 : index
    %c0_61 = arith.constant 0 : index
    %113 = vector.load %arg14[%c1_59, %c0_60, %c0_61] : memref<2x64x1xf32, #tpu.memory_space<vmem>>, vector<1x64x1xf32>
    %114 = vector.shape_cast %113 : vector<1x64x1xf32> to vector<64x1xf32>
    %115 = vector.shape_cast %112 : vector<64x1xf32> to vector<1x64x1xf32>
    tpu.vector_store %arg14[%c1_59, %c0_60, %c0_61], %115 {strides = array<i32>} : memref<2x64x1xf32, #tpu.memory_space<vmem>>, vector<1x64x1xf32>,
    %c1_62 = arith.constant 1 : index
    %c0_63 = arith.constant 0 : index
    %c0_64 = arith.constant 0 : index
    %116 = vector.load %arg15[%c1_62, %c0_63, %c0_64] : memref<2x64x128xf32, #tpu.memory_space<vmem>>, vector<1x64x128xf32>
    %117 = vector.shape_cast %116 : vector<1x64x128xf32> to vector<64x128xf32>
    %118 = vector.broadcast %103 : vector<64x1xf32> to vector<64x128xf32>
    %119 = arith.mulf %118, %117 : vector<64x128xf32>
    %120 = arith.truncf %106 : vector<64x128xf32> to vector<64x128xbf16>
    %121 = vector.extract_strided_slice %14 {offsets = [1, 0, 0], sizes = [1, 128, 128], strides = [1, 1, 1]} : vector<2x128x128xbf16> to vector<1x128x128xbf16>
    %122 = vector.shape_cast %121 : vector<1x128x128xbf16> to vector<128x128xbf16>
    %cst_65 = arith.constant dense<0.000000e+00> : vector<64x128xf32>
    %123 = tpu.matmul %120, %122, %cst_65 {dimension_numbers = #tpu.dot_dimension_numbers<[1], [0], [0], [1], [0, 0, 1, 1], [], []>} : vector<64x128xbf16>, vector<128x128xbf16>, vector<64x128xf32> -> vector<64x128xf32>
    %124 = arith.addf %119, %123 : vector<64x128xf32>
    %c1_66 = arith.constant 1 : index
    %c0_67 = arith.constant 0 : index
    %c0_68 = arith.constant 0 : index
    %125 = vector.load %arg15[%c1_66, %c0_67, %c0_68] : memref<2x64x128xf32, #tpu.memory_space<vmem>>, vector<1x64x128xf32>
    %126 = vector.shape_cast %125 : vector<1x64x128xf32> to vector<64x128xf32>
    %127 = vector.shape_cast %124 : vector<64x128xf32> to vector<1x64x128xf32>
    tpu.vector_store %arg15[%c1_66, %c0_67, %c0_68], %127 {strides = array<i32>} : memref<2x64x128xf32, #tpu.memory_space<vmem>>, vector<1x64x128xf32>,
    %c1_69 = arith.constant 1 : index
    %c0_70 = arith.constant 0 : index
    %c0_71 = arith.constant 0 : index
    %128 = vector.load %arg13[%c1_69, %c0_70, %c0_71] : memref<2x64x1xf32, #tpu.memory_space<vmem>>, vector<1x64x1xf32>
    %129 = vector.shape_cast %128 : vector<1x64x1xf32> to vector<64x1xf32>
    %130 = vector.shape_cast %101 : vector<64x1xf32> to vector<1x64x1xf32>
    tpu.vector_store %arg13[%c1_69, %c0_70, %c0_71], %130 {strides = array<i32>} : memref<2x64x1xf32, #tpu.memory_space<vmem>>, vector<1x64x1xf32>,
    %c1_i32 = arith.constant 1 : i32
    %131 = arith.cmpi eq, %arg1, %c1_i32 : i32
    %132 = arith.extui %131 : i1 to i32
    %c0_i32_72 = arith.constant 0 : i32
    %133 = arith.cmpi ne, %132, %c0_i32_72 : i32
    scf.if %133 {
      %c0_73 = arith.constant 0 : index
      %c0_74 = arith.constant 0 : index
      %134 = vector.load %arg7[%c0_73, %c0_74] : memref<128x128xbf16, #tpu.memory_space<vmem>>, vector<128x128xbf16>
      %cst_75 = arith.constant dense<0.000000e+00> : vector<128x128xf32>
      %135 = tpu.matmul %6, %134, %cst_75 {dimension_numbers = #tpu.dot_dimension_numbers<[1], [0], [0], [1], [0, 0, 1, 1], [], []>} : vector<128x128xbf16>, vector<128x128xbf16>, vector<128x128xf32> -> vector<128x128xf32>
      %c0_76 = arith.constant 0 : index
      %c0_77 = arith.constant 0 : index
      %136 = vector.load %arg8[%c0_76, %c0_77] : memref<1x128xf32, #tpu.memory_space<vmem>>, vector<1x128xf32>
      %137 = vector.broadcast %136 : vector<1x128xf32> to vector<128x128xf32>
      %138 = arith.addf %135, %137 : vector<128x128xf32>
      %139 = vector.shape_cast %138 : vector<128x128xf32> to vector<2x64x128xf32>
      %c0_78 = arith.constant 0 : index
      %c0_79 = arith.constant 0 : index
      %c0_80 = arith.constant 0 : index
      %140 = vector.load %arg15[%c0_78, %c0_79, %c0_80] : memref<2x64x128xf32, #tpu.memory_space<vmem>>, vector<2x64x128xf32>
      %c0_81 = arith.constant 0 : index
      %c0_82 = arith.constant 0 : index
      %c0_83 = arith.constant 0 : index
      %141 = vector.load %arg14[%c0_81, %c0_82, %c0_83] : memref<2x64x1xf32, #tpu.memory_space<vmem>>, vector<2x64x1xf32>
      %142 = tpu.reciprocal %141 {approx = true} : vector<2x64x1xf32> -> vector<2x64x1xf32>
      %143 = vector.broadcast %142 : vector<2x64x1xf32> to vector<2x64x128xf32>
      %144 = arith.mulf %140, %143 : vector<2x64x128xf32>
      %c0_84 = arith.constant 0 : index
      %c0_85 = arith.constant 0 : index
      %c0_86 = arith.constant 0 : index
      %145 = vector.load %arg13[%c0_84, %c0_85, %c0_86] : memref<2x64x1xf32, #tpu.memory_space<vmem>>, vector<2x64x1xf32>
      %cst_87 = arith.constant dense<0xFF800000> : vector<2x1xf32>
      %146 = vector.multi_reduction <maximumf>, %145, %cst_87 [1] : vector<2x64x1xf32> to vector<2x1xf32>
      %147 = vector.shape_cast %146 : vector<2x1xf32> to vector<2x1x1xf32>
      %148 = vector.broadcast %147 : vector<2x1x1xf32> to vector<2x64x1xf32>
      %149 = arith.subf %145, %148 : vector<2x64x1xf32>
      %150 = math.exp %149 : vector<2x64x1xf32>
      %cst_88 = arith.constant dense<0.000000e+00> : vector<2x1xf32>
      %151 = vector.multi_reduction <add>, %150, %cst_88 [1] : vector<2x64x1xf32> to vector<2x1xf32>
      %152 = vector.shape_cast %151 : vector<2x1xf32> to vector<2x1x1xf32>
      %153 = vector.broadcast %150 : vector<2x64x1xf32> to vector<2x64x128xf32>
      %154 = arith.mulf %153, %139 : vector<2x64x128xf32>
      %cst_89 = arith.constant dense<0.000000e+00> : vector<2x128xf32>
      %155 = vector.multi_reduction <add>, %154, %cst_89 [1] : vector<2x64x128xf32> to vector<2x128xf32>
      %156 = vector.shape_cast %155 : vector<2x128xf32> to vector<2x1x128xf32>
      %157 = tpu.reciprocal %152 {approx = true} : vector<2x1x1xf32> -> vector<2x1x1xf32>
      %158 = vector.broadcast %157 : vector<2x1x1xf32> to vector<2x1x128xf32>
      %159 = arith.mulf %156, %158 : vector<2x1x128xf32>
      %160 = arith.truncf %139 : vector<2x64x128xf32> to vector<2x64x128xbf16>
      %c0_90 = arith.constant 0 : index
      %c0_91 = arith.constant 0 : index
      %c0_92 = arith.constant 0 : index
      %161 = vector.load %arg11[%c0_90, %c0_91, %c0_92] : memref<2x64x512xbf16, #tpu.memory_space<vmem>>, vector<2x64x128xbf16>
      tpu.vector_store %arg11[%c0_90, %c0_91, %c0_92], %160 {strides = array<i32>} : memref<2x64x512xbf16, #tpu.memory_space<vmem>>, vector<2x64x128xbf16>,
      %162 = arith.truncf %144 : vector<2x64x128xf32> to vector<2x64x128xbf16>
      %c0_93 = arith.constant 0 : index
      %c0_94 = arith.constant 0 : index
      %c128 = arith.constant 128 : index
      %163 = vector.load %arg11[%c0_93, %c0_94, %c128] : memref<2x64x512xbf16, #tpu.memory_space<vmem>>, vector<2x64x128xbf16>
      tpu.vector_store %arg11[%c0_93, %c0_94, %c128], %162 {strides = array<i32>} : memref<2x64x512xbf16, #tpu.memory_space<vmem>>, vector<2x64x128xbf16>,
      %164 = arith.mulf %139, %144 : vector<2x64x128xf32>
      %165 = arith.truncf %164 : vector<2x64x128xf32> to vector<2x64x128xbf16>
      %c0_95 = arith.constant 0 : index
      %c0_96 = arith.constant 0 : index
      %c256 = arith.constant 256 : index
      %166 = vector.load %arg11[%c0_95, %c0_96, %c256] : memref<2x64x512xbf16, #tpu.memory_space<vmem>>, vector<2x64x128xbf16>
      tpu.vector_store %arg11[%c0_95, %c0_96, %c256], %165 {strides = array<i32>} : memref<2x64x512xbf16, #tpu.memory_space<vmem>>, vector<2x64x128xbf16>,
      %167 = vector.broadcast %159 : vector<2x1x128xf32> to vector<2x64x128xf32>
      %168 = arith.mulf %167, %144 : vector<2x64x128xf32>
      %169 = arith.truncf %168 : vector<2x64x128xf32> to vector<2x64x128xbf16>
      %c0_97 = arith.constant 0 : index
      %c0_98 = arith.constant 0 : index
      %c384 = arith.constant 384 : index
      %170 = vector.load %arg11[%c0_97, %c0_98, %c384] : memref<2x64x512xbf16, #tpu.memory_space<vmem>>, vector<2x64x128xbf16>
      tpu.vector_store %arg11[%c0_97, %c0_98, %c384], %169 {strides = array<i32>} : memref<2x64x512xbf16, #tpu.memory_space<vmem>>, vector<2x64x128xbf16>,
    } else {
    }
    return
  }
  func.func @transform_0(%arg0: i32, %arg1: i32) -> (i32, i32, i32) {
    %c0_i32 = arith.constant 0 : i32
    %c0_i32_0 = arith.constant 0 : i32
    %c0_i32_1 = arith.constant 0 : i32
    return %arg0, %c0_i32, %c0_i32_0 : i32, i32, i32
  }
  func.func @transform_1(%arg0: i32, %arg1: i32) -> (i32, i32, i32) {
    %c0_i32 = arith.constant 0 : i32
    %c0_i32_0 = arith.constant 0 : i32
    return %arg0, %arg1, %c0_i32 : i32, i32, i32
  }
  func.func @transform_2(%arg0: i32, %arg1: i32) -> (i32, i32, i32) {
    %c0_i32 = arith.constant 0 : i32
    %c0_i32_0 = arith.constant 0 : i32
    return %arg0, %c0_i32, %arg1 : i32, i32, i32
  }
  func.func @transform_3(%arg0: i32, %arg1: i32) -> (i32, i32) {
    %c0_i32 = arith.constant 0 : i32
    %c0_i32_0 = arith.constant 0 : i32
    %c0_i32_1 = arith.constant 0 : i32
    return %c0_i32, %c0_i32_0 : i32, i32
  }
  func.func @transform_4(%arg0: i32, %arg1: i32) -> (i32, i32) {
    %c0_i32 = arith.constant 0 : i32
    %c0_i32_0 = arith.constant 0 : i32
    %c0_i32_1 = arith.constant 0 : i32
    return %c0_i32, %c0_i32_0 : i32, i32
  }
  func.func @transform_5(%arg0: i32, %arg1: i32) -> (i32, i32) {
    %c0_i32 = arith.constant 0 : i32
    %c0_i32_0 = arith.constant 0 : i32
    %c0_i32_1 = arith.constant 0 : i32
    return %c0_i32, %c0_i32_0 : i32, i32
  }
  func.func @transform_6(%arg0: i32, %arg1: i32) -> (i32, i32) {
    %c0_i32 = arith.constant 0 : i32
    %c0_i32_0 = arith.constant 0 : i32
    %c0_i32_1 = arith.constant 0 : i32
    return %c0_i32, %c0_i32_0 : i32, i32
  }
  func.func @transform_7(%arg0: i32, %arg1: i32) -> (i32, i32) {
    %c0_i32 = arith.constant 0 : i32
    %c0_i32_0 = arith.constant 0 : i32
    %c0_i32_1 = arith.constant 0 : i32
    return %c0_i32, %c0_i32_0 : i32, i32
  }
  func.func @transform_8(%arg0: i32, %arg1: i32) -> (i32, i32) {
    %c0_i32 = arith.constant 0 : i32
    %c0_i32_0 = arith.constant 0 : i32
    %c0_i32_1 = arith.constant 0 : i32
    return %c0_i32, %c0_i32_0 : i32, i32
  }
  func.func @transform_9(%arg0: i32, %arg1: i32) -> (i32, i32, i32) {
    %c0_i32 = arith.constant 0 : i32
    %c0_i32_0 = arith.constant 0 : i32
    %c0_i32_1 = arith.constant 0 : i32
    return %arg0, %c0_i32, %c0_i32_0 : i32, i32, i32
  }
  func.func @transform_10(%arg0: i32, %arg1: i32) -> (i32, i32, i32) {
    %c0_i32 = arith.constant 0 : i32
    %c0_i32_0 = arith.constant 0 : i32
    return %arg0, %arg1, %c0_i32 : i32, i32, i32
  }
}

</mosaic_0001>

<bundles_post_ra>
// kernel: tpu_custom_call.1
= control target key start
LH: loop header
LB: loop body
LE: loop exit
PB: predicated region body
PF: predicated region fallthrough
CT: control target
= control target key end

     0   :  { %s6293_s0 = inlined_call_operand.hbm [shape: bf16[4,64,128], index: 0, kind: input, shape index: {}]   ;;  %s6294_s1 = inlined_call_operand.hbm [shape: bf16[4,256,128], index: 1, kind: input, shape index: {}]   ;;  %s6295_s2 = inlined_call_operand.vmem [shape: f32[4,1,256], index: 2, kind: input, shape index: {}]   ;;  %s6296_s3 = inlined_call_operand.vmem [shape: bf16[128,1], index: 3, kind: input, shape index: {}]   ;;  %s6297_s4 = inlined_call_operand.vmem [shape: bf16[1,128], index: 4, kind: input, shape index: {}]   ;;  %s6298_s5 = inlined_call_operand.vmem [shape: bf16[128,128], index: 5, kind: input, shape index: {}]   ;;  %s6299_s6 = inlined_call_operand.vmem [shape: f32[1,128], index: 6, kind: input, shape index: {}]   ;;  %s6300_s7 = inlined_call_operand.hbm [shape: bf16[128,128], index: 7, kind: input, shape index: {}]   ;;  %s6301_s8 = inlined_call_operand.vmem [shape: f32[1,128], index: 8, kind: input, shape index: {}]   ;;  %s6302_s9 = inlined_call_operand.hbm [shape: bf16[4,64,512], index: 9, kind: output, shape index: {0}]   ;;  %s6303_s10 = inlined_call_operand.hbm [shape: bf16[4,256,128], index: 10, kind: output, shape index: {1}]  }
   0x1   :  { %6329 = sst [smem:[#allocation39_spill]] %s6293_s0 }
   0x2   :  { %6330 = sst [smem:[#allocation40_spill]] %s6294_s1 }
   0x3   :  { %6331 = sst [smem:[#allocation41_spill]] %s6296_s3 }
   0x4   :  { %6332 = sst [smem:[#allocation42_spill]] %s6297_s4 }
   0x5   :  { %6333 = sst [smem:[#allocation43_spill]] %s6298_s5 }
   0x6   :  { %6334 = sst [smem:[#allocation44_spill]] %s6299_s6 }
   0x7   :  { %6335 = sst [smem:[#allocation45_spill]] %s6301_s8 }
   0x8   :  { %6336 = sst [smem:[#allocation46_spill]] %s6302_s9 }
   0x9   :  { %6337 = sst [smem:[#allocation47_spill]] %s6303_s10 }
   0xa   :  { %16 = vsyncpa [#allocation6], 0 }
   0xb   :  { %18 = vsyncpa [#allocation6 + $0x1], 0 }
   0xc   :  { %19 = vsyncpa [#allocation9], 0 }
   0xd   :  { %21 = vsyncpa [#allocation9 + $0x1], 0 }
   0xe   :  { %22 = vsyncpa [#allocation7], 0 }
   0xf   :  { %24 = vsyncpa [#allocation7 + $0x1], 0 }
  0x10   :  { %25 = vsyncpa [#allocation14], 0 }
  0x11   :  { %27 = vsyncpa [#allocation14 + $0x1], 0  ;;  %s4881_s13 = smov 0   ;;  %s4883_s14 = smov 0  }
  0x12   :  { %s4885_s15 = smov 0   ;;  %s4887_s16 = smov 0  }
  0x13   :  { %s4889_s17 = smov 0   ;;  %s4891_s18 = smov 0  }
  0x14   :  { %s4893_s19 = smov 0   ;;  %s4895_s20 = smov 0  }
  0x15   :  { %s4897_s21 = smov 0   ;;  %s4899_s22 = smov 0  }
  0x16   :  { %s4901_s23 = smov 0  }
  0x17 LB: > { %6338 = sst [smem:[#allocation25_spill]] %s4756_s13  ;;  %s4937_s24 = sadd.s32 4294967295, %s4796_s23   ;;  %s4796_s23 = sphi %s4901_s23, %s33_s23   ;;  %s4792_s22 = sphi %s4899_s22, %s6417_s22   ;;  %s4788_s21 = sphi %s4897_s21, %s6416_s21   ;;  %s4784_s20 = sphi %s4895_s20, %s6415_s20   ;;  %s4780_s19 = sphi %s4893_s19, %s6414_s19   ;;  %s4776_s18 = sphi %s4891_s18, %s6413_s18   ;;  %s4772_s17 = sphi %s4889_s17, %s6412_s17   ;;  %s4768_s16 = sphi %s4887_s16, %s6411_s16   ;;  %s4764_s15 = sphi %s4885_s15, %s6410_s15   ;;  %s4760_s14 = sphi %s4883_s14, %s6409_s14   ;;  %s4756_s13 = sphi %s4881_s13, %s6408_s13  }
  0x18   : > { %6339 = sst [smem:[#allocation26_spill]] %s4768_s16  ;;  %s3507_s25 = sadd.s32 4294967294, %s4796_s23  }
  0x19   : > { %6340 = sst [smem:[#allocation27_spill]] %s4780_s19  ;;  %s42_s26 = sadd.s32 1, %s4788_s21 }
  0x1a   : > { %6341 = sst [smem:[#allocation28_spill]] %s4784_s20  ;;  %s45_s27 = sadd.s32 1, %s4792_s22 }
  0x1b   : > { %p43_p0 = scmp.ge.s32.totalorder %s42_s26, 2  ;;  %s52_s28 = sadd.s32 1, %s4776_s18 }
  0x1c   : > { %p59_p1 = scmp.ne.s32.totalorder %s4776_s18, %s4772_s17  ;;  %p60_p2 = scmp.eq.s32.totalorder %s4796_s23, 0 }
  0x1d   : > { %s6419_s26 = smov (%p43_p0, %s42_s26), 0  ;;  %s6421_s27 = smov (!%p43_p0, %s45_s27), %s4792_s22 }
  0x1e   : > { %6342 = sst [smem:[#allocation29_spill]] %s6419_s26  ;;  %p4954_p3 = por %p60_p2, %p59_p1 }
  0x1f   : > { %p6308_p4 = scmp.ne.s32.totalorder %s4772_s17, %s4768_s16  ;;  %p47_p5 = scmp.ge.s32.totalorder %s6421_s27, 2 }
  0x20   : > { %p6310_p6 = scmp.eq.s32.totalorder %s4937_s24, 0  ;;  %s76_s30 = ssub.s32 %s4788_s21, %s6419_s26 }
  0x21   : > { %s80_s11 = sadd.s32 1, %s4764_s15  ;;  %s6423_s27 = smov (%p47_p5, %s6421_s27), 0 }
  0x22   : > { %6344 = sst [smem:[#allocation30_spill]] %s6423_s27  ;;  %p4971_p7 = por %p6310_p6, %p6308_p4 }
  0x23   : > { %p87_p8 = scmp.ne.s32.totalorder %s4764_s15, %s4760_s14  ;;  %s49_s26 = ssub.s32 %s4792_s22, %s6423_s27 }
  0x24   : > { %s6345_s12 = scalar_select %p4971_p7, 1, 0 }
  0x25   : > { %p93_p9 = scmp.ne.s32.totalorder %s4760_s14, %s4756_s13  ;;  %p50_p10 = scmp.eq.s32.totalorder %s49_s26, 0 }
  0x26   : > { %s77_s10 = sor.u32 %s76_s30, %s49_s26  ;;  %p4986_p12 = por %p87_p8, %p60_p2 }
  0x27   : > { %p78_p11 = scmp.eq.s32.totalorder %s77_s10, 0  ;;  %p5001_p13 = por %p93_p9, %p6310_p6 }
  0x28   : > { %s6346_s9 = scalar_select %p4986_p12, 1, 0 }
  0x29   : > { %s4991_s20 = scalar_select %p50_p10, %s4776_s18, %s52_s28  }
  0x2a   : > { %s4994_s6 = scalar_select %p78_p11, %s4764_s15, %s80_s11  }
  0x2b   : > { %6347 = sst [smem:[#allocation31_spill]] %s4991_s20  ;;  %p271_p0 = scmp.eq.s32.totalorder %s4937_s24, 3 }
  0x2c   : > { %6348 = sst [smem:[#allocation32_spill]] %s4994_s6  ;;  %p277_p5 = scmp.eq.s32.totalorder %s3507_s25, 3 }
  0x2d   : > { %s6349_s27 = scalar_select %p5001_p13, 1, 0 }
  0x2e   : > { %p3508_p4 = scmp.ge.s32.totalorder %s4796_s23, 1  ;;  %p5010_p7 = por %p271_p0, %p59_p1 }
  0x2f   : > { %6350 = sst [smem:[#allocation33_spill]] %s6349_s27  ;;  %p5017_p2 = por %p271_p0, %p87_p8 }
  0x30   : > { %s6351_s10 = scalar_select %p5010_p7, 1, 0 }
  0x31   : > { %s6353_s26 = scalar_select %p5017_p2, 1, 0 }
  0x32   : > { %6352 = sst [smem:[#allocation34_spill]] %s6351_s10  ;;  %p6355_p10 = scmp.ne.s32.totalorder %s4772_s17, %s4768_s16 }
  0x33   : > { %6354 = sst [smem:[#allocation35_spill]] %s6353_s26  ;;  %p5031_p6 = por %p277_p5, %p93_p9 }
  0x34   : > { %p5024_p11 = por %p277_p5, %p6355_p10  ;;  %p312_p13 = scmp.lt.s32.totalorder %s4796_s23, 5 }
  0x35   : > { %s6358_s30 = scalar_select %p5031_p6, 1, 0 }
  0x36   : > { %s6356_s28 = scalar_select %p5024_p11, 1, 0 }
  0x37   : > { %6359 = sst [smem:[#allocation37_spill]] %s6358_s30  ;;  %p5036_p1 = pnand %p3508_p4, %p312_p13 }
  0x38   : > { %6357 = sst [smem:[#allocation36_spill]] %s6356_s28  ;;  %s4798_s11 = smov [#allocation11]  }
  0x39   : > { %s336_s20 = sshll.u32 %s4798_s11, 4  ;;  %p4300_p8 = pneg %p5036_p1  ;;  %s337_s20 = int_to_ptr.vmem [resolvable:$true] %s336_s20 }
  0x3a   : > { %p6361_p0 = scmp.eq.s32.totalorder %s4937_s24, 0  ;;  %s4623_s6 = scalar_lea.vmem %s337_s20, 1024 }
  0x3b   : > { %p4624_p11 = scmp.ne.s32.totalorder %s337_s20, %s4623_s6  ;;  %p4631_p7 = scmp.lt.s32.totalorder %s337_s20, %s337_s20 }
  0x3c   : > { %p4301_p10 = pnand %p4300_p8, %p6361_p0  ;;  %p4632_p6 = scmp.lt.s32.totalorder %s4623_s6, %s4623_s6 }
  0x3e   : > { %p4614_p2 = pneg %p4301_p10  ;;  %p4633_p12 = por %p4632_p6, %p4631_p7 }
  0x40   : > { %p4626_p9 = pnand %p4624_p11, %p4614_p2 }
  0x42   : > { %p4627_p5 = pneg %p4626_p9 }
  0x44   : > { %p4634_p4 = pnand %p4633_p12, %p4627_p5 }
  0x46   : > { %4637 = shalt.err (!%p4634_p4)
}
  0x47   : > { %s4799_s30 = smov 64   ;;  %s4800_s13 = smov 4  }
  0x48   : > { %4303 = dma.hbm_to_vmem [thread:$0]  (!%p4301_p10), %s6300_s7, 1024, %s337_s20, [#allocation9], %s4799_s30, %s4799_s30, %s4800_s13  }
  0x49   : > { %p3510_p13 = scmp.ge.s32.totalorder %s4796_s23, 4 }
  0x4a   : > { %s353_s11 = sand.u32 (!%p3510_p13), 1, %s4776_s18   ;;  %s3692_s26 = sshll.u32 (!%p3510_p13), %s4792_s22, 10 }
  0x4b   : > { %349 = sbr.rel (%p3510_p13) target bundleno = 114 (0x72), region = 40  ;;  %s3511_s10 = sshll.u32 (!%p3510_p13), %s353_s11, 6 }
  0x4c   : > { %s6362_s0 = sld [smem:[#allocation39_spill]] (!%p3510_p13)  ;;  %s357_s4 = scalar_lea.vmem (!%p3510_p13), [#allocation5], %s3511_s10 }
  0x4d   : > { %s365_s3 = sshll.u32 (!%p3510_p13), %s357_s4, 4  ;;  %s354_s19 = scalar_lea.sflag (!%p3510_p13), [#allocation6], %s353_s11  ;;  %s366_s3 = int_to_ptr.vmem [resolvable:$true] %s365_s3 }
  0x4e   : > { %s4650_s27 = scalar_lea.vmem (!%p3510_p13), %s366_s3, 1024  ;;  %s4801_s13 = smov (!%p3510_p13), [#allocation5]  }
  0x4f   : > { %p4651_p6 = scmp.ne.s32.totalorder (!%p3510_p13), %s366_s3, %s4650_s27  ;;  %s4654_s16 = sshll.u32 (!%p3510_p13), %s4801_s13, 4  ;;  %s4655_s16 = int_to_ptr.vmem [resolvable:$false] %s4654_s16 }
  0x50   : > { %s4656_s20 = scalar_lea.vmem %s4655_s16, 2048  ;;  %p4657_p2 = scmp.lt.s32.totalorder %s366_s3, %s4655_s16 }
  0x51   : > { %p4652_p7 = pnand %p4651_p6, %p4954_p3  ;;  %p4658_p11 = scmp.lt.s32.totalorder %s4656_s20, %s4650_s27 }
  0x52   : > { %s364_s8 = scalar_lea.hbm %s6362_s0, %s3692_s26 }
  0x53   : > { %p4653_p12 = pneg %p4652_p7  ;;  %p4659_p8 = por %p4658_p11, %p4657_p2 }
  0x55   : > { %p4660_p0 = pnand %p4659_p8, %p4653_p12 }
  0x57   : > { %4663 = shalt.err (!%p4660_p0)
}
  0x58   : > { %s4802_s5 = smov 64   ;;  %s4803_s10 = smov 4  }
  0x59   : > { %4277 = dma.hbm_to_vmem [thread:$0]  (%p4954_p3), %s364_s8, 1024, %s366_s3, %s354_s19, %s4802_s5, %s4802_s5, %s4803_s10  }
  0x5a   : > { %s377_s4 = sand.u32 1, %s4764_s15   ;;  %s375_s26 = sand.u32 1, %s4796_s23  }
  0x5b   : > { %s3515_s27 = sshll.u32 %s377_s4, 7  ;;  %s3517_s28 = sshll.u32 %s4788_s21, 4 }
  0x5c   : > { %s3693_s30 = sshll.u32 %s4792_s22, 6  ;;  %s379_s11 = scalar_lea.vmem [#allocation8], %s3515_s27 }
  0x5d   : > { %s401_s29 = sshll.u32 %s379_s11, 4  ;;  %s386_s3 = sadd.s32 %s3693_s30, %s3517_s28  ;;  %s402_s29 = int_to_ptr.vmem [resolvable:$true] %s401_s29 }
  0x5e   : > { %s4804_s8 = smov 2048   ;;  %p6363_p3 = scmp.ne.s32.totalorder %s6346_s9, 0 }
  0x5f   : > { %s3519_s13 = sshll.u32 %s386_s3, 6  ;;  %s4805_s16 = smov 1024  }
  0x60   : > { %4279 = sst [smem:[#allocation16]] (%p6363_p3), %s4804_s8  ;;  %s4806_s20 = smov 16  }
  0x61   : > { %s4278_s19 = scalar_select %p6363_p3, [#allocation0], [#allocation19] }
  0x62   : > { %4280 = sst [smem:[#allocation16 + $0x1]] (%p6363_p3), %s4805_s16  ;;  %s4807_s5 = smov 64  }
  0x63   : > { %s393_s6 = sld [smem:[%s4278_s19]]   ;;  %s4808_s30 = smov 4  }
  0x64   : > { %4281 = sst [smem:[#allocation16 + $0x2]] (%p6363_p3), %s4806_s20  ;;  %s376_s8 = scalar_lea.sflag [#allocation9], %s375_s26 }
  0x65   : > { %4282 = sst [smem:[#allocation16 + $0x3]] (%p6363_p3), %s4807_s5  ;;  %s4809_s19 = smov 131072  }
  0x66   : > { %s6364_s1 = sld [smem:[#allocation40_spill]]  ;;  %s3522_s16 = sshll.u32 (%p6363_p3), %s377_s4, 1 }
  0x67   : > { %4283 = sst [smem:[#allocation16 + $0x4]] (%p6363_p3), %s4807_s5  ;;  %s427_s26 = scalar_lea.vmem (%p6363_p3), [#allocation10], %s3522_s16 }
  0x68   : > { %4284 = sst [smem:[#allocation16 + $0x5]] (%p6363_p3), %s4808_s30 }
  0x69   : > { %s3520_s11 = sshll.u32 %s393_s6, 26  ;;  %423 = sbr.rel (!%p6363_p3) target bundleno = 114 (0x72), region = 52 }
  0x6a   : > { %s3521_s3 = sadd.s32 134217728, %s3520_s11 }
  0x6c   : > { %s388_s28 = scalar_lea.hbm %s6364_s1, %s3519_s13  ;;  %s3694_s13 = sshll.u32 (%p6363_p3), %s4792_s22, 2 }
  0x6d   : > { %4285 = dma.general (%p6363_p3), %s388_s28, 2048, %s402_s29, %s376_s8, %s4809_s19, [#allocation16], %s3521_s3, 0  }
  0x6e   : > { %s430_s20 = sadd.s32 %s4788_s21, %s3694_s13 }
  0x6f   : > { %s431_s27 = scalar_lea.vmem %s6295_s2, %s430_s20 }
  0x70   : > { %v448_v0 = vld [vmem:[%s431_s27] sm:$0x1]  ;;  %v450_v1 = vld [vmem:[%s431_s27 + $0x2] sm:$0x1] }
  0x71   : > { %449 = vst [vmem:[%s427_s26] sm:$0x1] %v448_v0  ;;  %451 = vst [vmem:[%s427_s26 + $0x1] sm:$0x1] %v450_v1 }
  0x72 PF: > { %474 = sbr.rel (%p5036_p1) target bundleno = 1923 (0x783), region = 86 }
  0x77   : > { %s5094_s9 = sand.u32 1, %s4772_s17   ;;  %p6365_p10 = scmp.ne.s32.totalorder %s6345_s12, 0 }
  0x78   : > { %s3526_s4 = sshll.u32 %s5094_s9, 6  ;;  %s477_s29 = scalar_lea.sflag [#allocation6], %s5094_s9 }
  0x79   : > { %s5098_s6 = scalar_lea.vmem [#allocation5], %s3526_s4 }
  0x7a   : > { %4735 = dma.done.wait (%p6365_p10), %s477_s29, 1024  }
  0x7b   : > { %4737 = vsyncadd (%p6365_p10), %s477_s29, 4294966272  ;;  %s6366_s28 = sld [smem:[#allocation33_spill]]  ;;  %s485_s25 = sand.u32 1, %s4937_s24  }
  0x7c   : > { %s5106_s30 = sand.u32 1, %s4760_s14   ;;  %s486_s3 = scalar_lea.sflag [#allocation9], %s485_s25 }
  0x7d   : > { %s3527_s11 = sshll.u32 %s5106_s30, 7 }
  0x7e   : > { %s5109_s8 = scalar_lea.vmem [#allocation8], %s3527_s11 }
  0x81   : > { %p6367_p1 = scmp.ne.s32.totalorder %s6366_s28, 0 }
  0x83   : > { %4739 = dma.done.wait (%p6367_p1), %s486_s3, 2048  }
  0x84   : > { %4741 = vsyncadd (%p6367_p1), %s486_s3, 4294965248  ;;  %s3528_s12 = sshll.u32 %s5106_s30, 1  ;;  %p6368_p9 = scmp.eq.s32.totalorder %s4937_s24, 0 }
  0x85   : > { %s5116_s19 = scalar_lea.vmem [#allocation10], %s3528_s12 }
  0x86   : > { %4743 = dma.done.wait (%p6368_p9), [#allocation9], 1024   ;;  %p6369_p5 = pmov %p6368_p9 }
  0x87   : > { %s3530_s16 = sshll.u32 %s5094_s9, 8  ;;  %s5125_s20 = scalar_lea.vmem [#allocation13], %s3527_s11 }
  0x88   : > { %4745 = vsyncadd (%p6369_p5), [#allocation9], 4294966272  ;;  %s5123_s13 = scalar_lea.vmem [#allocation12], %s3530_s16  ;;  %s6370_s5 = sld [smem:[#allocation27_spill]] }
  0x8e   : > { %p3532_p4 = scmp.ne.s32.totalorder %s6370_s5, 0 }
  0x90   : > { %562 = sbr.rel (%p3532_p4) target bundleno = 174 (0xae), region = 106 }
  0x95   : > { %vm563_vm0 = vcmask 7168   ;;  %v4810_v2 = vmov -inf   ;;  %v4811_v3 = vmov 0.0  }
  0x96   : > { %564 = vst.msk [vmem:[#allocation2] sm:$0xff] %vm563_vm0, %v4810_v2  ;;  %565 = vst.msk [vmem:[#allocation2 + $0x8] sm:$0xff] %vm563_vm0, %v4810_v2 }
  0x97   : > { %566 = vst.msk [vmem:[#allocation2 + $0x10] sm:$0xff] %vm563_vm0, %v4810_v2  ;;  %567 = vst.msk [vmem:[#allocation2 + $0x18] sm:$0xff] %vm563_vm0, %v4810_v2 }
  0x98   : > { %568 = vst.msk [vmem:[#allocation2 + $0x20] sm:$0xff] %vm563_vm0, %v4810_v2  ;;  %569 = vst.msk [vmem:[#allocation2 + $0x28] sm:$0xff] %vm563_vm0, %v4810_v2 }
  0x99   : > { %570 = vst.msk [vmem:[#allocation2 + $0x30] sm:$0xff] %vm563_vm0, %v4810_v2  ;;  %571 = vst.msk [vmem:[#allocation2 + $0x38] sm:$0xff] %vm563_vm0, %v4810_v2 }
  0x9a   : > { %572 = vst.msk [vmem:[#allocation2 + $0x40] sm:$0xff] %vm563_vm0, %v4810_v2  ;;  %573 = vst.msk [vmem:[#allocation2 + $0x48] sm:$0xff] %vm563_vm0, %v4810_v2 }
  0x9b   : > { %574 = vst.msk [vmem:[#allocation2 + $0x50] sm:$0xff] %vm563_vm0, %v4810_v2  ;;  %575 = vst.msk [vmem:[#allocation2 + $0x58] sm:$0xff] %vm563_vm0, %v4810_v2 }
  0x9c   : > { %576 = vst.msk [vmem:[#allocation2 + $0x60] sm:$0xff] %vm563_vm0, %v4810_v2  ;;  %577 = vst.msk [vmem:[#allocation2 + $0x68] sm:$0xff] %vm563_vm0, %v4810_v2 }
  0x9d   : > { %578 = vst.msk [vmem:[#allocation2 + $0x70] sm:$0xff] %vm563_vm0, %v4810_v2  ;;  %579 = vst.msk [vmem:[#allocation2 + $0x78] sm:$0xff] %vm563_vm0, %v4810_v2 }
  0x9e   : > { %580 = vst.msk [vmem:[#allocation3] sm:$0xff] %vm563_vm0, %v4811_v3  ;;  %581 = vst.msk [vmem:[#allocation3 + $0x8] sm:$0xff] %vm563_vm0, %v4811_v3 }
  0x9f   : > { %582 = vst.msk [vmem:[#allocation3 + $0x10] sm:$0xff] %vm563_vm0, %v4811_v3  ;;  %583 = vst.msk [vmem:[#allocation3 + $0x18] sm:$0xff] %vm563_vm0, %v4811_v3 }
  0xa0   : > { %584 = vst.msk [vmem:[#allocation3 + $0x20] sm:$0xff] %vm563_vm0, %v4811_v3  ;;  %585 = vst.msk [vmem:[#allocation3 + $0x28] sm:$0xff] %vm563_vm0, %v4811_v3 }
  0xa1   : > { %586 = vst.msk [vmem:[#allocation3 + $0x30] sm:$0xff] %vm563_vm0, %v4811_v3  ;;  %587 = vst.msk [vmem:[#allocation3 + $0x38] sm:$0xff] %vm563_vm0, %v4811_v3 }
  0xa2   : > { %588 = vst.msk [vmem:[#allocation3 + $0x40] sm:$0xff] %vm563_vm0, %v4811_v3  ;;  %589 = vst.msk [vmem:[#allocation3 + $0x48] sm:$0xff] %vm563_vm0, %v4811_v3 }
  0xa3   : > { %590 = vst.msk [vmem:[#allocation3 + $0x50] sm:$0xff] %vm563_vm0, %v4811_v3  ;;  %591 = vst.msk [vmem:[#allocation3 + $0x58] sm:$0xff] %vm563_vm0, %v4811_v3 }
  0xa4   : > { %592 = vst.msk [vmem:[#allocation3 + $0x60] sm:$0xff] %vm563_vm0, %v4811_v3  ;;  %593 = vst.msk [vmem:[#allocation3 + $0x68] sm:$0xff] %vm563_vm0, %v4811_v3 }
  0xa5   : > { %594 = vst.msk [vmem:[#allocation3 + $0x70] sm:$0xff] %vm563_vm0, %v4811_v3  ;;  %595 = vst.msk [vmem:[#allocation3 + $0x78] sm:$0xff] %vm563_vm0, %v4811_v3 }
  0xa6   : > { %596 = vst [vmem:[#allocation4 + $0x30] sm:$0xff] %v4811_v3  ;;  %597 = vst [vmem:[#allocation4] sm:$0xff] %v4811_v3 }
  0xa7   : > { %598 = vst [vmem:[#allocation4 + $0x58] sm:$0xff] %v4811_v3  ;;  %599 = vst [vmem:[#allocation4 + $0x18] sm:$0xff] %v4811_v3 }
  0xa8   : > { %600 = vst [vmem:[#allocation4 + $0x50] sm:$0xff] %v4811_v3  ;;  %601 = vst [vmem:[#allocation4 + $0x68] sm:$0xff] %v4811_v3 }
  0xa9   : > { %602 = vst [vmem:[#allocation4 + $0x8] sm:$0xff] %v4811_v3  ;;  %603 = vst [vmem:[#allocation4 + $0x48] sm:$0xff] %v4811_v3 }
  0xaa   : > { %604 = vst [vmem:[#allocation4 + $0x40] sm:$0xff] %v4811_v3  ;;  %605 = vst [vmem:[#allocation4 + $0x20] sm:$0xff] %v4811_v3 }
  0xab   : > { %606 = vst [vmem:[#allocation4 + $0x10] sm:$0xff] %v4811_v3  ;;  %607 = vst [vmem:[#allocation4 + $0x38] sm:$0xff] %v4811_v3 }
  0xac   : > { %608 = vst [vmem:[#allocation4 + $0x60] sm:$0xff] %v4811_v3  ;;  %609 = vst [vmem:[#allocation4 + $0x70] sm:$0xff] %v4811_v3 }
  0xad   : > { %610 = vst [vmem:[#allocation4 + $0x78] sm:$0xff] %v4811_v3  ;;  %611 = vst [vmem:[#allocation4 + $0x28] sm:$0xff] %v4811_v3 }
  0xae PF: > { %s6371_s27 = sld [smem:[#allocation41_spill]]  ;;  %v4431_v5 = vld [vmem:[#allocation11 + $0x38] sm:$0xff]   ;;  %v4433_v7 = vld [vmem:[#allocation11 + $0x30] sm:$0xff]   ;;  %v4435_v9 = vld [vmem:[#allocation11 + $0x28] sm:$0xff]   ;;  %v4812_v10 = vmov 0   ;;  %v4813_v28 = vmov 0.0  }
  0xaf   : > { %4011 = vmatprep.subr.bf16.mxu0 %v4431_v5  ;;  %4429 = vset.pattern.permute.xlu1 %v4812_v10  ;;  %v4437_v12 = vld [vmem:[#allocation11 + $0x20] sm:$0xff]   ;;  %v4439_v14 = vld [vmem:[#allocation11 + $0x18] sm:$0xff]   ;;  %v4441_v17 = vld [vmem:[#allocation11 + $0x10] sm:$0xff]   ;;  %vm4814_vm1 = vmmov 0   ;;  %s6373_s28 = sld [smem:[#allocation42_spill]]  ;;  %vm1680_vm2 = vcmask 7168  }
  0xb0   : > { %4012 = vmatpush3.bf16.msra.mxu0 %v4431_v5  ;;  %4428 = vset.pattern.permute.xlu0 %v4812_v10  ;;  %v5179_v16 = vld [vmem:[%s5098_s6] sm:$0xff]   ;;  %v4443_v20 = vld [vmem:[#allocation11 + $0x8] sm:$0xff]   ;;  %v4457_v25 = vld [vmem:[%s5109_s8 + $0x38] sm:$0xff]   ;;  %s6374_s12 = sld [smem:[#allocation45_spill]] }
  0xb1   : > { %4013 = vmatprep.subr.bf16.mxu0 %v4433_v7  ;;  %4075 = vmatprep.mubr.bf16.mxu1 %v5179_v16  ;;  %v5183_v18 = vld [vmem:[%s5109_s8] sm:$0xff]   ;;  %v5193_v23 = vld [vmem:[%s5098_s6 + $0x8] sm:$0xff]   ;;  %v5200_v26 = vld [vmem:[%s5098_s6 + $0x10] sm:$0xff]  }
  0xb2   : > { %4027 = vmatprep.mubr.bf16.mxu0 %v5183_v18  ;;  %v4445_v22 = vld [vmem:[#allocation11] sm:$0xff]   ;;  %v4452_v27 = vld [vmem:[%s5109_s8 + $0x10] sm:$0xff]   ;;  %v5209_v30 = vld [vmem:[%s5098_s6 + $0x18] sm:$0xff]  }
  0xb3   : > { %v5196_v24 = vld [vmem:[%s5109_s8 + $0x8] sm:$0xff]   ;;  %v4456_v29 = vld [vmem:[%s5109_s8 + $0x30] sm:$0xff]   ;;  %v4453_v31 = vld [vmem:[%s5109_s8 + $0x18] sm:$0xff]  }
  0xb4   : > { %v4430_v4 = vld [vmem:[%s6371_s27 + $0x38] sm:$0xff]   ;;  %v4432_v6 = vld [vmem:[%s6371_s27 + $0x30] sm:$0xff]   ;;  %v4434_v8 = vld [vmem:[%s6371_s27 + $0x28] sm:$0xff]   ;;  %4014 = vmatpush3.bf16.msra.mxu0 %v4433_v7 }
  0xb5   : > { %4059 = vmatprep.subr.bf16.mxu1 %v4430_v4  ;;  %v4436_v11 = vld [vmem:[%s6371_s27 + $0x20] sm:$0xff]   ;;  %4015 = vmatprep.subr.bf16.mxu0 %v4435_v9  ;;  %v4438_v13 = vld [vmem:[%s6371_s27 + $0x18] sm:$0xff]   ;;  %v4440_v15 = vld [vmem:[%s6371_s27 + $0x10] sm:$0xff]  }
  0xb6   : > { %4060 = vmatpush3.bf16.msra.mxu1 %v4430_v4  ;;  %v4442_v19 = vld [vmem:[%s6371_s27 + $0x8] sm:$0xff]   ;;  %v4444_v21 = vld [vmem:[%s6371_s27] sm:$0xff]   ;;  %v5225_v36 = vld [vmem:[%s5098_s6 + $0x30] sm:$0xff]  }
  0xb7   : > { %4061 = vmatprep.subr.bf16.mxu1 %v4432_v6  ;;  %v5214_v32 = vld [vmem:[%s5098_s6 + $0x20] sm:$0xff]   ;;  %v4455_v34 = vld [vmem:[%s5109_s8 + $0x28] sm:$0xff]   ;;  %v5231_v37 = vld [vmem:[%s5098_s6 + $0x38] sm:$0xff]  }
  0xb8   : > { %4016 = vmatpush3.bf16.msra.mxu0 %v4435_v9  ;;  %v4454_v33 = vld [vmem:[%s5109_s8 + $0x20] sm:$0xff]   ;;  %v5222_v35 = vld [vmem:[%s5098_s6 + $0x28] sm:$0xff]   ;;  %6372 = vst [vmem:[#allocation38_spill] sm:$0xff] %v5231_v37  ;;  %v5244_v40 = vld [vmem:[%s5109_s8 + $0x50] sm:$0xff]  }
  0xb9   : > { %4017 = vmatprep.subr.bf16.mxu0 %v4437_v12  ;;  %v5234_v38 = vld [vmem:[%s5109_s8 + $0x40] sm:$0xff]   ;;  %v5241_v39 = vld [vmem:[%s5109_s8 + $0x48] sm:$0xff]   ;;  %v5250_v41 = vld [vmem:[%s5109_s8 + $0x58] sm:$0xff]  }
  0xba   : > { %4062 = vmatpush3.bf16.msra.mxu1 %v4432_v6  ;;  %v5253_v42 = vld [vmem:[%s5109_s8 + $0x60] sm:$0xff]   ;;  %v5260_v43 = vld [vmem:[%s5109_s8 + $0x68] sm:$0xff]   ;;  %v5263_v44 = vld [vmem:[%s5109_s8 + $0x70] sm:$0xff]  }
  0xbb   : > { %4063 = vmatprep.subr.bf16.mxu1 %v4434_v8  ;;  %v5272_v45 = vld [vmem:[%s5109_s8 + $0x78] sm:$0xff]   ;;  %v1359_v46 = vld [vmem:[%s6373_s28] sm:$0x1] }
  0xbc   : > { %4018 = vmatpush3.bf16.msra.mxu0 %v4437_v12  ;;  %v1838_v47 = vld [vmem:[%s6373_s28] sm:$0x1] }
  0xbd   : > { %4019 = vmatprep.subr.bf16.mxu0 %v4439_v14  ;;  %v5307_v51 = vld [vmem:[%s6374_s12] ss:$0 sm:$0xff] }
  0xbe   : > { %4064 = vmatpush3.bf16.msra.mxu1 %v4434_v8 }
  0xbf   : > { %4065 = vmatprep.subr.bf16.mxu1 %v4436_v11 }
  0xc0   : > { %4020 = vmatpush3.bf16.msra.mxu0 %v4439_v14 }
  0xc1   : > { %4021 = vmatprep.subr.bf16.mxu0 %v4441_v17 }
  0xc2   : > { %4066 = vmatpush3.bf16.msra.mxu1 %v4436_v11 }
  0xc3   : > { %4067 = vmatprep.subr.bf16.mxu1 %v4438_v13 }
  0xc4   : > { %4022 = vmatpush3.bf16.msra.mxu0 %v4441_v17 }
  0xc5   : > { %4023 = vmatprep.subr.bf16.mxu0 %v4443_v20 }
  0xc6   : > { %4068 = vmatpush3.bf16.msra.mxu1 %v4438_v13 }
  0xc7   : > { %4069 = vmatprep.subr.bf16.mxu1 %v4440_v15 }
  0xc8   : > { %4024 = vmatpush3.bf16.msra.mxu0 %v4443_v20 }
  0xc9   : > { %4025 = vmatprep.subr.bf16.mxu0 %v4445_v22 }
  0xca   : > { %4070 = vmatpush3.bf16.msra.mxu1 %v4440_v15 }
  0xcb   : > { %4071 = vmatprep.subr.bf16.mxu1 %v4442_v19 }
  0xcc   : > { %4026 = vmatpush3.bf16.msra.mxu0 %v4445_v22 }
  0xcd   : > { %4091 = vmatprep.subr.bf16.mxu0 %v4813_v28 }
  0xce   : > { %4072 = vmatpush3.bf16.msra.mxu1 %v4442_v19 }
  0xcf   : > { %4073 = vmatprep.subr.bf16.mxu1 %v4444_v21  ;;  %4028 = vmatmul.mubr.bf16.vlgmr.msra.gmra.mxu0 %v5196_v24 }
  0xd0   : > { %4031 = vmatprep.mubr.bf16.mxu0 %v4452_v27  ;;  %4092 = vmatpush3.bf16.xpose.msra.mxu0 %v4457_v25 }
  0xd1   : > { %4093 = vmatprep.subr.bf16.mxu0 %v4813_v28 }
  0xd2   : > { %4074 = vmatpush3.bf16.msra.mxu1 %v4444_v21 }
  0xd3   : > { %4111 = vmatprep.subr.bf16.mxu1 %v4457_v25 }
  0xd5   : > { %4076 = vmatmul.mubr.bf16.vlgmr.msra.gmra.mxu1 %v5193_v23 }
  0xd6   : > { %4079 = vmatprep.mubr.bf16.mxu1 %v5200_v26  ;;  %4112 = vmatpush3.bf16.xpose.msra.mxu1 %v4457_v25 }
  0xd7   : > { %4113 = vmatprep.subr.bf16.mxu1 %v4456_v29  ;;  %4032 = vmatmul.mubr.bf16.gmra.mxu0 %v4453_v31 }
  0xd8   : > { %4035 = vmatprep.mubr.bf16.mxu0 %v4454_v33  ;;  %4094 = vmatpush3.bf16.xpose.msra.mxu0 %v4456_v29 }
  0xd9   : > { %4095 = vmatprep.subr.bf16.mxu0 %v4813_v28 }
  0xdd   : > { %4080 = vmatmul.mubr.bf16.gmra.mxu1 %v5209_v30 }
  0xde   : > { %4083 = vmatprep.mubr.bf16.mxu1 %v5214_v32  ;;  %4114 = vmatpush3.bf16.xpose.msra.mxu1 %v4456_v29 }
  0xdf   : > { %4115 = vmatprep.subr.bf16.mxu1 %v4455_v34  ;;  %4036 = vmatmul.mubr.bf16.gmra.mxu0 %v4455_v34 }
  0xe0   : > { %4039 = vmatprep.mubr.bf16.mxu0 %v4456_v29  ;;  %4096 = vmatpush3.bf16.xpose.msra.mxu0 %v4455_v34 }
  0xe1   : > { %4097 = vmatprep.subr.bf16.mxu0 %v4813_v28 }
  0xe5   : > { %4084 = vmatmul.mubr.bf16.gmra.mxu1 %v5222_v35 }
  0xe6   : > { %4087 = vmatprep.mubr.bf16.mxu1 %v5225_v36  ;;  %4116 = vmatpush3.bf16.xpose.msra.mxu1 %v4455_v34 }
  0xe7   : > { %4117 = vmatprep.subr.bf16.mxu1 %v4454_v33  ;;  %4040 = vmatmul.mubr.bf16.gmra.mxu0 %v4457_v25 }
  0xe8   : > { %4043 = vmatprep.mubr.bf16.mxu0 %v5234_v38  ;;  %4098 = vmatpush3.bf16.xpose.msra.mxu0 %v4454_v33 }
  0xe9   : > { %4099 = vmatprep.subr.bf16.mxu0 %v4813_v28 }
  0xed   : > { %4088 = vmatmul.mubr.bf16.gmra.mxu1 %v5231_v37 }
  0xee   : > { %4127 = vmatprep.mubr.bf16.mxu1 %v5179_v16  ;;  %4118 = vmatpush3.bf16.xpose.msra.mxu1 %v4454_v33 }
  0xef   : > { %4119 = vmatprep.subr.bf16.mxu1 %v4453_v31  ;;  %4044 = vmatmul.mubr.bf16.gmra.mxu0 %v5241_v39 }
  0xf0   : > { %4047 = vmatprep.mubr.bf16.mxu0 %v5244_v40  ;;  %4100 = vmatpush3.bf16.xpose.msra.mxu0 %v4453_v31 }
  0xf1   : > { %4101 = vmatprep.subr.bf16.mxu0 %v4813_v28 }
  0xf6   : > { %4120 = vmatpush3.bf16.xpose.msra.mxu1 %v4453_v31 }
  0xf7   : > { %4121 = vmatprep.subr.bf16.mxu1 %v4452_v27  ;;  %4048 = vmatmul.mubr.bf16.gmra.mxu0 %v5250_v41 }
  0xf8   : > { %4051 = vmatprep.mubr.bf16.mxu0 %v5253_v42  ;;  %4102 = vmatpush3.bf16.xpose.msra.mxu0 %v4452_v27 }
  0xf9   : > { %4103 = vmatprep.subr.bf16.mxu0 %v4813_v28 }
  0xfe   : > { %4122 = vmatpush3.bf16.xpose.msra.mxu1 %v4452_v27 }
  0xff   : > { %4123 = vmatprep.subr.bf16.mxu1 %v5196_v24  ;;  %4052 = vmatmul.mubr.bf16.gmra.mxu0 %v5260_v43 }
 0x100   : > { %4055 = vmatprep.mubr.bf16.mxu0 %v5263_v44  ;;  %4104 = vmatpush3.bf16.xpose.msra.mxu0 %v5196_v24 }
 0x101   : > { %4105 = vmatprep.subr.bf16.mxu0 %v4813_v28 }
 0x106   : > { %4124 = vmatpush3.bf16.xpose.msra.mxu1 %v5196_v24 }
 0x107   : > { %4125 = vmatprep.subr.bf16.mxu1 %v5183_v18  ;;  %4056 = vmatmul.mubr.bf16.gmra.mxu0 %v5272_v45 }
 0x108   : > { %4106 = vmatpush3.bf16.xpose.msra.mxu0 %v5183_v18  ;;  %4107 = vmatprep.mubr.msk.bf16.mxu0 %vm4814_vm1, %v4813_v28 }
 0x10e   : > { %4126 = vmatpush3.bf16.xpose.msra.mxu1 %v5183_v18 }
 0x10f   : > { %4159 = vmatprep.subr.bf16.mxu1 %v4813_v28  ;;  %4108 = vmatmul.mubr.bf16.vlgmr.msra.gmra.mxu0 %v1359_v46 }
 0x115   : > { %4128 = vmatmul.mubr.bf16.vlgmr.msra.gmra.mxu1 %v5193_v23 }
 0x116   : > { %4131 = vmatprep.mubr.bf16.mxu1 %v5200_v26  ;;  %4160 = vmatpush3.bf16.xpose.msra.mxu1 %v5272_v45 }
 0x117   : > { %4161 = vmatprep.subr.bf16.mxu1 %v4813_v28 }
 0x11d   : > { %4132 = vmatmul.mubr.bf16.gmra.mxu1 %v5209_v30 }
 0x11e   : > { %4162 = vmatpush3.bf16.xpose.msra.mxu1 %v5263_v44  ;;  %4175 = vmatprep.mubr.msk.bf16.mxu1 %vm4814_vm1, %v4813_v28 }
 0x11f   : > { %4163 = vmatprep.subr.bf16.mxu1 %v4813_v28 }
 0x126   : > { %4164 = vmatpush3.bf16.xpose.msra.mxu1 %v5260_v43 }
 0x127   : > { %4165 = vmatprep.subr.bf16.mxu1 %v4813_v28 }
 0x12e   : > { %4166 = vmatpush3.bf16.xpose.msra.mxu1 %v5253_v42 }
 0x12f   : > { %4167 = vmatprep.subr.bf16.mxu1 %v4813_v28 }
 0x136   : > { %4168 = vmatpush3.bf16.xpose.msra.mxu1 %v5250_v41 }
 0x137   : > { %4169 = vmatprep.subr.bf16.mxu1 %v4813_v28 }
 0x13e   : > { %4170 = vmatpush3.bf16.xpose.msra.mxu1 %v5244_v40 }
 0x13f   : > { %4171 = vmatprep.subr.bf16.mxu1 %v4813_v28 }
 0x146   : > { %4172 = vmatpush3.bf16.xpose.msra.mxu1 %v5241_v39 }
 0x147   : > { %4173 = vmatprep.subr.bf16.mxu1 %v4813_v28 }
 0x14e   : > { %4174 = vmatpush3.bf16.xpose.msra.mxu1 %v5234_v38 }
 0x155   : > { %4176 = vmatmul.mubr.bf16.vlgmr.msra.gmra.mxu1 %v1838_v47 }
 0x18f   : > { %v4029_v49 = vpop.f32.mrf.mxu0 }
 0x190   : > { %v872_v53 = vadd.f32 %v4029_v49, %v5307_v51 }
 0x191   : > { %v863_v52 = vpop.f32.mrf.mxu0 }
 0x192   : > { %v864_v56 = vadd.f32 %v5307_v51, %v863_v52 }
 0x193   : > { %v4030_v55 = vpop.f32.mrf.mxu0 }
 0x194   : > { %v875_v58 = vadd.f32 %v4030_v55, %v5307_v51 }
 0x195   : > { %v4077_v48 = vpop.f32.mrf.mxu1  ;;  %v866_v59 = vpop.f32.mrf.mxu0 }
 0x196   : > { %1415 = vperm.xlu1 %4429, %v4077_v48   ;;  %v5312_v60 = vpack.c.bf16 %v875_v58, %v872_v53  ;;  %v867_v62 = vadd.f32 %v5307_v51, %v866_v59 }
 0x197   : > { %v1296_v50 = vpop.f32.mrf.mxu1  ;;  %v4033_v63 = vpop.f32.mrf.mxu0 }
 0x198   : > { %1405 = vperm.xlu0 %4428, %v1296_v50   ;;  %3874 = vst [vmem:[%s5125_s20 + $0x8] sm:$0xff] %v5312_v60   ;;  %v5317_v0 = vpack.c.bf16 %v867_v62, %v864_v56  ;;  %v888_v3 = vadd.f32 %v4033_v63, %v5307_v51 }
 0x199   : > { %v4078_v54 = vpop.f32.mrf.mxu1  ;;  %v879_v2 = vpop.f32.mrf.mxu0 }
 0x19a   : > { %1420 = vperm.xlu1 %4429, %v4078_v54   ;;  %3798 = vst [vmem:[%s5125_s20] sm:$0xff] %v5317_v0   ;;  %v880_v6 = vadd.f32 %v5307_v51, %v879_v2 }
 0x19b   : > { %v1299_v57 = vpop.f32.mrf.mxu1  ;;  %v4034_v5 = vpop.f32.mrf.mxu0 }
 0x19c   : > { %1410 = vperm.xlu0 %4428, %v1299_v57   ;;  %v891_v7 = vadd.f32 %v4034_v5, %v5307_v51 }
 0x19d   : > { %v4081_v61 = vpop.f32.mrf.mxu1  ;;  %v882_v9 = vpop.f32.mrf.mxu0 }
 0x19e   : > { %v5324_v10 = vpack.c.bf16 %v891_v7, %v888_v3  ;;  %v883_v11 = vadd.f32 %v5307_v51, %v882_v9 }
 0x19f   : > { %v1312_v1 = vpop.f32.mrf.mxu1  ;;  %v4037_v12 = vpop.f32.mrf.mxu0 }
 0x1a0   : > { %1435 = vperm.xlu0 %4428, %v4081_v61   ;;  %3876 = vst [vmem:[%s5125_s20 + $0x18] sm:$0xff] %v5324_v10   ;;  %v5329_v13 = vpack.c.bf16 %v883_v11, %v880_v6  ;;  %v904_v15 = vadd.f32 %v4037_v12, %v5307_v51 }
 0x1a1   : > { %v4082_v4 = vpop.f32.mrf.mxu1  ;;  %v895_v14 = vpop.f32.mrf.mxu0 }
 0x1a2   : > { %1440 = vperm.xlu1 %4429, %v4082_v4   ;;  %3875 = vst [vmem:[%s5125_s20 + $0x10] sm:$0xff] %v5329_v13   ;;  %v896_v18 = vadd.f32 %v5307_v51, %v895_v14 }
 0x1a3   : > { %v1315_v8 = vpop.f32.mrf.mxu1  ;;  %v4038_v17 = vpop.f32.mrf.mxu0 }
 0x1a4   : > { %1425 = vperm.xlu0 %4428, %v1312_v1   ;;  %v907_v19 = vadd.f32 %v4038_v17, %v5307_v51 }
 0x1a5   : > { %v898_v20 = vpop.f32.mrf.mxu0 }
 0x1a6   : > { %1430 = vperm.xlu1 %4429, %v1315_v8   ;;  %v995_v21 = vpack.c.bf16 %v907_v19, %v904_v15  ;;  %v899_v22 = vadd.f32 %v5307_v51, %v898_v20 }
 0x1a7   : > { %v4041_v24 = vpop.f32.mrf.mxu0 }
 0x1a8   : > { %3878 = vst [vmem:[%s5125_s20 + $0x28] sm:$0xff] %v995_v21   ;;  %v994_v25 = vpack.c.bf16 %v899_v22, %v896_v18  ;;  %v920_v28 = vadd.f32 %v4041_v24, %v5307_v51 }
 0x1a9   : > { %v911_v27 = vpop.f32.mrf.mxu0 }
 0x1aa   : > { %3877 = vst [vmem:[%s5125_s20 + $0x20] sm:$0xff] %v994_v25   ;;  %v912_v31 = vadd.f32 %v5307_v51, %v911_v27 }
 0x1ab   : > { %v4042_v29 = vpop.f32.mrf.mxu0 }
 0x1ac   : > { %v923_v33 = vadd.f32 %v4042_v29, %v5307_v51 }
 0x1ad   : > { %v914_v34 = vpop.f32.mrf.mxu0 }
 0x1ae   : > { %v997_v46 = vpack.c.bf16 %v923_v33, %v920_v28  ;;  %v915_v47 = vadd.f32 %v5307_v51, %v914_v34 }
 0x1af   : > { %v4045_v48 = vpop.f32.mrf.mxu0 }
 0x1b0   : > { %3880 = vst [vmem:[%s5125_s20 + $0x38] sm:$0xff] %v997_v46   ;;  %v996_v49 = vpack.c.bf16 %v915_v47, %v912_v31  ;;  %4135 = vmatprep.subr.bf16.mxu0 %v997_v46  ;;  %v936_v52 = vadd.f32 %v4045_v48, %v5307_v51 }
 0x1b1   : > { %v927_v50 = vpop.f32.mrf.mxu0  ;;  %4136 = vmatpush3.bf16.msra.mxu0 %v997_v46 }
 0x1b2   : > { %3879 = vst [vmem:[%s5125_s20 + $0x30] sm:$0xff] %v996_v49   ;;  %4137 = vmatprep.subr.bf16.mxu0 %v996_v49  ;;  %v928_v54 = vadd.f32 %v5307_v51, %v927_v50 }
 0x1b3   : > { %v4046_v53 = vpop.f32.mrf.mxu0 }
 0x1b4   : > { %v939_v55 = vadd.f32 %v4046_v53, %v5307_v51 }
 0x1b5   : > { %v930_v56 = vpop.f32.mrf.mxu0  ;;  %4138 = vmatpush3.bf16.msra.mxu0 %v996_v49 }
 0x1b6   : > { %v5348_v57 = vpack.c.bf16 %v939_v55, %v936_v52  ;;  %v931_v58 = vadd.f32 %v5307_v51, %v930_v56  ;;  %4139 = vmatprep.subr.bf16.mxu0 %v995_v21  ;;  %v660_v55 = vld [vmem:[%s5116_s19] sm:$0x1] }
 0x1b7   : > { %v4049_v59 = vpop.f32.mrf.mxu0  ;;  %v1400_v56 = vsub.f32 1.0, %v660_v55 }
 0x1b8   : > { %3882 = vst [vmem:[%s5125_s20 + $0x48] sm:$0xff] %v5348_v57   ;;  %v5353_v61 = vpack.c.bf16 %v931_v58, %v928_v54  ;;  %v952_v63 = vadd.f32 %v4049_v59, %v5307_v51  ;;  %v1508_v58 = vlaneseq }
 0x1b9   : > { %v943_v62 = vpop.f32.mrf.mxu0  ;;  %4140 = vmatpush3.bf16.msra.mxu0 %v995_v21 }
 0x1ba   : > { %3881 = vst [vmem:[%s5125_s20 + $0x40] sm:$0xff] %v5353_v61   ;;  %4141 = vmatprep.subr.bf16.mxu0 %v994_v25  ;;  %v944_v2 = vadd.f32 %v5307_v51, %v943_v62  ;;  %v5405_v62 = vshrl.u32 %v1508_v58, 7  ;;  %v5439_v58 = vld [vmem:[#allocation2 + $0x8] sm:$0xff] }
 0x1bb   : > { %v4050_v1 = vpop.f32.mrf.mxu0 }
 0x1bc   : > { %v955_v3 = vadd.f32 %v4050_v1, %v5307_v51 }
 0x1bd   : > { %v946_v4 = vpop.f32.mrf.mxu0  ;;  %4142 = vmatpush3.bf16.msra.mxu0 %v994_v25 }
 0x1be   : > { %v1001_v5 = vpack.c.bf16 %v955_v3, %v952_v63  ;;  %v947_v6 = vadd.f32 %v5307_v51, %v946_v4  ;;  %4143 = vmatprep.subr.bf16.mxu0 %v5324_v10 }
 0x1bf   : > { %v4053_v7 = vpop.f32.mrf.mxu0 }
 0x1c0   : > { %3884 = vst [vmem:[%s5125_s20 + $0x58] sm:$0xff] %v1001_v5   ;;  %v1000_v8 = vpack.c.bf16 %v947_v6, %v944_v2  ;;  %v968_v11 = vadd.f32 %v4053_v7, %v5307_v51 }
 0x1c1   : > { %v959_v9 = vpop.f32.mrf.mxu0  ;;  %4144 = vmatpush3.bf16.msra.mxu0 %v5324_v10 }
 0x1c2   : > { %3883 = vst [vmem:[%s5125_s20 + $0x50] sm:$0xff] %v1000_v8   ;;  %4145 = vmatprep.subr.bf16.mxu0 %v5329_v13  ;;  %v960_v14 = vadd.f32 %v5307_v51, %v959_v9 }
 0x1c3   : > { %v4054_v12 = vpop.f32.mrf.mxu0 }
 0x1c4   : > { %v971_v15 = vadd.f32 %v4054_v12, %v5307_v51 }
 0x1c5   : > { %v962_v17 = vpop.f32.mrf.mxu0  ;;  %4146 = vmatpush3.bf16.msra.mxu0 %v5329_v13 }
 0x1c6   : > { %v1003_v18 = vpack.c.bf16 %v971_v15, %v968_v11  ;;  %v963_v19 = vadd.f32 %v5307_v51, %v962_v17  ;;  %4147 = vmatprep.subr.bf16.mxu0 %v5312_v60 }
 0x1c7   : > { %v4057_v10 = vpop.f32.mrf.mxu0 }
 0x1c8   : > { %3886 = vst [vmem:[%s5125_s20 + $0x68] sm:$0xff] %v1003_v18   ;;  %v1002_v20 = vpack.c.bf16 %v963_v19, %v960_v14  ;;  %v984_v22 = vadd.f32 %v4057_v10, %v5307_v51 }
 0x1c9   : > { %v975_v21 = vpop.f32.mrf.mxu0  ;;  %4148 = vmatpush3.bf16.msra.mxu0 %v5312_v60 }
 0x1ca   : > { %3885 = vst [vmem:[%s5125_s20 + $0x60] sm:$0xff] %v1002_v20   ;;  %4149 = vmatprep.subr.bf16.mxu0 %v5317_v0  ;;  %v976_v13 = vadd.f32 %v5307_v51, %v975_v21 }
 0x1cb   : > { %v4058_v24 = vpop.f32.mrf.mxu0 }
 0x1cc   : > { %v987_v25 = vadd.f32 %v4058_v24, %v5307_v51 }
 0x1cd   : > { %4150 = vmatpush3.bf16.msra.mxu0 %v5317_v0  ;;  %v978_v27 = vpop.f32.mrf.mxu0  ;;  %v5384_v0 = vpop.f32.mrf.mxu1 }
 0x1ce   : > { %v1005_v28 = vpack.c.bf16 %v987_v25, %v984_v22  ;;  %v979_v29 = vadd.f32 %v5307_v51, %v978_v27  ;;  %4179 = vmatprep.subr.bf16.mxu0 %v5272_v45 }
 0x1cf   : > { %v1394_v60 = vpop.f32.mrf.mxu0  ;;  %v5386_v51 = vpop.f32.mrf.mxu1 }
 0x1d0   : > { %3888 = vst [vmem:[%s5125_s20 + $0x78] sm:$0xff] %v1005_v28   ;;  %v1004_v31 = vpack.c.bf16 %v979_v29, %v976_v13  ;;  %4203 = vmatprep.subr.bf16.mxu1 %v1005_v28 }
 0x1d1   : > { %4204 = vmatpush3.bf16.msra.mxu1 %v1005_v28  ;;  %v4109_v33 = vpop.f32.mrf.mxu0  ;;  %v5388_v47 = vpop.f32.mrf.mxu1 }
 0x1d2   : > { %3887 = vst [vmem:[%s5125_s20 + $0x70] sm:$0xff] %v1004_v31   ;;  %4205 = vmatprep.subr.bf16.mxu1 %v1004_v31 }
 0x1d3   : > { %v1397_v34 = vpop.f32.mrf.mxu0  ;;  %v5392_v48 = vpop.f32.mrf.mxu1 }
 0x1d5   : > { %4206 = vmatpush3.bf16.msra.mxu1 %v1004_v31  ;;  %v4110_v46 = vpop.f32.mrf.mxu0  ;;  %v5396_v49 = vpop.f32.mrf.mxu1 }
 0x1d6   : > { %4207 = vmatprep.subr.bf16.mxu1 %v1003_v18 }
 0x1d7   : > { %v5398_v50 = vpop.f32.mrf.mxu1 }
 0x1d9   : > { %4208 = vmatpush3.bf16.msra.mxu1 %v1003_v18  ;;  %v5400_v52 = vpop.f32.mrf.mxu1 }
 0x1da   : > { %4209 = vmatprep.subr.bf16.mxu1 %v1002_v20 }
 0x1db   : > { %v5402_v53 = vpop.f32.mrf.mxu1 }
 0x1dd   : > { %4210 = vmatpush3.bf16.msra.mxu1 %v1002_v20  ;;  %v4129_v54 = vpop.f32.mrf.mxu1 }
 0x1de   : > { %4211 = vmatprep.subr.bf16.mxu1 %v1001_v5 }
 0x1df   : > { %v1477_v59 = vpop.f32.mrf.mxu1 }
 0x1e1   : > { %4212 = vmatpush3.bf16.msra.mxu1 %v1001_v5  ;;  %v4130_v63 = vpop.f32.mrf.mxu1 }
 0x1e2   : > { %4213 = vmatprep.subr.bf16.mxu1 %v1000_v8 }
 0x1e3   : > { %v1480_v2 = vpop.f32.mrf.mxu1 }
 0x1e5   : > { %4214 = vmatpush3.bf16.msra.mxu1 %v1000_v8  ;;  %v4133_v4 = vpop.f32.mrf.mxu1 }
 0x1e6   : > { %4215 = vmatprep.subr.bf16.mxu1 %v5348_v57 }
 0x1e7   : > { %v1493_v11 = vpop.f32.mrf.mxu1 }
 0x1e9   : > { %4216 = vmatpush3.bf16.msra.mxu1 %v5348_v57  ;;  %v1401_v57 = vmul.f32 1e+30, %v1400_v56  ;;  %v4134_v20 = vpop.f32.mrf.mxu1 }
 0x1ea   : > { %4217 = vmatprep.subr.bf16.mxu1 %v5353_v61 }
 0x1eb   : > { %v1402_v1 = vsub.f32 %v1394_v60, %v1401_v57  ;;  %v1496_v28 = vpop.f32.mrf.mxu1 }
 0x1ed   : > { %4218 = vmatpush3.bf16.msra.mxu1 %v5353_v61  ;;  %v1510_v61 = vsub.s32 0, %v5405_v62 }
 0x1ef   : > { %v1511_v6 = vrot.slane %v1402_v1, %v1510_v61 }
 0x211   : > { %v1416_v3 = vpop.permute.xlu1 %1415 }
 0x212   : > { %v1486_v8 = vadd.f32 %v4129_v54, %v1416_v3  ;;  %v5434_v54 = vld [vmem:[#allocation2] sm:$0xff] }
 0x213   : > { %v1406_v5 = vpop.permute.xlu0 %1405 }
 0x214   : > { %v1478_v7 = vadd.f32 %v1477_v59, %v1406_v5  ;;  %v5415_v19 = vadd.f32 %v1511_v6, %v1486_v8  ;;  %v5441_v59 = vld [vmem:[#allocation2 + $0x10] sm:$0xff]  ;;  %v5456_v5 = vld [vmem:[#allocation2 + $0x18] sm:$0xff] }
 0x215   : > { %v1421_v12 = vpop.permute.xlu1 %1420 }
 0x216   : > { %v5410_v9 = vadd.f32 %v1511_v6, %v1478_v7  ;;  %v1489_v17 = vadd.f32 %v4130_v63, %v1421_v12 }
 0x217   : > { %v1411_v14 = vpop.permute.xlu0 %1410 }
 0x218   : > { %v1481_v15 = vadd.f32 %v1480_v2, %v1411_v14  ;;  %1528 = vmax.xlane.f32.xlu0 %v5410_v9  ;;  %v5421_v25 = vadd.f32 %v1511_v6, %v1489_v17  ;;  %v5476_v17 = vld [vmem:[#allocation2 + $0x38] sm:$0xff] }
 0x21a   : > { %v5413_v18 = vadd.f32 %v1511_v6, %v1481_v15  ;;  %v5474_v15 = vld [vmem:[#allocation2 + $0x20] sm:$0xff] }
 0x21b   : > { %v1436_v10 = vpop.permute.xlu0 %1435 }
 0x21c   : > { %v1502_v21 = vadd.f32 %v4133_v4, %v1436_v10  ;;  %1530 = vmax.xlane.f32.xlu1 %v5413_v18  ;;  %1532 = vmax.xlane.f32.xlu0 %v5415_v19  ;;  %v5454_v4 = vld [vmem:[#allocation2 + $0x30] sm:$0xff] }
 0x21d   : > { %v1441_v22 = vpop.permute.xlu1 %1440 }
 0x21e   : > { %v1505_v24 = vadd.f32 %v4134_v20, %v1441_v22  ;;  %v5419_v13 = vadd.f32 %v1511_v6, %v1502_v21 }
 0x21f   : > { %v1426_v27 = vpop.permute.xlu0 %1425 }
 0x220   : > { %v1494_v29 = vadd.f32 %v1493_v11, %v1426_v27  ;;  %1540 = vmax.xlane.f32.xlu1 %v5419_v13  ;;  %1534 = vmax.xlane.f32.xlu0 %v5421_v25  ;;  %v5427_v34 = vadd.f32 %v1511_v6, %v1505_v24 }
 0x221   : > { %v1431_v60 = vpop.permute.xlu1 %1430 }
 0x222   : > { %v1497_v31 = vadd.f32 %v1496_v28, %v1431_v60  ;;  %v5425_v33 = vadd.f32 %v1511_v6, %v1494_v29  ;;  %v5493_v28 = vld [vmem:[#allocation2 + $0x28] sm:$0xff] }
 0x224   : > { %1536 = vmax.xlane.f32.xlu1 %v5425_v33  ;;  %1542 = vmax.xlane.f32.xlu0 %v5427_v34  ;;  %v5431_v46 = vadd.f32 %v1511_v6, %v1497_v31  ;;  %v5649_v6 = vld [vmem:[#allocation2 + $0x70] sm:$0xff] }
 0x228   : > { %1538 = vmax.xlane.f32.xlu0 %v5431_v46 }
 0x2a1   : > { %v1529_v55 = vpop.xlane.xlu0 %1528 }
 0x2a2   : > { %v5437_v56 = vmax.f32 %v5434_v54, %v1529_v55 }
 0x2a4   : > { %1830 = vst.msk [vmem:[#allocation2] sm:$0xff] %vm1680_vm2, %v5437_v56  ;;  %1578 = vperm.xlu1 %4429, %v5437_v56  }
 0x2a5   : > { %v1531_v63 = vpop.xlane.xlu1 %1530  ;;  %v1533_v1 = vpop.xlane.xlu0 %1532 }
 0x2a6   : > { %v5449_v2 = vmax.f32 %v5439_v58, %v1531_v63  ;;  %v5452_v3 = vmax.f32 %v5441_v59, %v1533_v1 }
 0x2a8   : > { %1831 = vst.msk [vmem:[#allocation2 + $0x8] sm:$0xff] %vm1680_vm2, %v5449_v2  ;;  %1832 = vst.msk [vmem:[#allocation2 + $0x10] sm:$0xff] %vm1680_vm2, %v5452_v3  ;;  %1583 = vperm.xlu0 %4428, %v5449_v2   ;;  %1588 = vperm.xlu1 %4429, %v5452_v3  }
 0x2a9   : > { %v1541_v8 = vpop.xlane.xlu1 %1540  ;;  %v1535_v11 = vpop.xlane.xlu0 %1534 }
 0x2aa   : > { %v5469_v12 = vmax.f32 %v5454_v4, %v1541_v8  ;;  %v5472_v14 = vmax.f32 %v5456_v5, %v1535_v11 }
 0x2ac   : > { %1836 = vst.msk [vmem:[#allocation2 + $0x30] sm:$0xff] %vm1680_vm2, %v5469_v12  ;;  %1833 = vst.msk [vmem:[#allocation2 + $0x18] sm:$0xff] %vm1680_vm2, %v5472_v14  ;;  %1593 = vperm.xlu1 %4429, %v5472_v14  }
 0x2ad   : > { %v1537_v21 = vpop.xlane.xlu1 %1536  ;;  %v1543_v22 = vpop.xlane.xlu0 %1542 }
 0x2ae   : > { %v5488_v24 = vmax.f32 %v5474_v15, %v1537_v21  ;;  %v5491_v27 = vmax.f32 %v5476_v17, %v1543_v22 }
 0x2b0   : > { %1834 = vst.msk [vmem:[#allocation2 + $0x20] sm:$0xff] %vm1680_vm2, %v5488_v24  ;;  %1837 = vst.msk [vmem:[#allocation2 + $0x38] sm:$0xff] %vm1680_vm2, %v5491_v27  ;;  %1598 = vperm.xlu0 %4428, %v5488_v24  }
 0x2b1   : > { %v1539_v31 = vpop.xlane.xlu0 %1538 }
 0x2b2   : > { %v5505_v55 = vmax.f32 %v5493_v28, %v1539_v31 }
 0x2b4   : > { %1835 = vst.msk [vmem:[#allocation2 + $0x28] sm:$0xff] %vm1680_vm2, %v5505_v55  ;;  %1608 = vperm.xlu0 %4428, %v5469_v12   ;;  %1603 = vperm.xlu1 %4429, %v5505_v55  }
 0x2b8   : > { %1884 = vperm.xlu0 %4428, %v5386_v51   ;;  %1613 = vperm.xlu1 %4429, %v5491_v27  }
 0x2bc   : > { %1894 = vperm.xlu0 %4428, %v5384_v0   ;;  %1889 = vperm.xlu1 %4429, %v5392_v48  }
 0x2c0   : > { %1904 = vperm.xlu0 %4428, %v5398_v50   ;;  %1899 = vperm.xlu1 %4429, %v5388_v47  }
 0x2c4   : > { %1914 = vperm.xlu0 %4428, %v5396_v49   ;;  %1909 = vperm.xlu1 %4429, %v5402_v53  }
 0x2c8   : > { %1919 = vperm.xlu1 %4429, %v5400_v52  }
 0x31f   : > { %v1579_v1 = vpop.permute.xlu1 %1578 }
 0x320   : > { %v1616_v8 = vsub.f32 %v5410_v9, %v1579_v1 }
 0x322   : > { %v1624_v21 = vmul.f32 1.442695, %v1616_v8 }
 0x323   : > { %v1589_v51 = vpop.permute.xlu1 %1588  ;;  %v1584_v11 = vpop.permute.xlu0 %1583 }
 0x324   : > { %v1618_v0 = vsub.f32 %v5415_v19, %v1589_v51  ;;  %v1617_v48 = vsub.f32 %v5413_v18, %v1584_v11  ;;  %4470 = vpow2.f32 %v1624_v21 }
 0x326   : > { %v1626_v22 = vmul.f32 1.442695, %v1617_v48  ;;  %v1628_v50 = vmul.f32 1.442695, %v1618_v0 }
 0x327   : > { %v1594_v31 = vpop.permute.xlu1 %1593 }
 0x328   : > { %v1619_v47 = vsub.f32 %v5421_v25, %v1594_v31  ;;  %4472 = vpow2.f32 %v1626_v22 }
 0x329   : > { %4474 = vpow2.f32 %v1628_v50 }
 0x32a   : > { %v1630_v49 = vmul.f32 1.442695, %v1619_v47 }
 0x32b   : > { %v1599_v52 = vpop.permute.xlu0 %1598 }
 0x32c   : > { %4476 = vpow2.f32 %v1630_v49  ;;  %v1620_v53 = vsub.f32 %v5425_v33, %v1599_v52 }
 0x32e   : > { %v1632_v9 = vmul.f32 1.442695, %v1620_v53 }
 0x32f   : > { %v1604_v1 = vpop.permute.xlu1 %1603  ;;  %v1609_v8 = vpop.permute.xlu0 %1608 }
 0x330   : > { %v1621_v19 = vsub.f32 %v5431_v46, %v1604_v1  ;;  %v1622_v18 = vsub.f32 %v5419_v13, %v1609_v8  ;;  %4478 = vpow2.f32 %v1632_v9 }
 0x331   : > { %v5530_v0 = vpop.eup %4470 }
 0x332   : > { %v1634_v51 = vmul.f32 1.442695, %v1621_v19  ;;  %v1636_v11 = vmul.f32 1.442695, %v1622_v18 }
 0x333   : > { %v1614_v21 = vpop.permute.xlu1 %1613  ;;  %v1885_v18 = vpop.permute.xlu0 %1884 }
 0x334   : > { %4480 = vpow2.f32 %v1634_v51  ;;  %v1623_v25 = vsub.f32 %v5427_v34, %v1614_v21 }
 0x335   : > { %v5532_v48 = vpop.eup %4472  ;;  %4482 = vpow2.f32 %v1636_v11 }
 0x336   : > { %v1638_v22 = vmul.f32 1.442695, %v1623_v25  ;;  %v1745_v33 = vpack.c.bf16 %v5532_v48, %v5530_v0  ;;  %v5536_v50 = vpop.eup %4474 }
 0x337   : > { %v1890_v21 = vpop.permute.xlu1 %1889 }
 0x338   : > { %4484 = vpow2.f32 %v1638_v22  ;;  %4151 = vmatprep.mubr.bf16.mxu0 %v1745_v33  ;;  %v1895_v33 = vpop.permute.xlu0 %1894 }
 0x339   : > { %v5538_v13 = vpop.eup %4476 }
 0x33a   : > { %v1746_v46 = vpack.c.bf16 %v5538_v13, %v5536_v50 }
 0x33c   : > { %4152 = vmatmul.mubr.bf16.vlgmr.msra.gmra.mxu0 %v1746_v46 }
 0x33d   : > { %4180 = vmatpush3.bf16.xpose.msra.mxu0 %v5272_v45  ;;  %v5544_v34 = vpop.eup %4478 }
 0x33e   : > { %4181 = vmatprep.subr.bf16.mxu0 %v5263_v44 }
 0x341   : > { %v5546_v31 = vpop.eup %4480 }
 0x342   : > { %v1747_v47 = vpack.c.bf16 %v5546_v31, %v5544_v34  ;;  %v5550_v49 = vpop.eup %4482 }
 0x344   : > { %4155 = vmatprep.mubr.bf16.mxu0 %v1747_v47 }
 0x345   : > { %v5552_v52 = vpop.eup %4484  ;;  %4182 = vmatpush3.bf16.xpose.msra.mxu0 %v5263_v44 }
 0x346   : > { %v1748_v53 = vpack.c.bf16 %v5552_v52, %v5550_v49  ;;  %4183 = vmatprep.subr.bf16.mxu0 %v5260_v43 }
 0x348   : > { %4156 = vmatmul.mubr.bf16.gmra.mxu0 %v1748_v53 }
 0x349   : > { %4195 = vmatprep.mubr.bf16.mxu0 %v5214_v32 }
 0x34d   : > { %4184 = vmatpush3.bf16.xpose.msra.mxu0 %v5260_v43 }
 0x34e   : > { %4185 = vmatprep.subr.bf16.mxu0 %v5253_v42 }
 0x355   : > { %4186 = vmatpush3.bf16.xpose.msra.mxu0 %v5253_v42 }
 0x356   : > { %4187 = vmatprep.subr.bf16.mxu0 %v5250_v41 }
 0x35d   : > { %4188 = vmatpush3.bf16.xpose.msra.mxu0 %v5250_v41  ;;  %v1873_v41 = vpop.f32.mrf.mxu1 }
 0x35e   : > { %4189 = vmatprep.subr.bf16.mxu0 %v5244_v40 }
 0x35f   : > { %v4177_v42 = vpop.f32.mrf.mxu1 }
 0x361   : > { %v1876_v43 = vpop.f32.mrf.mxu1 }
 0x362   : > { %v1900_v43 = vpop.permute.xlu1 %1899 }
 0x363   : > { %v4178_v44 = vpop.f32.mrf.mxu1 }
 0x365   : > { %4190 = vmatpush3.bf16.xpose.msra.mxu0 %v5244_v40 }
 0x366   : > { %4191 = vmatprep.subr.bf16.mxu0 %v5241_v39  ;;  %v1910_v7 = vpop.permute.xlu1 %1909 }
 0x36d   : > { %4192 = vmatpush3.bf16.xpose.msra.mxu0 %v5241_v39 }
 0x36e   : > { %4193 = vmatprep.subr.bf16.mxu0 %v5234_v38 }
 0x375   : > { %4194 = vmatpush3.bf16.xpose.msra.mxu0 %v5234_v38  ;;  %v661_v38 = vld [vmem:[%s5116_s19 + $0x1] sm:$0x1]  ;;  %s6384_s19 = sld [smem:[#allocation27_spill]] }
 0x376   : > { %v1879_v19 = vsub.f32 1.0, %v661_v38  ;;  %v1905_v38 = vpop.permute.xlu0 %1904 }
 0x378   : > { %v1880_v11 = vmul.f32 1e+30, %v1879_v19 }
 0x37a   : > { %v1881_v22 = vsub.f32 %v1873_v41, %v1880_v11 }
 0x37b   : > { %p3606_p13 = scmp.ne.s32.totalorder %s6384_s19, 1 }
 0x37c   : > { %4196 = vmatmul.mubr.bf16.vlgmr.msra.gmra.mxu0 %v5222_v35  ;;  %v1990_v53 = vrot.slane %v1881_v22, %v1510_v61  ;;  %s6385_s24 = sld [smem:[#allocation43_spill]] (!%p3606_p13) }
 0x37d   : > { %4199 = vmatprep.mubr.bf16.mxu0 %v5225_v36  ;;  %s6387_s6 = sld [smem:[#allocation44_spill]] (!%p3606_p13) }
 0x384   : > { %4200 = vmatmul.mubr.bf16.gmra.mxu0 %v5231_v37  ;;  %v5664_v37 = vld [vmem:[#allocation2 + $0x78] sm:$0xff] }
 0x3fc   : > { %v5573_v40 = vpop.f32.mrf.mxu0 }
 0x3fe   : > { %v5575_v45 = vpop.f32.mrf.mxu0 }
 0x400   : > { %v5577_v9 = vpop.f32.mrf.mxu0 }
 0x402   : > { %v5579_v39 = vpop.f32.mrf.mxu0 }
 0x408   : > { %v5581_v1 = vpop.f32.mrf.mxu0 }
 0x40a   : > { %v5584_v8 = vpop.f32.mrf.mxu0 }
 0x40c   : > { %v5586_v51 = vpop.f32.mrf.mxu0 }
 0x40e   : > { %v5588_v25 = vpop.f32.mrf.mxu0 }
 0x43c   : > { %v4197_v46 = vpop.f32.mrf.mxu0 }
 0x43d   : > { %v1965_v60 = vadd.f32 %v4197_v46, %v1895_v33 }
 0x43e   : > { %v1956_v47 = vpop.f32.mrf.mxu0 }
 0x43f   : > { %v1957_v42 = vadd.f32 %v1956_v47, %v1885_v18  ;;  %v5597_v11 = vadd.f32 %v1990_v53, %v1965_v60  ;;  %v1915_v18 = vpop.permute.xlu0 %1914 }
 0x440   : > { %v4198_v44 = vpop.f32.mrf.mxu0 }
 0x441   : > { %v5592_v63 = vadd.f32 %v1990_v53, %v1957_v42  ;;  %v1968_v20 = vadd.f32 %v4198_v44, %v1900_v43  ;;  %v5616_v44 = vld [vmem:[#allocation2 + $0x40] sm:$0xff] }
 0x442   : > { %v1959_v10 = vpop.f32.mrf.mxu0 }
 0x443   : > { %v1960_v29 = vadd.f32 %v1959_v10, %v1890_v21  ;;  %2008 = vmax.xlane.f32.xlu0 %v5592_v63  ;;  %v5601_v46 = vadd.f32 %v1990_v53, %v1968_v20 }
 0x444   : > { %v4201_v19 = vpop.f32.mrf.mxu0 }
 0x445   : > { %v5595_v41 = vadd.f32 %v1990_v53, %v1960_v29  ;;  %v1981_v33 = vadd.f32 %v4201_v19, %v1915_v18  ;;  %v1920_v29 = vpop.permute.xlu1 %1919  ;;  %v5621_v19 = vld [vmem:[#allocation2 + $0x48] sm:$0xff] }
 0x446   : > { %v1972_v62 = vpop.f32.mrf.mxu0 }
 0x447   : > { %v1973_v61 = vadd.f32 %v1972_v62, %v1905_v38  ;;  %2010 = vmax.xlane.f32.xlu1 %v5595_v41  ;;  %2012 = vmax.xlane.f32.xlu0 %v5597_v11  ;;  %v5609_v43 = vadd.f32 %v1990_v53, %v1981_v33  ;;  %v5623_v62 = vld [vmem:[#allocation2 + $0x50] sm:$0xff] }
 0x448   : > { %v4202_v22 = vpop.f32.mrf.mxu0 }
 0x449   : > { %v5603_v10 = vadd.f32 %v1990_v53, %v1973_v61  ;;  %v1984_v60 = vadd.f32 %v4202_v22, %v1920_v29 }
 0x44a   : > { %v1975_v21 = vpop.f32.mrf.mxu0 }
 0x44b   : > { %v1976_v47 = vadd.f32 %v1975_v21, %v1910_v7  ;;  %2014 = vmax.xlane.f32.xlu0 %v5601_v46  ;;  %2016 = vmax.xlane.f32.xlu1 %v5603_v10  ;;  %v5613_v20 = vadd.f32 %v1990_v53, %v1984_v60  ;;  %v5634_v21 = vld [vmem:[#allocation2 + $0x60] sm:$0xff] }
 0x44d   : > { %v5607_v42 = vadd.f32 %v1990_v53, %v1976_v47  ;;  %v5636_v47 = vld [vmem:[#allocation2 + $0x58] sm:$0xff] }
 0x44f   : > { %2018 = vmax.xlane.f32.xlu0 %v5607_v42  ;;  %2020 = vmax.xlane.f32.xlu1 %v5609_v43 }
 0x453   : > { %2022 = vmax.xlane.f32.xlu0 %v5613_v20 }
 0x4cc   : > { %v2009_v7 = vpop.xlane.xlu0 %2008 }
 0x4cd   : > { %v5619_v38 = vmax.f32 %v5616_v44, %v2009_v7 }
 0x4cf   : > { %2311 = vst.msk [vmem:[#allocation2 + $0x40] sm:$0xff] %vm1680_vm2, %v5619_v38  ;;  %2058 = vperm.xlu1 %4429, %v5619_v38  }
 0x4d0   : > { %v2011_v53 = vpop.xlane.xlu1 %2010  ;;  %v2013_v18 = vpop.xlane.xlu0 %2012 }
 0x4d1   : > { %v2025_v22 = vmax.f32 %v5621_v19, %v2011_v53  ;;  %v5632_v33 = vmax.f32 %v5623_v62, %v2013_v18 }
 0x4d3   : > { %v2033_v29 = vsub.f32 %v5621_v19, %v2025_v22  ;;  %2312 = vst.msk [vmem:[#allocation2 + $0x48] sm:$0xff] %vm1680_vm2, %v2025_v22  ;;  %v2034_v60 = vsub.f32 %v5623_v62, %v5632_v33  ;;  %2313 = vst.msk [vmem:[#allocation2 + $0x50] sm:$0xff] %vm1680_vm2, %v5632_v33  ;;  %2063 = vperm.xlu0 %4428, %v2025_v22   ;;  %2068 = vperm.xlu1 %4429, %v5632_v33   ;;  %v5651_v19 = vld [vmem:[#allocation2 + $0x68] sm:$0xff] }
 0x4d4   : > { %v2017_v7 = vpop.xlane.xlu1 %2016  ;;  %v2015_v53 = vpop.xlane.xlu0 %2014 }
 0x4d5   : > { %v2028_v18 = vmax.f32 %v5634_v21, %v2017_v7  ;;  %v5647_v61 = vmax.f32 %v5636_v47, %v2015_v53 }
 0x4d7   : > { %v2036_v57 = vsub.f32 %v5634_v21, %v2028_v18  ;;  %2315 = vst.msk [vmem:[#allocation2 + $0x60] sm:$0xff] %vm1680_vm2, %v2028_v18  ;;  %v2035_v62 = vsub.f32 %v5636_v47, %v5647_v61  ;;  %2314 = vst.msk [vmem:[#allocation2 + $0x58] sm:$0xff] %vm1680_vm2, %v5647_v61  ;;  %2078 = vperm.xlu0 %4428, %v2028_v18   ;;  %2073 = vperm.xlu1 %4429, %v5647_v61  }
 0x4d8   : > { %v2021_v22 = vpop.xlane.xlu1 %2020  ;;  %v2019_v33 = vpop.xlane.xlu0 %2018 }
 0x4d9   : > { %v5661_v7 = vmax.f32 %v5649_v6, %v2021_v22  ;;  %v2029_v53 = vmax.f32 %v5651_v19, %v2019_v33 }
 0x4db   : > { %v2038_v21 = vsub.f32 %v5649_v6, %v5661_v7  ;;  %2317 = vst.msk [vmem:[#allocation2 + $0x70] sm:$0xff] %vm1680_vm2, %v5661_v7  ;;  %v2037_v47 = vsub.f32 %v5651_v19, %v2029_v53  ;;  %2316 = vst.msk [vmem:[#allocation2 + $0x68] sm:$0xff] %vm1680_vm2, %v2029_v53  ;;  %2088 = vperm.xlu0 %4428, %v5661_v7   ;;  %2083 = vperm.xlu1 %4429, %v2029_v53   ;;  %v1643_v7 = vld [vmem:[#allocation3 + $0x18] sm:$0xff] }
 0x4dc   : > { %v2023_v61 = vpop.xlane.xlu0 %2022  ;;  %v6375_v19 = vsub.f32 %v5434_v54, %v5437_v56  ;;  %v6379_v54 = vsub.f32 %v5474_v15, %v5488_v24  ;;  %v2048_v15 = vmul.f32 1.442695, %v2036_v57 }
 0x4dd   : > { %v5674_v18 = vmax.f32 %v5664_v37, %v2023_v61 }
 0x4de   : > { %v1560_v33 = vmul.f32 1.442695, %v6375_v19  ;;  %v1568_v56 = vmul.f32 1.442695, %v6379_v54 }
 0x4df   : > { %v2039_v22 = vsub.f32 %v5664_v37, %v5674_v18  ;;  %2318 = vst.msk [vmem:[#allocation2 + $0x78] sm:$0xff] %vm1680_vm2, %v5674_v18  ;;  %2093 = vperm.xlu1 %4429, %v5674_v18   ;;  %v1642_v18 = vld [vmem:[#allocation3 + $0x10] sm:$0xff] }
 0x4e0   : > { %4486 = vpow2.f32 %v1560_v33 }
 0x4fa   : > { %1656 = vadd.xlane.f32.xlu0 %v5530_v0  ;;  %v6376_v0 = vsub.f32 %v5439_v58, %v5449_v2 }
 0x4fe   : > { %1660 = vadd.xlane.f32.xlu0 %v5536_v50  ;;  %v1562_v50 = vmul.f32 1.442695, %v6376_v0 }
 0x500   : > { %4488 = vpow2.f32 %v1562_v50 }
 0x502   : > { %1662 = vadd.xlane.f32.xlu0 %v5538_v13 }
 0x503   : > { %1658 = vadd.xlane.f32.xlu1 %v5532_v48  ;;  %v6377_v48 = vsub.f32 %v5441_v59, %v5452_v3  ;;  %v6381_v59 = vsub.f32 %v5493_v28, %v5505_v55  ;;  %v6382_v3 = vsub.f32 %v5476_v17, %v5491_v27  ;;  %v6383_v27 = vsub.f32 %v5616_v44, %v5619_v38 }
 0x504   : > { %v2050_v44 = vmul.f32 1.442695, %v2037_v47 }
 0x505   : > { %v1564_v13 = vmul.f32 1.442695, %v6377_v48  ;;  %v1570_v2 = vmul.f32 1.442695, %v6381_v59  ;;  %v2040_v28 = vmul.f32 1.442695, %v6383_v27 }
 0x506   : > { %1666 = vadd.xlane.f32.xlu0 %v5546_v31 }
 0x507   : > { %1664 = vadd.xlane.f32.xlu1 %v5544_v34  ;;  %v6378_v34 = vsub.f32 %v5456_v5, %v5472_v14  ;;  %4490 = vpow2.f32 %v1564_v13  ;;  %v1574_v5 = vmul.f32 1.442695, %v6382_v3  ;;  %v2042_v14 = vmul.f32 1.442695, %v2033_v29 }
 0x508   : > { %v2046_v29 = vmul.f32 1.442695, %v2035_v62 }
 0x509   : > { %v1566_v31 = vmul.f32 1.442695, %v6378_v34 }
 0x50a   : > { %1670 = vadd.xlane.f32.xlu0 %v5552_v52  ;;  %v5713_v52 = vpop.eup %4486 }
 0x50b   : > { %1668 = vadd.xlane.f32.xlu1 %v5550_v49  ;;  %v6380_v49 = vsub.f32 %v5454_v4, %v5469_v12  ;;  %4492 = vpow2.f32 %v1566_v31  ;;  %v2044_v4 = vmul.f32 1.442695, %v2034_v60 }
 0x50c   : > { %4494 = vpow2.f32 %v1568_v56 }
 0x50d   : > { %v1572_v58 = vmul.f32 1.442695, %v6380_v49  ;;  %v5716_v12 = vpop.eup %4488 }
 0x50f   : > { %4496 = vpow2.f32 %v1572_v58 }
 0x510   : > { %4498 = vpow2.f32 %v1570_v2 }
 0x511   : > { %4500 = vpow2.f32 %v1574_v5 }
 0x512   : > { %4502 = vpow2.f32 %v2042_v14 }
 0x513   : > { %4504 = vpow2.f32 %v2044_v4 }
 0x514   : > { %v5718_v24 = vpop.eup %4490  ;;  %4506 = vpow2.f32 %v2048_v15 }
 0x515   : > { %4508 = vpow2.f32 %v2040_v28 }
 0x516   : > { %4510 = vpow2.f32 %v2046_v29 }
 0x517   : > { %4512 = vpow2.f32 %v2050_v44 }
 0x518   : > { %v5722_v17 = vpop.eup %4492 }
 0x519   : > { %v5727_v55 = vpop.eup %4494 }
 0x51c   : > { %1699 = vperm.xlu1 %4429, %v5713_v52   ;;  %v5731_v57 = vpop.eup %4496 }
 0x51d   : > { %v5733_v60 = vpop.eup %4498 }
 0x51e   : > { %v5737_v53 = vpop.eup %4500 }
 0x51f   : > { %v5739_v38 = vpop.eup %4502 }
 0x520   : > { %1704 = vperm.xlu0 %4428, %v5716_v12   ;;  %1709 = vperm.xlu1 %4429, %v5718_v24   ;;  %v5743_v61 = vpop.eup %4504 }
 0x521   : > { %v5745_v62 = vpop.eup %4506 }
 0x522   : > { %v5749_v19 = vpop.eup %4508 }
 0x523   : > { %v5752_v47 = vpop.eup %4510 }
 0x524   : > { %1719 = vperm.xlu0 %4428, %v5727_v55   ;;  %1714 = vperm.xlu1 %4429, %v5722_v17   ;;  %v5755_v33 = vpop.eup %4512 }
 0x528   : > { %1729 = vperm.xlu0 %4428, %v5731_v57   ;;  %1724 = vperm.xlu1 %4429, %v5733_v60  }
 0x52c   : > { %2185 = vperm.xlu0 %4428, %v5739_v38   ;;  %1734 = vperm.xlu1 %4429, %v5737_v53  }
 0x530   : > { %2200 = vperm.xlu0 %4428, %v5745_v62   ;;  %2190 = vperm.xlu1 %4429, %v5743_v61  }
 0x534   : > { %2180 = vperm.xlu1 %4429, %v5749_v19  }
 0x538   : > { %2195 = vperm.xlu1 %4429, %v5752_v47  }
 0x53c   : > { %2205 = vperm.xlu1 %4429, %v5755_v33  }
 0x54a   : > { %v2059_v0 = vpop.permute.xlu1 %2058 }
 0x54b   : > { %v2096_v50 = vsub.f32 %v5592_v63, %v2059_v0 }
 0x54d   : > { %v2104_v48 = vmul.f32 1.442695, %v2096_v50 }
 0x54e   : > { %v2069_v13 = vpop.permute.xlu1 %2068  ;;  %v2064_v34 = vpop.permute.xlu0 %2063 }
 0x54f   : > { %v2098_v31 = vsub.f32 %v5597_v11, %v2069_v13  ;;  %v2097_v54 = vsub.f32 %v5595_v41, %v2064_v34  ;;  %4514 = vpow2.f32 %v2104_v48 }
 0x551   : > { %v2108_v56 = vmul.f32 1.442695, %v2098_v31  ;;  %v2106_v49 = vmul.f32 1.442695, %v2097_v54  ;;  %v2054_v54 = vmul.f32 1.442695, %v2039_v22 }
 0x552   : > { %v2074_v58 = vpop.permute.xlu1 %2073  ;;  %v2079_v59 = vpop.permute.xlu0 %2078 }
 0x553   : > { %4516 = vpow2.f32 %v2108_v56  ;;  %v2099_v2 = vsub.f32 %v5601_v46, %v2074_v58  ;;  %v2100_v3 = vsub.f32 %v5603_v10, %v2079_v59  ;;  %v1640_v59 = vld [vmem:[#allocation3] sm:$0xff] }
 0x554   : > { %4518 = vpow2.f32 %v2106_v49  ;;  %v2052_v49 = vmul.f32 1.442695, %v2038_v21 }
 0x555   : > { %v2110_v5 = vmul.f32 1.442695, %v2099_v2  ;;  %v2112_v63 = vmul.f32 1.442695, %v2100_v3  ;;  %v1648_v2 = vmul.f32 %v5713_v52, %v1640_v59 }
 0x556   : > { %v2084_v14 = vpop.permute.xlu1 %2083  ;;  %v2089_v4 = vpop.permute.xlu0 %2088 }
 0x557   : > { %4520 = vpow2.f32 %v2110_v5  ;;  %v2101_v11 = vsub.f32 %v5607_v42, %v2084_v14  ;;  %v2102_v41 = vsub.f32 %v5609_v43, %v2089_v4  ;;  %v1650_v5 = vmul.f32 %v5718_v24, %v1642_v18  ;;  %v1692_v18 = vld [vmem:[#allocation4 + $0x18] sm:$0xff] }
 0x558   : > { %4522 = vpow2.f32 %v2112_v63  ;;  %v1641_v63 = vld [vmem:[#allocation3 + $0x8] sm:$0xff]  ;;  %v1651_v14 = vmul.f32 %v5722_v17, %v1643_v7 }
 0x559   : > { %v2114_v15 = vmul.f32 1.442695, %v2101_v11  ;;  %v2116_v27 = vmul.f32 1.442695, %v2102_v41  ;;  %v1649_v4 = vmul.f32 %v5716_v12, %v1641_v63  ;;  %v1645_v11 = vld [vmem:[#allocation3 + $0x28] sm:$0xff] }
 0x55a   : > { %v2094_v28 = vpop.permute.xlu1 %2093  ;;  %v1653_v24 = vmul.f32 %v5733_v60, %v1645_v11  ;;  %v1695_v63 = vld [vmem:[#allocation4 + $0x8] sm:$0xff] }
 0x55b   : > { %4524 = vpow2.f32 %v2114_v15  ;;  %v2103_v29 = vsub.f32 %v5613_v20, %v2094_v28 }
 0x55c   : > { %4526 = vpow2.f32 %v2116_v27  ;;  %v4515_v10 = vpop.eup %4514  ;;  %v1644_v27 = vld [vmem:[#allocation3 + $0x20] sm:$0xff] }
 0x55d   : > { %v2118_v46 = vmul.f32 1.442695, %v2103_v29 }
 0x55f   : > { %4528 = vpow2.f32 %v2118_v46  ;;  %v1652_v46 = vmul.f32 %v5727_v55, %v1644_v27  ;;  %v1689_v55 = vld [vmem:[#allocation4 + $0x30] sm:$0xff] }
 0x560   : > { %v4517_v44 = vpop.eup %4516  ;;  %4530 = vpow2.f32 %v2054_v54  ;;  %v1691_v54 = vld [vmem:[#allocation4 + $0x58] sm:$0xff] }
 0x561   : > { %v4519_v0 = vpop.eup %4518  ;;  %2141 = vadd.xlane.f32.xlu0 %v4517_v44  ;;  %4532 = vpow2.f32 %v2052_v49 }
 0x562   : > { %2139 = vadd.xlane.f32.xlu1 %v4519_v0  ;;  %v2226_v50 = vpack.c.bf16 %v4519_v0, %v4515_v10  ;;  %v1646_v0 = vld [vmem:[#allocation3 + $0x30] sm:$0xff] }
 0x564   : > { %v4521_v48 = vpop.eup %4520  ;;  %4219 = vmatprep.mubr.bf16.mxu1 %v2226_v50 }
 0x565   : > { %2137 = vadd.xlane.f32.xlu0 %v4515_v10  ;;  %v2227_v42 = vpack.c.bf16 %v4521_v48, %v4517_v44  ;;  %v4523_v43 = vpop.eup %4522  ;;  %v1647_v10 = vld [vmem:[#allocation3 + $0x38] sm:$0xff] }
 0x566   : > { %v1655_v12 = vmul.f32 %v5737_v53, %v1647_v10 }
 0x567   : > { %4220 = vmatmul.mubr.bf16.vlgmr.msra.gmra.mxu1 %v2227_v42  ;;  %v1654_v42 = vmul.f32 %v5731_v57, %v1646_v0  ;;  %v1693_v57 = vld [vmem:[#allocation4 + $0x50] sm:$0xff] }
 0x568   : > { %v4525_v13 = vpop.eup %4524 }
 0x569   : > { %v4527_v34 = vpop.eup %4526  ;;  %2143 = vadd.xlane.f32.xlu0 %v4521_v48  ;;  %v2228_v31 = vpack.c.bf16 %v4525_v13, %v4523_v43 }
 0x56a   : > { %2149 = vadd.xlane.f32.xlu1 %v4527_v34 }
 0x56b   : > { %4223 = vmatprep.mubr.bf16.mxu1 %v2228_v31 }
 0x56c   : > { %v4529_v20 = vpop.eup %4528 }
 0x56d   : > { %2151 = vadd.xlane.f32.xlu0 %v4529_v20  ;;  %v2229_v56 = vpack.c.bf16 %v4529_v20, %v4527_v34  ;;  %v5772_v58 = vpop.eup %4530  ;;  %v1690_v20 = vld [vmem:[#allocation4] sm:$0xff] }
 0x56e   : > { %2145 = vadd.xlane.f32.xlu1 %v4523_v43  ;;  %v5776_v3 = vpop.eup %4532 }
 0x56f   : > { %4224 = vmatmul.mubr.bf16.gmra.mxu1 %v2229_v56 }
 0x571   : > { %2147 = vadd.xlane.f32.xlu0 %v4525_v13 }
 0x57f   : > { %2215 = vperm.xlu1 %4429, %v5772_v58  }
 0x583   : > { %v1657_v37 = vpop.xlane.xlu0 %1656 }
 0x584   : > { %v1672_v22 = vadd.f32 %v1657_v37, %v1648_v2 }
 0x586   : > { %1681 = vst.msk [vmem:[#allocation3] sm:$0xff] %vm1680_vm2, %v1672_v22 }
 0x587   : > { %2210 = vperm.xlu0 %4428, %v5776_v3   ;;  %v1661_v6 = vpop.xlane.xlu0 %1660 }
 0x588   : > { %v1674_v21 = vadd.f32 %v1661_v6, %v1650_v5 }
 0x58a   : > { %1683 = vst.msk [vmem:[#allocation3 + $0x10] sm:$0xff] %vm1680_vm2, %v1674_v21 }
 0x58b   : > { %v1663_v52 = vpop.xlane.xlu0 %1662 }
 0x58c   : > { %v1675_v41 = vadd.f32 %v1663_v52, %v1651_v14  ;;  %v1659_v15 = vpop.xlane.xlu1 %1658  ;;  %v1694_v14 = vld [vmem:[#allocation4 + $0x68] sm:$0xff] }
 0x58d   : > { %v1673_v28 = vadd.f32 %v1659_v15, %v1649_v4  ;;  %v1696_v15 = vld [vmem:[#allocation4 + $0x48] sm:$0xff] }
 0x58e   : > { %1684 = vst.msk [vmem:[#allocation3 + $0x18] sm:$0xff] %vm1680_vm2, %v1675_v41 }
 0x58f   : > { %1682 = vst.msk [vmem:[#allocation3 + $0x8] sm:$0xff] %vm1680_vm2, %v1673_v28  ;;  %v1667_v29 = vpop.xlane.xlu0 %1666 }
 0x590   : > { %v1677_v44 = vadd.f32 %v1667_v29, %v1653_v24  ;;  %v1665_v17 = vpop.xlane.xlu1 %1664 }
 0x591   : > { %v1676_v50 = vadd.f32 %v1665_v17, %v1652_v46  ;;  %v2123_v17 = vld [vmem:[#allocation3 + $0x50] sm:$0xff] }
 0x592   : > { %1686 = vst.msk [vmem:[#allocation3 + $0x28] sm:$0xff] %vm1680_vm2, %v1677_v44 }
 0x593   : > { %1685 = vst.msk [vmem:[#allocation3 + $0x20] sm:$0xff] %vm1680_vm2, %v1676_v50  ;;  %v1671_v48 = vpop.xlane.xlu0 %1670  ;;  %v2131_v50 = vmul.f32 %v5743_v61, %v2123_v17  ;;  %v2177_v17 = vld [vmem:[#allocation4 + $0x28] sm:$0xff] }
 0x594   : > { %v1679_v60 = vadd.f32 %v1671_v48, %v1655_v12  ;;  %v1669_v43 = vpop.xlane.xlu1 %1668  ;;  %v2121_v48 = vld [vmem:[#allocation3 + $0x40] sm:$0xff] }
 0x595   : > { %v1678_v13 = vadd.f32 %v1669_v43, %v1654_v42  ;;  %v2129_v43 = vmul.f32 %v5749_v19, %v2121_v48 }
 0x596   : > { %1688 = vst.msk [vmem:[#allocation3 + $0x38] sm:$0xff] %vm1680_vm2, %v1679_v60 }
 0x597   : > { %1687 = vst.msk [vmem:[#allocation3 + $0x30] sm:$0xff] %vm1680_vm2, %v1678_v13 }
 0x598   : > { %v1700_v34 = vpop.permute.xlu1 %1699 }
 0x599   : > { %v1737_v31 = vmul.f32 %v1700_v34, %v1689_v55  ;;  %v2124_v55 = vld [vmem:[#allocation3 + $0x58] sm:$0xff] }
 0x59a   : > { %v2132_v61 = vmul.f32 %v5752_v47, %v2124_v55 }
 0x59b   : > { %v1814_v56 = vadd.f32 %v5575_v45, %v1737_v31  ;;  %v1705_v53 = vpop.permute.xlu0 %1704  ;;  %v2127_v31 = vld [vmem:[#allocation3 + $0x70] sm:$0xff] }
 0x59c   : > { %v1738_v49 = vmul.f32 %v1705_v53, %v1690_v20  ;;  %v1710_v59 = vpop.permute.xlu1 %1709 }
 0x59d   : > { %1822 = vst [vmem:[#allocation4 + $0x30] sm:$0xff] %v1814_v56  ;;  %v1739_v2 = vmul.f32 %v1710_v59, %v1691_v54  ;;  %v2128_v54 = vld [vmem:[#allocation3 + $0x78] sm:$0xff] }
 0x59e   : > { %v1815_v37 = vadd.f32 %v5579_v39, %v1738_v49  ;;  %v2125_v49 = vld [vmem:[#allocation3 + $0x60] sm:$0xff]  ;;  %v2136_v19 = vmul.f32 %v5772_v58, %v2128_v54  ;;  %v2172_v58 = vld [vmem:[#allocation4 + $0x10] sm:$0xff] }
 0x59f   : > { %v1816_v22 = vadd.f32 %v5573_v40, %v1739_v2  ;;  %v1720_v5 = vpop.permute.xlu0 %1719  ;;  %v2133_v2 = vmul.f32 %v5745_v62, %v2125_v49 }
 0x5a0   : > { %1823 = vst [vmem:[#allocation4] sm:$0xff] %v1815_v37  ;;  %v1741_v6 = vmul.f32 %v1720_v5, %v1693_v57  ;;  %v1715_v7 = vpop.permute.xlu1 %1714  ;;  %v2126_v37 = vld [vmem:[#allocation3 + $0x68] sm:$0xff] }
 0x5a1   : > { %1824 = vst [vmem:[#allocation4 + $0x58] sm:$0xff] %v1816_v22  ;;  %v1740_v21 = vmul.f32 %v1715_v7, %v1692_v18  ;;  %v2170_v7 = vld [vmem:[#allocation4 + $0x40] sm:$0xff] }
 0x5a2   : > { %v1818_v45 = vadd.f32 %v5584_v8, %v1741_v6 }
 0x5a3   : > { %v1817_v52 = vadd.f32 %v5577_v9, %v1740_v21  ;;  %v1730_v4 = vpop.permute.xlu0 %1729 }
 0x5a4   : > { %1826 = vst [vmem:[#allocation4 + $0x50] sm:$0xff] %v1818_v45  ;;  %v1743_v11 = vmul.f32 %v1730_v4, %v1695_v63  ;;  %v1725_v41 = vpop.permute.xlu1 %1724  ;;  %v2173_v63 = vld [vmem:[#allocation4 + $0x38] sm:$0xff] }
 0x5a5   : > { %1825 = vst [vmem:[#allocation4 + $0x18] sm:$0xff] %v1817_v52  ;;  %v1742_v39 = vmul.f32 %v1725_v41, %v1694_v14  ;;  %v2171_v52 = vld [vmem:[#allocation4 + $0x20] sm:$0xff] }
 0x5a6   : > { %v1820_v40 = vadd.f32 %v5581_v1, %v1743_v11  ;;  %v2122_v1 = vld [vmem:[#allocation3 + $0x48] sm:$0xff] }
 0x5a7   : > { %v1819_v27 = vadd.f32 %v5588_v25, %v1742_v39  ;;  %v2186_v46 = vpop.permute.xlu0 %2185  ;;  %v2130_v25 = vmul.f32 %v5739_v38, %v2122_v1  ;;  %v2135_v38 = vmul.f32 %v5776_v3, %v2127_v31  ;;  %v2134_v3 = vmul.f32 %v5755_v33, %v2126_v37  ;;  %v2176_v39 = vld [vmem:[#allocation4 + $0x78] sm:$0xff] }
 0x5a8   : > { %1828 = vst [vmem:[#allocation4 + $0x8] sm:$0xff] %v1820_v40  ;;  %v1735_v28 = vpop.permute.xlu1 %1734 }
 0x5a9   : > { %1827 = vst [vmem:[#allocation4 + $0x68] sm:$0xff] %v1819_v27  ;;  %v1744_v24 = vmul.f32 %v1735_v28, %v1696_v15  ;;  %v2219_v15 = vmul.f32 %v2186_v46, %v2171_v52  ;;  %v2174_v28 = vld [vmem:[#allocation4 + $0x60] sm:$0xff] }
 0x5ab   : > { %v1821_v8 = vadd.f32 %v5586_v51, %v1744_v24  ;;  %v5802_v44 = vpop.permute.xlu0 %2200 }
 0x5ac   : > { %v2191_v29 = vpop.permute.xlu1 %2190 }
 0x5ad   : > { %1829 = vst [vmem:[#allocation4 + $0x48] sm:$0xff] %v1821_v8  ;;  %v2220_v21 = vmul.f32 %v2191_v29, %v2172_v58 }
 0x5b0   : > { %v2181_v9 = vpop.permute.xlu1 %2180 }
 0x5b1   : > { %v2218_v45 = vmul.f32 %v2181_v9, %v2170_v7 }
 0x5b4   : > { %v2196_v10 = vpop.permute.xlu1 %2195 }
 0x5b5   : > { %v2221_v11 = vmul.f32 %v2196_v10, %v2173_v63 }
 0x5b8   : > { %v5804_v0 = vpop.permute.xlu1 %2205 }
 0x5ea   : > { %v2142_v12 = vpop.xlane.xlu0 %2141 }
 0x5eb   : > { %v2140_v42 = vpop.xlane.xlu1 %2139  ;;  %v2155_v60 = vadd.f32 %v2142_v12, %v2131_v50  ;;  %v2222_v50 = vmul.f32 %v5802_v44, %v2174_v28 }
 0x5ec   : > { %v2154_v51 = vadd.f32 %v2140_v42, %v2130_v25  ;;  %v2175_v25 = vld [vmem:[#allocation4 + $0x70] sm:$0xff] }
 0x5ed   : > { %2163 = vst.msk [vmem:[#allocation3 + $0x50] sm:$0xff] %vm1680_vm2, %v2155_v60  ;;  %v2223_v60 = vmul.f32 %v5804_v0, %v2175_v25 }
 0x5ee   : > { %2162 = vst.msk [vmem:[#allocation3 + $0x48] sm:$0xff] %vm1680_vm2, %v2154_v51  ;;  %v2138_v13 = vpop.xlane.xlu0 %2137 }
 0x5ef   : > { %v2153_v34 = vadd.f32 %v2138_v13, %v2129_v43 }
 0x5f1   : > { %2161 = vst.msk [vmem:[#allocation3 + $0x40] sm:$0xff] %vm1680_vm2, %v2153_v34 }
 0x5f2   : > { %v2144_v20 = vpop.xlane.xlu0 %2143 }
 0x5f3   : > { %v2150_v56 = vpop.xlane.xlu1 %2149  ;;  %v2156_v53 = vadd.f32 %v2144_v20, %v2132_v61 }
 0x5f4   : > { %v2159_v59 = vadd.f32 %v2150_v56, %v2135_v38 }
 0x5f5   : > { %2164 = vst.msk [vmem:[#allocation3 + $0x58] sm:$0xff] %vm1680_vm2, %v2156_v53 }
 0x5f6   : > { %2167 = vst.msk [vmem:[#allocation3 + $0x70] sm:$0xff] %vm1680_vm2, %v2159_v59  ;;  %v2152_v57 = vpop.xlane.xlu0 %2151 }
 0x5f7   : > { %v2146_v18 = vpop.xlane.xlu1 %2145  ;;  %v2160_v47 = vadd.f32 %v2152_v57, %v2136_v19 }
 0x5f8   : > { %v2157_v22 = vadd.f32 %v2146_v18, %v2133_v2 }
 0x5f9   : > { %2168 = vst.msk [vmem:[#allocation3 + $0x78] sm:$0xff] %vm1680_vm2, %v2160_v47 }
 0x5fa   : > { %2165 = vst.msk [vmem:[#allocation3 + $0x60] sm:$0xff] %vm1680_vm2, %v2157_v22  ;;  %v2148_v5 = vpop.xlane.xlu0 %2147 }
 0x5fb   : > { %v2158_v6 = vadd.f32 %v2148_v5, %v2134_v3  ;;  %v2216_v1 = vpop.permute.xlu1 %2215 }
 0x5fc   : > { %v2225_v48 = vmul.f32 %v2216_v1, %v2177_v17 }
 0x5fd   : > { %2166 = vst.msk [vmem:[#allocation3 + $0x68] sm:$0xff] %vm1680_vm2, %v2158_v6 }
 0x602   : > { %v2211_v33 = vpop.permute.xlu0 %2210 }
 0x603   : > { %v2224_v8 = vmul.f32 %v2211_v33, %v2176_v39 }
 0x627   : > { %v4221_v62 = vpop.f32.mrf.mxu1 }
 0x628   : > { %v2297_v14 = vadd.f32 %v4221_v62, %v2220_v21 }
 0x629   : > { %v2264_v4 = vpop.f32.mrf.mxu1 }
 0x62a   : > { %2305 = vst [vmem:[#allocation4 + $0x10] sm:$0xff] %v2297_v14  ;;  %v2295_v41 = vadd.f32 %v2264_v4, %v2218_v45 }
 0x62b   : > { %v4222_v40 = vpop.f32.mrf.mxu1 }
 0x62c   : > { %2303 = vst [vmem:[#allocation4 + $0x40] sm:$0xff] %v2295_v41  ;;  %v2298_v27 = vadd.f32 %v4222_v40, %v2221_v11 }
 0x62d   : > { %v2267_v24 = vpop.f32.mrf.mxu1 }
 0x62e   : > { %2306 = vst [vmem:[#allocation4 + $0x38] sm:$0xff] %v2298_v27  ;;  %v2296_v29 = vadd.f32 %v2267_v24, %v2219_v15 }
 0x62f   : > { %v4225_v9 = vpop.f32.mrf.mxu1 }
 0x630   : > { %2304 = vst [vmem:[#allocation4 + $0x20] sm:$0xff] %v2296_v29  ;;  %v2301_v10 = vadd.f32 %v4225_v9, %v2224_v8 }
 0x631   : > { %v2280_v12 = vpop.f32.mrf.mxu1 }
 0x632   : > { %2309 = vst [vmem:[#allocation4 + $0x78] sm:$0xff] %v2301_v10  ;;  %v2299_v42 = vadd.f32 %v2280_v12, %v2222_v50 }
 0x633   : > { %v4226_v46 = vpop.f32.mrf.mxu1 }
 0x634   : > { %2307 = vst [vmem:[#allocation4 + $0x60] sm:$0xff] %v2299_v42  ;;  %v2302_v51 = vadd.f32 %v4226_v46, %v2225_v48  ;;  %2322 = sbr.rel (%p3606_p13) target bundleno = 1878 (0x756), region = 110 }
 0x635   : > { %v2283_v43 = vpop.f32.mrf.mxu1 }
 0x636   : > { %2310 = vst [vmem:[#allocation4 + $0x28] sm:$0xff] %v2302_v51  ;;  %v2300_v13 = vadd.f32 %v2283_v43, %v2223_v60 }
 0x638   : > { %2308 = vst [vmem:[#allocation4 + $0x70] sm:$0xff] %v2300_v13 }
 0x639   : > { %v4536_v44 = vld [vmem:[%s6385_s24 + $0x38] sm:$0xff]   ;;  %4243 = vmatprep.mubr.bf16.mxu0 %v5179_v16  ;;  %4251 = vmatprep.mubr.bf16.mxu1 %v5214_v32  ;;  %v4537_v0 = vld [vmem:[%s6385_s24 + $0x30] sm:$0xff]   ;;  %v4815_v55 = vmov 0   ;;  %v4538_v34 = vld [vmem:[%s6385_s24 + $0x28] sm:$0xff]  }
 0x63a   : > { %4535 = vset.pattern.permute.xlu1 %v4815_v55  ;;  %4534 = vset.pattern.permute.xlu0 %v4815_v55  ;;  %v2509_v16 = vld [vmem:[#allocation3 + $0x10] sm:$0xff]  ;;  %v2507_v31 = vld [vmem:[#allocation3] sm:$0xff]  ;;  %v2510_v32 = vld [vmem:[#allocation3 + $0x18] sm:$0xff] }
 0x63b   : > { %4227 = vmatprep.subr.bf16.mxu0 %v4536_v44  ;;  %4259 = vmatprep.subr.bf16.mxu1 %v4536_v44  ;;  %4544 = vrcp.f32 %v2509_v16  ;;  %v2508_v61 = vld [vmem:[#allocation3 + $0x8] sm:$0xff]  ;;  %v4539_v38 = vld [vmem:[%s6385_s24 + $0x20] sm:$0xff]   ;;  %v4540_v54 = vld [vmem:[%s6385_s24 + $0x18] sm:$0xff]  }
 0x63c   : > { %4228 = vmatpush3.bf16.msra.mxu0 %v4536_v44  ;;  %4267 = vmatpush3.bf16.msra.mxu1 %v4536_v44  ;;  %4546 = vrcp.f32 %v2507_v31  ;;  %v2512_v20 = vld [vmem:[#allocation3 + $0x28] sm:$0xff]  ;;  %v2511_v56 = vld [vmem:[#allocation3 + $0x20] sm:$0xff]  ;;  %v2514_v53 = vld [vmem:[#allocation3 + $0x38] sm:$0xff] }
 0x63d   : > { %4229 = vmatprep.subr.bf16.mxu0 %v4537_v0  ;;  %4260 = vmatprep.subr.bf16.mxu1 %v4537_v0  ;;  %4548 = vrcp.f32 %v2510_v32  ;;  %v2513_v49 = vld [vmem:[#allocation3 + $0x30] sm:$0xff]  ;;  %v5842_v59 = vld [vmem:[#allocation2] sm:$0xff]  ;;  %v5844_v19 = vld [vmem:[#allocation2 + $0x8] sm:$0xff] }
 0x63e   : > { %4550 = vrcp.f32 %v2508_v61  ;;  %v5846_v2 = vld [vmem:[#allocation2 + $0x10] sm:$0xff]  ;;  %v5848_v57 = vld [vmem:[#allocation2 + $0x18] sm:$0xff]  ;;  %v5850_v37 = vld [vmem:[#allocation2 + $0x20] sm:$0xff]  ;;  %v2651_v18 = vsel %vm1680_vm2, %v5842_v59, -inf  ;;  %v2652_v47 = vsel %vm1680_vm2, %v5844_v19, -inf }
 0x63f   : > { %4552 = vrcp.f32 %v2512_v20  ;;  %v5856_v22 = vld [vmem:[#allocation2 + $0x28] sm:$0xff]  ;;  %v5858_v3 = vld [vmem:[#allocation2 + $0x30] sm:$0xff]  ;;  %v5860_v5 = vld [vmem:[#allocation2 + $0x38] sm:$0xff]  ;;  %v2653_v6 = vsel %vm1680_vm2, %v5846_v2, -inf  ;;  %v2655_v58 = vsel %vm1680_vm2, %v5848_v57, -inf  ;;  %v2657_v7 = vsel %vm1680_vm2, %v5850_v37, -inf }
 0x640   : > { %4230 = vmatpush3.bf16.msra.mxu0 %v4537_v0  ;;  %4268 = vmatpush3.bf16.msra.mxu1 %v4537_v0  ;;  %4554 = vrcp.f32 %v2511_v56  ;;  %v2654_v21 = vmax.f32 %v2651_v18, %v2653_v6  ;;  %v2656_v63 = vmax.f32 %v2652_v47, %v2655_v58  ;;  %v2659_v62 = vsel %vm1680_vm2, %v5856_v22, -inf  ;;  %v5870_v45 = vld [vmem:[#allocation2 + $0x40] sm:$0xff]  ;;  %v5872_v14 = vld [vmem:[#allocation2 + $0x48] sm:$0xff]  ;;  %v5874_v52 = vld [vmem:[#allocation2 + $0x50] sm:$0xff] }
 0x641   : > { %4231 = vmatprep.subr.bf16.mxu0 %v4538_v34  ;;  %4261 = vmatprep.subr.bf16.mxu1 %v4538_v34  ;;  %4556 = vrcp.f32 %v2514_v53  ;;  %v2661_v4 = vsel %vm1680_vm2, %v5858_v3, -inf  ;;  %v2663_v11 = vsel %vm1680_vm2, %v5860_v5, -inf  ;;  %v5880_v41 = vld [vmem:[#allocation2 + $0x58] sm:$0xff]  ;;  %v5882_v39 = vld [vmem:[#allocation2 + $0x60] sm:$0xff]  ;;  %v5884_v33 = vld [vmem:[#allocation2 + $0x68] sm:$0xff]  ;;  %v2672_v40 = vsel %vm1680_vm2, %v5870_v45, -inf }
 0x642   : > { %4558 = vrcp.f32 %v2513_v49  ;;  %v4541_v15 = vld [vmem:[%s6385_s24 + $0x10] sm:$0xff]   ;;  %v2658_v27 = vmax.f32 %v2654_v21, %v2657_v7  ;;  %v2660_v28 = vmax.f32 %v2656_v63, %v2659_v62  ;;  %v5893_v8 = vld [vmem:[#allocation2 + $0x78] sm:$0xff]  ;;  %v2673_v29 = vsel %vm1680_vm2, %v5872_v14, -inf  ;;  %v2516_v1 = vld [vmem:[#allocation3 + $0x48] sm:$0xff] }
 0x643   : > { %v5891_v24 = vld [vmem:[#allocation2 + $0x70] sm:$0xff]  ;;  %v2674_v17 = vsel %vm1680_vm2, %v5874_v52, -inf  ;;  %v2676_v50 = vsel %vm1680_vm2, %v5880_v41, -inf  ;;  %v2678_v10 = vsel %vm1680_vm2, %v5882_v39, -inf  ;;  %v2680_v25 = vsel %vm1680_vm2, %v5884_v33, -inf  ;;  %v2515_v12 = vld [vmem:[#allocation3 + $0x40] sm:$0xff] }
 0x644   : > { %4232 = vmatpush3.bf16.msra.mxu0 %v4538_v34  ;;  %4269 = vmatpush3.bf16.msra.mxu1 %v4538_v34  ;;  %v2675_v9 = vmax.f32 %v2672_v40, %v2674_v17  ;;  %v2662_v48 = vmax.f32 %v2658_v27, %v2661_v4  ;;  %v2664_v42 = vmax.f32 %v2660_v28, %v2663_v11  ;;  %v2682_v60 = vsel %vm1680_vm2, %v5891_v24, -inf  ;;  %v4542_v0 = vld [vmem:[%s6385_s24 + $0x8] sm:$0xff]   ;;  %v4543_v20 = vld [vmem:[%s6385_s24] sm:$0xff]  }
 0x645   : > { %4233 = vmatprep.subr.bf16.mxu0 %v4539_v38  ;;  %4262 = vmatprep.subr.bf16.mxu1 %v4539_v38  ;;  %v2677_v46 = vmax.f32 %v2673_v29, %v2676_v50  ;;  %v2684_v13 = vsel %vm1680_vm2, %v5893_v8, -inf  ;;  %4560 = vrcp.f32 %v2516_v1 }
 0x646   : > { %v2679_v43 = vmax.f32 %v2675_v9, %v2678_v10  ;;  %v2665_v55 = vmax.f32 %v2662_v48, %v2664_v42  ;;  %4562 = vrcp.f32 %v2515_v12 }
 0x647   : > { %v2681_v34 = vmax.f32 %v2677_v46, %v2680_v25 }
 0x648   : > { %4234 = vmatpush3.bf16.msra.mxu0 %v4539_v38  ;;  %4270 = vmatpush3.bf16.msra.mxu1 %v4539_v38  ;;  %v4545_v51 = vpop.eup %4544  ;;  %v2683_v31 = vmax.f32 %v2679_v43, %v2682_v60  ;;  %v2666_v61 = vrot.slane %v2665_v55, 4 }
 0x649   : > { %4235 = vmatprep.subr.bf16.mxu0 %v4540_v54  ;;  %4263 = vmatprep.subr.bf16.mxu1 %v4540_v54  ;;  %v4547_v44 = vpop.eup %4546  ;;  %v2685_v38 = vmax.f32 %v2681_v34, %v2684_v13 }
 0x64a   : > { %2551 = vperm.xlu1 %4535, %v4545_v51   ;;  %v4549_v16 = vpop.eup %4548  ;;  %2541 = vperm.xlu0 %4534, %v4547_v44  }
 0x64b   : > { %v4551_v32 = vpop.eup %4550  ;;  %v2686_v56 = vmax.f32 %v2683_v31, %v2685_v38 }
 0x64c   : > { %4236 = vmatpush3.bf16.msra.mxu0 %v4540_v54  ;;  %4271 = vmatpush3.bf16.msra.mxu1 %v4540_v54  ;;  %v2667_v54 = vmax.f32 %v2665_v55, %v2666_v61  ;;  %v4553_v53 = vpop.eup %4552 }
 0x64d   : > { %4237 = vmatprep.subr.bf16.mxu0 %v4541_v15  ;;  %4264 = vmatprep.subr.bf16.mxu1 %v4541_v15  ;;  %v4555_v49 = vpop.eup %4554  ;;  %v2687_v47 = vrot.slane %v2686_v56, 4 }
 0x64e   : > { %2556 = vperm.xlu1 %4535, %v4549_v16   ;;  %2546 = vperm.xlu0 %4534, %v4551_v32   ;;  %v2668_v18 = vrot.slane %v2667_v54, 2  ;;  %v4557_v6 = vpop.eup %4556 }
 0x64f   : > { %v4559_v58 = vpop.eup %4558  ;;  %v2688_v21 = vmax.f32 %v2686_v56, %v2687_v47 }
 0x650   : > { %4238 = vmatpush3.bf16.msra.mxu0 %v4541_v15  ;;  %4272 = vmatpush3.bf16.msra.mxu1 %v4541_v15  ;;  %v2669_v7 = vmax.f32 %v2667_v54, %v2668_v18 }
 0x651   : > { %4239 = vmatprep.subr.bf16.mxu0 %v4542_v0  ;;  %4265 = vmatprep.subr.bf16.mxu1 %v4542_v0  ;;  %v2689_v62 = vrot.slane %v2688_v21, 2 }
 0x652   : > { %2566 = vperm.xlu1 %4535, %v4553_v53   ;;  %2561 = vperm.xlu0 %4534, %v4555_v49   ;;  %v2670_v63 = vrot.slane %v2669_v7, 1  ;;  %v4561_v40 = vpop.eup %4560 }
 0x653   : > { %v2690_v11 = vmax.f32 %v2688_v21, %v2689_v62  ;;  %v4563_v15 = vpop.eup %4562 }
 0x654   : > { %4240 = vmatpush3.bf16.msra.mxu0 %v4542_v0  ;;  %4273 = vmatpush3.bf16.msra.mxu1 %v4542_v0  ;;  %v2671_v4 = vmax.f32 %v2669_v7, %v2670_v63 }
 0x655   : > { %4241 = vmatprep.subr.bf16.mxu0 %v4543_v20  ;;  %4266 = vmatprep.subr.bf16.mxu1 %v4543_v20  ;;  %v2691_v29 = vrot.slane %v2690_v11, 1 }
 0x656   : > { %2576 = vperm.xlu1 %4535, %v4557_v6   ;;  %2571 = vperm.xlu0 %4534, %v4559_v58   ;;  %v2694_v27 = vsub.f32 %v5844_v19, %v2671_v4  ;;  %v2693_v28 = vsub.f32 %v5842_v59, %v2671_v4  ;;  %v2695_v17 = vsub.f32 %v5846_v2, %v2671_v4 }
 0x657   : > { %v2696_v1 = vsub.f32 %v5848_v57, %v2671_v4  ;;  %v2692_v10 = vmax.f32 %v2690_v11, %v2691_v29  ;;  %v2697_v19 = vsub.f32 %v5850_v37, %v2671_v4  ;;  %v2698_v37 = vsub.f32 %v5856_v22, %v2671_v4 }
 0x658   : > { %4242 = vmatpush3.bf16.msra.mxu0 %v4543_v20  ;;  %4274 = vmatpush3.bf16.msra.mxu1 %v4543_v20  ;;  %v2711_v9 = vmul.f32 1.442695, %v2694_v27  ;;  %v2709_v50 = vmul.f32 1.442695, %v2693_v28  ;;  %v2700_v22 = vsub.f32 %v5860_v5, %v2671_v4 }
 0x659   : > { %v2702_v59 = vsub.f32 %v5872_v14, %v2692_v10  ;;  %v2701_v2 = vsub.f32 %v5870_v45, %v2692_v10  ;;  %v2705_v57 = vsub.f32 %v5882_v39, %v2692_v10  ;;  %v2706_v25 = vsub.f32 %v5884_v33, %v2692_v10  ;;  %v6386_v45 = vld [vmem:[#allocation38_spill] sm:$0xff] }
 0x65a   : > { %2586 = vperm.xlu1 %4535, %v4561_v40   ;;  %2581 = vperm.xlu0 %4534, %v4563_v15   ;;  %4564 = vpow2.f32 %v2711_v9  ;;  %v2699_v39 = vsub.f32 %v5858_v3, %v2671_v4  ;;  %v2708_v60 = vsub.f32 %v5893_v8, %v2692_v10  ;;  %v2719_v51 = vmul.f32 1.442695, %v2698_v37 }
 0x65b   : > { %4244 = vmatmul.mubr.bf16.vlgmr.msra.gmra.mxu0 %v5193_v23  ;;  %4252 = vmatmul.mubr.bf16.vlgmr.msra.gmra.mxu1 %v5222_v35  ;;  %v2713_v23 = vmul.f32 1.442695, %v2695_v17  ;;  %v2715_v35 = vmul.f32 1.442695, %v2696_v1  ;;  %4566 = vpow2.f32 %v2709_v50  ;;  %v2727_v12 = vmul.f32 1.442695, %v2702_v59 }
 0x65c   : > { %4247 = vmatprep.mubr.bf16.mxu0 %v5200_v26  ;;  %4255 = vmatprep.mubr.bf16.mxu1 %v5225_v36  ;;  %v2703_v26 = vsub.f32 %v5874_v52, %v2692_v10  ;;  %v2704_v36 = vsub.f32 %v5880_v41, %v2692_v10  ;;  %v2725_v48 = vmul.f32 1.442695, %v2701_v2  ;;  %v2733_v14 = vmul.f32 1.442695, %v2705_v57  ;;  %v2517_v59 = vld [vmem:[#allocation3 + $0x50] sm:$0xff] }
 0x65d   : > { %4568 = vpow2.f32 %v2713_v23  ;;  %v2707_v52 = vsub.f32 %v5891_v24, %v2692_v10  ;;  %v2717_v41 = vmul.f32 1.442695, %v2697_v19  ;;  %v2735_v33 = vmul.f32 1.442695, %v2706_v25  ;;  %v2518_v10 = vld [vmem:[#allocation3 + $0x58] sm:$0xff] }
 0x65e   : > { %v2729_v42 = vmul.f32 1.442695, %v2703_v26  ;;  %v2731_v46 = vmul.f32 1.442695, %v2704_v36  ;;  %4570 = vpow2.f32 %v2715_v35  ;;  %v2721_v43 = vmul.f32 1.442695, %v2699_v39 }
 0x65f   : > { %4572 = vpow2.f32 %v2727_v12  ;;  %v2739_v13 = vmul.f32 1.442695, %v2708_v60  ;;  %v2723_v24 = vmul.f32 1.442695, %v2700_v22 }
 0x660   : > { %4574 = vpow2.f32 %v2725_v48  ;;  %v2520_v48 = vld [vmem:[#allocation3 + $0x68] sm:$0xff] }
 0x661   : > { %4576 = vpow2.f32 %v2729_v42  ;;  %v2519_v42 = vld [vmem:[#allocation3 + $0x60] sm:$0xff] }
 0x662   : > { %4578 = vpow2.f32 %v2731_v46 }
 0x663   : > { %4248 = vmatmul.mubr.bf16.gmra.mxu0 %v5209_v30  ;;  %4256 = vmatmul.mubr.bf16.gmra.mxu1 %v6386_v45  ;;  %4580 = vpow2.f32 %v2733_v14  ;;  %v2737_v30 = vmul.f32 1.442695, %v2707_v52  ;;  %v2522_v52 = vld [vmem:[#allocation3 + $0x78] sm:$0xff] }
 0x664   : > { %4582 = vpow2.f32 %v2717_v41  ;;  %v2521_v41 = vld [vmem:[#allocation3 + $0x70] sm:$0xff] }
 0x665   : > { %4584 = vpow2.f32 %v2735_v33 }
 0x666   : > { %4586 = vpow2.f32 %v2719_v51 }
 0x667   : > { %4588 = vpow2.f32 %v2737_v30  ;;  %v4565_v44 = vpop.eup %4564 }
 0x668   : > { %4590 = vpow2.f32 %v2721_v43  ;;  %v4567_v3 = vpop.eup %4566  ;;  %v2742_v0 = vsel %vm1680_vm2, %v4565_v44, 0.0  ;;  %2790 = vperm.xlu1 %4535, %v4565_v44  }
 0x669   : > { %4592 = vpow2.f32 %v2739_v13  ;;  %v2741_v55 = vsel %vm1680_vm2, %v4567_v3, 0.0  ;;  %2785 = vperm.xlu0 %4534, %v4567_v3  }
 0x66a   : > { %v4569_v8 = vpop.eup %4568  ;;  %4594 = vpow2.f32 %v2723_v24  ;;  %v2743_v34 = vadd.f32 %v2742_v0, %v2741_v55 }
 0x66b   : > { %v4571_v5 = vpop.eup %4570  ;;  %v2744_v16 = vsel %vm1680_vm2, %v4569_v8, 0.0  ;;  %4596 = vrcp.f32 %v2518_v10 }
 0x66c   : > { %v4573_v31 = vpop.eup %4572  ;;  %v2746_v32 = vsel %vm1680_vm2, %v4571_v5, 0.0  ;;  %v2745_v20 = vadd.f32 %v2744_v16, %v2743_v34  ;;  %4598 = vrcp.f32 %v2517_v59  ;;  %v2499_v59 = vld [vmem:[#allocation4 + $0x40] sm:$0xff] }
 0x66d   : > { %v4575_v61 = vpop.eup %4574  ;;  %v2763_v38 = vsel %vm1680_vm2, %v4573_v31, 0.0  ;;  %2830 = vperm.xlu1 %4535, %v4573_v31   ;;  %4600 = vrcp.f32 %v2520_v48  ;;  %v2493_v31 = vld [vmem:[#allocation4 + $0x58] sm:$0xff] }
 0x66e   : > { %v4577_v54 = vpop.eup %4576  ;;  %v2762_v56 = vsel %vm1680_vm2, %v4575_v61, 0.0  ;;  %2825 = vperm.xlu0 %4534, %v4575_v61   ;;  %v2747_v47 = vadd.f32 %v2746_v32, %v2745_v20  ;;  %4602 = vrcp.f32 %v2519_v42  ;;  %v2491_v32 = vld [vmem:[#allocation4 + $0x30] sm:$0xff] }
 0x66f   : > { %v4579_v53 = vpop.eup %4578  ;;  %v2764_v49 = vadd.f32 %v2763_v38, %v2762_v56  ;;  %v2765_v18 = vsel %vm1680_vm2, %v4577_v54, 0.0  ;;  %4604 = vrcp.f32 %v2522_v52  ;;  %v2494_v56 = vld [vmem:[#allocation4 + $0x18] sm:$0xff] }
 0x670   : > { %v4581_v6 = vpop.eup %4580  ;;  %v2767_v58 = vsel %vm1680_vm2, %v4579_v53, 0.0  ;;  %4606 = vrcp.f32 %v2521_v41 }
 0x671   : > { %v4583_v7 = vpop.eup %4582  ;;  %v2766_v21 = vadd.f32 %v2765_v18, %v2764_v49  ;;  %2835 = vperm.xlu1 %4535, %v4577_v54   ;;  %v2769_v62 = vsel %vm1680_vm2, %v4581_v6, 0.0  ;;  %v2492_v49 = vld [vmem:[#allocation4] sm:$0xff] }
 0x672   : > { %v4585_v63 = vpop.eup %4584  ;;  %2795 = vperm.xlu0 %4534, %v4569_v8   ;;  %v2748_v4 = vsel %vm1680_vm2, %v4583_v7, 0.0 }
 0x673   : > { %v4587_v11 = vpop.eup %4586  ;;  %v2768_v40 = vadd.f32 %v2767_v58, %v2766_v21  ;;  %v2749_v15 = vadd.f32 %v2748_v4, %v2747_v47  ;;  %v2771_v28 = vsel %vm1680_vm2, %v4585_v63, 0.0  ;;  %v2496_v21 = vld [vmem:[#allocation4 + $0x68] sm:$0xff] }
 0x674   : > { %v4589_v27 = vpop.eup %4588  ;;  %v2750_v29 = vsel %vm1680_vm2, %v4587_v11, 0.0 }
 0x675   : > { %v4591_v17 = vpop.eup %4590  ;;  %2840 = vperm.xlu1 %4535, %v4579_v53   ;;  %v2770_v1 = vadd.f32 %v2769_v62, %v2768_v40  ;;  %v2751_v9 = vadd.f32 %v2750_v29, %v2749_v15  ;;  %v2773_v23 = vsel %vm1680_vm2, %v4589_v27, 0.0  ;;  %v2495_v62 = vld [vmem:[#allocation4 + $0x50] sm:$0xff] }
 0x676   : > { %v4593_v50 = vpop.eup %4592  ;;  %2800 = vperm.xlu0 %4534, %v4571_v5   ;;  %v2752_v35 = vsel %vm1680_vm2, %v4591_v17, 0.0 }
 0x677   : > { %v4595_v19 = vpop.eup %4594  ;;  %v2772_v2 = vadd.f32 %v2771_v28, %v2770_v1  ;;  %v2753_v26 = vadd.f32 %v2752_v35, %v2751_v9  ;;  %v2775_v36 = vsel %vm1680_vm2, %v4593_v50, 0.0  ;;  %v2498_v28 = vld [vmem:[#allocation4 + $0x48] sm:$0xff]  ;;  %v2500_v35 = vld [vmem:[#allocation4 + $0x20] sm:$0xff] }
 0x678   : > { %v2754_v57 = vsel %vm1680_vm2, %v4595_v19, 0.0  ;;  %v4597_v24 = vpop.eup %4596 }
 0x679   : > { %2845 = vperm.xlu1 %4535, %v4581_v6   ;;  %v2774_v25 = vadd.f32 %v2773_v23, %v2772_v2  ;;  %v2755_v12 = vadd.f32 %v2754_v57, %v2753_v26  ;;  %v4599_v44 = vpop.eup %4598 }
 0x67a   : > { %2805 = vperm.xlu0 %4534, %v4583_v7   ;;  %v4601_v0 = vpop.eup %4600 }
 0x67b   : > { %v2776_v46 = vadd.f32 %v2775_v36, %v2774_v25  ;;  %v2756_v37 = vrot.slane %v2755_v12, 4  ;;  %v4603_v8 = vpop.eup %4602 }
 0x67c   : > { %v4605_v55 = vpop.eup %4604 }
 0x67d   : > { %2850 = vperm.xlu1 %4535, %v4585_v63   ;;  %v2777_v45 = vrot.slane %v2776_v46, 4  ;;  %v2757_v14 = vadd.f32 %v2756_v37, %v2755_v12  ;;  %v4607_v5 = vpop.eup %4606 }
 0x67e   : > { %2810 = vperm.xlu0 %4534, %v4587_v11  }
 0x67f   : > { %v2778_v39 = vadd.f32 %v2777_v45, %v2776_v46  ;;  %v2758_v33 = vrot.slane %v2757_v14, 2 }
 0x681   : > { %2855 = vperm.xlu1 %4535, %v4589_v27   ;;  %v2779_v60 = vrot.slane %v2778_v39, 2  ;;  %v2759_v51 = vadd.f32 %v2758_v33, %v2757_v14 }
 0x682   : > { %2815 = vperm.xlu0 %4534, %v4591_v17   ;;  %v2497_v17 = vld [vmem:[#allocation4 + $0x8] sm:$0xff] }
 0x683   : > { %v2780_v22 = vadd.f32 %v2779_v60, %v2778_v39  ;;  %v2760_v30 = vrot.slane %v2759_v51, 1 }
 0x685   : > { %2860 = vperm.xlu1 %4535, %v4593_v50   ;;  %v2781_v43 = vrot.slane %v2780_v22, 1  ;;  %v2761_v13 = vadd.f32 %v2760_v30, %v2759_v51 }
 0x686   : > { %2820 = vperm.xlu0 %4534, %v4595_v19  }
 0x687   : > { %v2782_v3 = vadd.f32 %v2781_v43, %v2780_v22  ;;  %4608 = vrcp.f32 %v2761_v13 }
 0x689   : > { %2596 = vperm.xlu1 %4535, %v4597_v24   ;;  %4610 = vrcp.f32 %v2782_v3  ;;  %v2501_v3 = vld [vmem:[#allocation4 + $0x10] sm:$0xff] }
 0x68a   : > { %2591 = vperm.xlu0 %4534, %v4599_v44   ;;  %v2502_v44 = vld [vmem:[#allocation4 + $0x38] sm:$0xff] }
 0x68d   : > { %2606 = vperm.xlu1 %4535, %v4601_v0  }
 0x68e   : > { %2601 = vperm.xlu0 %4534, %v4603_v8  }
 0x691   : > { %2616 = vperm.xlu1 %4535, %v4605_v55  }
 0x692   : > { %2611 = vperm.xlu0 %4534, %v4607_v5  }
 0x694   : > { %v4609_v34 = vpop.eup %4608 }
 0x696   : > { %v4611_v16 = vpop.eup %4610  ;;  %2909 = vperm.xlu0 %4534, %v4609_v34   ;;  %v2504_v34 = vld [vmem:[#allocation4 + $0x70] sm:$0xff] }
 0x697   : > { %2914 = vperm.xlu1 %4535, %v4611_v16  }
 0x6c5   : > { %v2552_v61 = vpop.permute.xlu1 %2551  ;;  %v2542_v20 = vpop.permute.xlu0 %2541 }
 0x6c6   : > { %v5953_v38 = vmul.f32 %v2552_v61, %v2493_v31  ;;  %v5955_v54 = vmul.f32 %v2542_v20, %v2491_v32  ;;  %v2503_v31 = vld [vmem:[#allocation4 + $0x60] sm:$0xff] }
 0x6c8   : > { %v3745_v53 = vpack.c.bf16 %v5953_v38, %v5953_v38  ;;  %v3743_v18 = vpack.c.bf16 %v5955_v54, %v5955_v54 }
 0x6c9   : > { %v2557_v47 = vpop.permute.xlu1 %2556  ;;  %v2547_v58 = vpop.permute.xlu0 %2546 }
 0x6ca   : > { %3065 = vst [vmem:[%s5123_s13 + $0x24] sm:$0xf] %v3745_v53  ;;  %v5962_v6 = vmul.f32 %v2557_v47, %v2494_v56  ;;  %3063 = vst [vmem:[%s5123_s13 + $0x4] sm:$0xf] %v3743_v18  ;;  %v5965_v7 = vmul.f32 %v2547_v58, %v2492_v49  ;;  %v2506_v49 = vld [vmem:[#allocation4 + $0x28] sm:$0xff]  ;;  %v2505_v47 = vld [vmem:[#allocation4 + $0x78] sm:$0xff] }
 0x6cc   : > { %v3746_v63 = vpack.c.bf16 %v5962_v6, %v5962_v6  ;;  %v3744_v4 = vpack.c.bf16 %v5965_v7, %v5965_v7 }
 0x6cd   : > { %v2567_v11 = vpop.permute.xlu1 %2566  ;;  %v2562_v15 = vpop.permute.xlu0 %2561 }
 0x6ce   : > { %3066 = vst [vmem:[%s5123_s13 + $0x34] sm:$0xf] %v3746_v63  ;;  %v5972_v40 = vmul.f32 %v2567_v11, %v2496_v21  ;;  %3064 = vst [vmem:[%s5123_s13 + $0x14] sm:$0xf] %v3744_v4  ;;  %v5975_v27 = vmul.f32 %v2562_v15, %v2495_v62 }
 0x6d0   : > { %v3748_v29 = vpack.c.bf16 %v5972_v40, %v5972_v40  ;;  %v3747_v1 = vpack.c.bf16 %v5975_v27, %v5975_v27 }
 0x6d1   : > { %v2577_v9 = vpop.permute.xlu1 %2576  ;;  %v2572_v10 = vpop.permute.xlu0 %2571 }
 0x6d2   : > { %3068 = vst [vmem:[%s5123_s13 + $0x54] sm:$0xf] %v3748_v29  ;;  %v5982_v50 = vmul.f32 %v2577_v9, %v2498_v28  ;;  %3067 = vst [vmem:[%s5123_s13 + $0x44] sm:$0xf] %v3747_v1  ;;  %v5985_v23 = vmul.f32 %v2572_v10, %v2497_v17  ;;  %v6068_v28 = vld [vmem:[%s6387_s6] ss:$0 sm:$0xff] }
 0x6d4   : > { %v3750_v19 = vpack.c.bf16 %v5982_v50, %v5982_v50  ;;  %v3749_v2 = vpack.c.bf16 %v5985_v23, %v5985_v23 }
 0x6d5   : > { %v2587_v26 = vpop.permute.xlu1 %2586  ;;  %v2582_v57 = vpop.permute.xlu0 %2581 }
 0x6d6   : > { %3070 = vst [vmem:[%s5123_s13 + $0x74] sm:$0xf] %v3750_v19  ;;  %v5992_v36 = vmul.f32 %v2587_v26, %v2500_v35  ;;  %3069 = vst [vmem:[%s5123_s13 + $0x64] sm:$0xf] %v3749_v2  ;;  %v5995_v25 = vmul.f32 %v2582_v57, %v2499_v59 }
 0x6d8   : > { %v3752_v12 = vpack.c.bf16 %v5992_v36, %v5992_v36  ;;  %v3751_v48 = vpack.c.bf16 %v5995_v25, %v5995_v25 }
 0x6da   : > { %3072 = vst [vmem:[%s5123_s13 + $0x94] sm:$0xf] %v3752_v12  ;;  %3071 = vst [vmem:[%s5123_s13 + $0x84] sm:$0xf] %v3751_v48 }
 0x6e3   : > { %v6003_v42 = vpop.permute.xlu1 %2790 }
 0x6e4   : > { %v6005_v46 = vpop.permute.xlu0 %2785 }
 0x6e8   : > { %v6007_v37 = vpop.permute.xlu1 %2830 }
 0x6e9   : > { %v6009_v45 = vpop.permute.xlu0 %2825 }
 0x6ec   : > { %v6011_v14 = vpop.permute.xlu1 %2835 }
 0x6ed   : > { %v6013_v52 = vpop.permute.xlu0 %2795 }
 0x6f0   : > { %v6015_v41 = vpop.permute.xlu1 %2840 }
 0x6f1   : > { %v6017_v39 = vpop.permute.xlu0 %2800 }
 0x6f4   : > { %v6019_v33 = vpop.permute.xlu1 %2845 }
 0x6f5   : > { %v6021_v60 = vpop.permute.xlu0 %2805 }
 0x6f8   : > { %v6023_v51 = vpop.permute.xlu1 %2850 }
 0x6f9   : > { %v6025_v22 = vpop.permute.xlu0 %2810 }
 0x6fc   : > { %v6027_v30 = vpop.permute.xlu1 %2855 }
 0x6fd   : > { %v6029_v43 = vpop.permute.xlu0 %2815 }
 0x700   : > { %v6031_v13 = vpop.permute.xlu1 %2860 }
 0x701   : > { %v6033_v24 = vpop.permute.xlu0 %2820 }
 0x704   : > { %v2597_v0 = vpop.permute.xlu1 %2596 }
 0x705   : > { %v6035_v8 = vmul.f32 %v2597_v0, %v2502_v44  ;;  %v2592_v55 = vpop.permute.xlu0 %2591 }
 0x706   : > { %v6037_v5 = vmul.f32 %v2592_v55, %v2501_v3 }
 0x707   : > { %v3754_v16 = vpack.c.bf16 %v6035_v8, %v6035_v8 }
 0x708   : > { %v3753_v32 = vpack.c.bf16 %v6037_v5, %v6037_v5  ;;  %v2607_v61 = vpop.permute.xlu1 %2606 }
 0x709   : > { %3074 = vst [vmem:[%s5123_s13 + $0xb4] sm:$0xf] %v3754_v16  ;;  %v6044_v20 = vmul.f32 %v2607_v61, %v2504_v34  ;;  %v2602_v56 = vpop.permute.xlu0 %2601 }
 0x70a   : > { %3073 = vst [vmem:[%s5123_s13 + $0xa4] sm:$0xf] %v3753_v32  ;;  %v6047_v53 = vmul.f32 %v2602_v56, %v2503_v31 }
 0x70b   : > { %v3756_v18 = vpack.c.bf16 %v6044_v20, %v6044_v20 }
 0x70c   : > { %v3755_v58 = vpack.c.bf16 %v6047_v53, %v6047_v53  ;;  %v2617_v21 = vpop.permute.xlu1 %2616 }
 0x70d   : > { %3076 = vst [vmem:[%s5123_s13 + $0xd4] sm:$0xf] %v3756_v18  ;;  %v6054_v63 = vmul.f32 %v2617_v21, %v2506_v49  ;;  %v2612_v62 = vpop.permute.xlu0 %2611 }
 0x70e   : > { %3075 = vst [vmem:[%s5123_s13 + $0xc4] sm:$0xf] %v3755_v58  ;;  %v6057_v4 = vmul.f32 %v2612_v62, %v2505_v47 }
 0x70f   : > { %v3758_v11 = vpack.c.bf16 %v6054_v63, %v6054_v63 }
 0x710   : > { %v3757_v15 = vpack.c.bf16 %v6057_v4, %v6057_v4 }
 0x711   : > { %3078 = vst [vmem:[%s5123_s13 + $0xf4] sm:$0xf] %v3758_v11 }
 0x712   : > { %3077 = vst [vmem:[%s5123_s13 + $0xe4] sm:$0xf] %v3757_v15 }
 0x71b   : > { %v4245_v29 = vpop.f32.mrf.mxu0  ;;  %v4253_v17 = vpop.f32.mrf.mxu1 }
 0x71c   : > { %v2437_v1 = vadd.f32 %v4245_v29, %v6068_v28  ;;  %v2469_v9 = vadd.f32 %v4253_v17, %v6068_v28 }
 0x71d   : > { %v2428_v10 = vpop.f32.mrf.mxu0  ;;  %v2460_v35 = vpop.f32.mrf.mxu1 }
 0x71e   : > { %v3729_v19 = vpack.c.bf16 %v2437_v1, %v2437_v1  ;;  %v3081_v59 = vmul.f32 %v5953_v38, %v2437_v1  ;;  %v3737_v2 = vpack.c.bf16 %v2469_v9, %v2469_v9  ;;  %v3089_v26 = vmul.f32 %v6037_v5, %v2469_v9 }
 0x71f   : > { %v2429_v57 = vadd.f32 %v6068_v28, %v2428_v10  ;;  %v2461_v12 = vadd.f32 %v6068_v28, %v2460_v35  ;;  %v4246_v48 = vpop.f32.mrf.mxu0  ;;  %v4254_v44 = vpop.f32.mrf.mxu1  ;;  %v2865_v56 = vmul.f32 %v6013_v52, %v2437_v1  ;;  %v2873_v49 = vmul.f32 %v6011_v14, %v2469_v9 }
 0x720   : > { %2985 = vst [vmem:[%s5123_s13 + $0x20] sm:$0xf] %v3729_v19  ;;  %v3761_v3 = vpack.c.bf16 %v3081_v59, %v3081_v59  ;;  %v2440_v0 = vadd.f32 %v4246_v48, %v6068_v28  ;;  %v6079_v55 = vadd.f32 %v4254_v44, %v6068_v28  ;;  %2993 = vst [vmem:[%s5123_s13 + $0xa0] sm:$0xf] %v3737_v2 }
 0x721   : > { %v3769_v34 = vpack.c.bf16 %v3089_v26, %v3089_v26  ;;  %v3727_v16 = vpack.c.bf16 %v2429_v57, %v2429_v57  ;;  %v3079_v31 = vmul.f32 %v5955_v54, %v2429_v57  ;;  %v2431_v32 = vpop.f32.mrf.mxu0  ;;  %v2463_v61 = vpop.f32.mrf.mxu1  ;;  %v3735_v18 = vpack.c.bf16 %v2461_v12, %v2461_v12 }
 0x722   : > { %3161 = vst [vmem:[%s5123_s13 + $0x28] sm:$0xf] %v3761_v3  ;;  %v3087_v47 = vmul.f32 %v5995_v25, %v2461_v12  ;;  %v2863_v58 = vmul.f32 %v6005_v46, %v2429_v57  ;;  %v3730_v62 = vpack.c.bf16 %v2440_v0, %v2440_v0  ;;  %v3082_v11 = vmul.f32 %v5962_v6, %v2440_v0 }
 0x723   : > { %3169 = vst [vmem:[%s5123_s13 + $0xa8] sm:$0xf] %v3769_v34  ;;  %2983 = vst [vmem:[%s5123_s13] sm:$0xf] %v3727_v16  ;;  %v3759_v21 = vpack.c.bf16 %v3079_v31, %v3079_v31  ;;  %v4249_v15 = vpop.f32.mrf.mxu0  ;;  %v4257_v52 = vpop.f32.mrf.mxu1  ;;  %v3738_v14 = vpack.c.bf16 %v6079_v55, %v6079_v55  ;;  %v3090_v17 = vmul.f32 %v6035_v8, %v6079_v55 }
 0x724   : > { %2991 = vst [vmem:[%s5123_s13 + $0x80] sm:$0xf] %v3735_v18  ;;  %v3767_v29 = vpack.c.bf16 %v3087_v47, %v3087_v47  ;;  %v2432_v1 = vadd.f32 %v6068_v28, %v2431_v32  ;;  %2986 = vst [vmem:[%s5123_s13 + $0x30] sm:$0xf] %v3730_v62  ;;  %v3762_v46 = vpack.c.bf16 %v3082_v11, %v3082_v11 }
 0x725   : > { %3159 = vst [vmem:[%s5123_s13 + $0x8] sm:$0xf] %v3759_v21  ;;  %v2464_v9 = vadd.f32 %v6068_v28, %v2463_v61  ;;  %v6101_v10 = vadd.f32 %v4249_v15, %v6068_v28  ;;  %v6104_v35 = vadd.f32 %v4257_v52, %v6068_v28  ;;  %v2444_v19 = vpop.f32.mrf.mxu0  ;;  %v2476_v59 = vpop.f32.mrf.mxu1  ;;  %2994 = vst [vmem:[%s5123_s13 + $0xb0] sm:$0xf] %v3738_v14 }
 0x726   : > { %3167 = vst [vmem:[%s5123_s13 + $0x88] sm:$0xf] %v3767_v29  ;;  %v3770_v2 = vpack.c.bf16 %v3090_v17, %v3090_v17  ;;  %v2864_v26 = vmul.f32 %v6003_v42, %v2432_v1  ;;  %v3728_v57 = vpack.c.bf16 %v2432_v1, %v2432_v1  ;;  %v3080_v48 = vmul.f32 %v5965_v7, %v2432_v1 }
 0x727   : > { %v2871_v44 = vmul.f32 %v6009_v45, %v2461_v12  ;;  %3162 = vst [vmem:[%s5123_s13 + $0x38] sm:$0xf] %v3762_v46  ;;  %v2872_v3 = vmul.f32 %v6007_v37, %v2464_v9  ;;  %v3736_v34 = vpack.c.bf16 %v2464_v9, %v2464_v9  ;;  %v3088_v16 = vmul.f32 %v5992_v36, %v2464_v9  ;;  %v4250_v45 = vpop.f32.mrf.mxu0 }
 0x728   : > { %3170 = vst [vmem:[%s5123_s13 + $0xb8] sm:$0xf] %v3770_v2  ;;  %v2879_v31 = vadd.f32 %v2864_v26, %v2863_v58  ;;  %2984 = vst [vmem:[%s5123_s13 + $0x10] sm:$0xf] %v3728_v57  ;;  %v3760_v32 = vpack.c.bf16 %v3080_v48, %v3080_v48  ;;  %v3733_v42 = vpack.c.bf16 %v6101_v10, %v6101_v10  ;;  %v4258_v58 = vpop.f32.mrf.mxu1 }
 0x729   : > { %v3085_v61 = vmul.f32 %v5985_v23, %v6101_v10  ;;  %v2866_v37 = vmul.f32 %v6017_v39, %v2440_v0  ;;  %v2892_v12 = vadd.f32 %v2872_v3, %v2871_v44  ;;  %2992 = vst [vmem:[%s5123_s13 + $0x90] sm:$0xf] %v3736_v34  ;;  %v3768_v18 = vpack.c.bf16 %v3088_v16, %v3088_v16  ;;  %v2447_v9 = vpop.f32.mrf.mxu0 }
 0x72a   : > { %v3741_v47 = vpack.c.bf16 %v6104_v35, %v6104_v35  ;;  %v2880_v21 = vadd.f32 %v2879_v31, %v2865_v56  ;;  %3160 = vst [vmem:[%s5123_s13 + $0x18] sm:$0xf] %v3760_v32  ;;  %2989 = vst [vmem:[%s5123_s13 + $0x60] sm:$0xf] %v3733_v42  ;;  %v3093_v11 = vmul.f32 %v6057_v4, %v6104_v35  ;;  %v2479_v2 = vpop.f32.mrf.mxu1 }
 0x72b   : > { %v3765_v62 = vpack.c.bf16 %v3085_v61, %v3085_v61  ;;  %v2445_v15 = vadd.f32 %v6068_v28, %v2444_v19  ;;  %v2874_v39 = vmul.f32 %v6015_v41, %v6079_v55  ;;  %v2893_v0 = vadd.f32 %v2892_v12, %v2873_v49  ;;  %3168 = vst [vmem:[%s5123_s13 + $0x98] sm:$0xf] %v3768_v18 }
 0x72c   : > { %2997 = vst [vmem:[%s5123_s13 + $0xe0] sm:$0xf] %v3741_v47  ;;  %v2477_v52 = vadd.f32 %v6068_v28, %v2476_v59  ;;  %v2456_v56 = vadd.f32 %v4250_v45, %v6068_v28  ;;  %v3773_v29 = vpack.c.bf16 %v3093_v11, %v3093_v11  ;;  %v2881_v14 = vadd.f32 %v2880_v21, %v2866_v37 }
 0x72d   : > { %3165 = vst [vmem:[%s5123_s13 + $0x68] sm:$0xf] %v3765_v62  ;;  %v3731_v17 = vpack.c.bf16 %v2445_v15, %v2445_v15  ;;  %v2488_v1 = vadd.f32 %v4258_v58, %v6068_v28  ;;  %v2867_v46 = vmul.f32 %v6021_v60, %v2445_v15  ;;  %v3083_v41 = vmul.f32 %v5975_v27, %v2445_v15 }
 0x72e   : > { %v2894_v55 = vadd.f32 %v2893_v0, %v2874_v39  ;;  %v3739_v49 = vpack.c.bf16 %v2477_v52, %v2477_v52  ;;  %3173 = vst [vmem:[%s5123_s13 + $0xe8] sm:$0xf] %v3773_v29  ;;  %v3091_v19 = vmul.f32 %v6047_v53, %v2477_v52  ;;  %v3734_v59 = vpack.c.bf16 %v2456_v56, %v2456_v56 }
 0x72f   : > { %2987 = vst [vmem:[%s5123_s13 + $0x40] sm:$0xf] %v3731_v17  ;;  %v2882_v26 = vadd.f32 %v2881_v14, %v2867_v46  ;;  %v3763_v57 = vpack.c.bf16 %v3083_v41, %v3083_v41  ;;  %v2875_v48 = vmul.f32 %v6019_v33, %v2477_v52  ;;  %v3086_v60 = vmul.f32 %v5982_v50, %v2456_v56 }
 0x730   : > { %2995 = vst [vmem:[%s5123_s13 + $0xc0] sm:$0xf] %v3739_v49  ;;  %v3771_v44 = vpack.c.bf16 %v3091_v19, %v3091_v19  ;;  %2990 = vst [vmem:[%s5123_s13 + $0x70] sm:$0xf] %v3734_v59  ;;  %v3742_v3 = vpack.c.bf16 %v2488_v1, %v2488_v1  ;;  %v3094_v34 = vmul.f32 %v6054_v63, %v2488_v1  ;;  %v2915_v19 = vpop.permute.xlu1 %2914 }
 0x731   : > { %v2448_v16 = vadd.f32 %v6068_v28, %v2447_v9  ;;  %3163 = vst [vmem:[%s5123_s13 + $0x48] sm:$0xf] %v3763_v57  ;;  %v2895_v31 = vadd.f32 %v2894_v55, %v2875_v48  ;;  %v3766_v32 = vpack.c.bf16 %v3086_v60, %v3086_v60  ;;  %v2480_v42 = vadd.f32 %v6068_v28, %v2479_v2 }
 0x732   : > { %3171 = vst [vmem:[%s5123_s13 + $0xc8] sm:$0xf] %v3771_v44  ;;  %2998 = vst [vmem:[%s5123_s13 + $0xf0] sm:$0xf] %v3742_v3  ;;  %v3774_v33 = vpack.c.bf16 %v3094_v34, %v3094_v34  ;;  %v2869_v28 = vmul.f32 %v6029_v43, %v6101_v10  ;;  %v2870_v15 = vmul.f32 %v6033_v24, %v2456_v56  ;;  %v2910_v24 = vpop.permute.xlu0 %2909 }
 0x733   : > { %v2868_v61 = vmul.f32 %v6025_v22, %v2448_v16  ;;  %v3732_v45 = vpack.c.bf16 %v2448_v16, %v2448_v16  ;;  %v3084_v37 = vmul.f32 %v5972_v40, %v2448_v16  ;;  %3166 = vst [vmem:[%s5123_s13 + $0x78] sm:$0xf] %v3766_v32  ;;  %v2876_v12 = vmul.f32 %v6023_v51, %v2480_v42 }
 0x734   : > { %v3740_v18 = vpack.c.bf16 %v2480_v42, %v2480_v42  ;;  %v3092_v47 = vmul.f32 %v6044_v20, %v2480_v42  ;;  %3174 = vst [vmem:[%s5123_s13 + $0xf8] sm:$0xf] %v3774_v33  ;;  %v2877_v22 = vmul.f32 %v6027_v30, %v6104_v35  ;;  %v2878_v39 = vmul.f32 %v6031_v13, %v2488_v1 }
 0x735   : > { %v2883_v58 = vadd.f32 %v2882_v26, %v2868_v61  ;;  %2988 = vst [vmem:[%s5123_s13 + $0x50] sm:$0xf] %v3732_v45  ;;  %v3764_v21 = vpack.c.bf16 %v3084_v37, %v3084_v37  ;;  %v2896_v62 = vadd.f32 %v2895_v31, %v2876_v12 }
 0x736   : > { %2996 = vst [vmem:[%s5123_s13 + $0xd0] sm:$0xf] %v3740_v18  ;;  %v3772_v11 = vpack.c.bf16 %v3092_v47, %v3092_v47 }
 0x737   : > { %v2884_v51 = vadd.f32 %v2883_v58, %v2869_v28  ;;  %3164 = vst [vmem:[%s5123_s13 + $0x58] sm:$0xf] %v3764_v21  ;;  %v2897_v0 = vadd.f32 %v2896_v62, %v2877_v22 }
 0x738   : > { %3172 = vst [vmem:[%s5123_s13 + $0xd8] sm:$0xf] %v3772_v11 }
 0x739   : > { %v2885_v52 = vadd.f32 %v2884_v51, %v2870_v15  ;;  %v2898_v43 = vadd.f32 %v2897_v0, %v2878_v39 }
 0x73b   : > { %v2886_v10 = vrot.slane %v2885_v52, 4  ;;  %v2899_v29 = vrot.slane %v2898_v43, 4 }
 0x73d   : > { %v2887_v14 = vadd.f32 %v2886_v10, %v2885_v52  ;;  %v2900_v17 = vadd.f32 %v2899_v29, %v2898_v43 }
 0x73f   : > { %v2888_v46 = vrot.slane %v2887_v14, 2  ;;  %v2901_v41 = vrot.slane %v2900_v17, 2 }
 0x741   : > { %v2889_v30 = vadd.f32 %v2888_v46, %v2887_v14  ;;  %v2902_v35 = vadd.f32 %v2901_v41, %v2900_v17 }
 0x743   : > { %v2890_v55 = vrot.slane %v2889_v30, 1  ;;  %v2903_v49 = vrot.slane %v2902_v35, 1 }
 0x745   : > { %v2891_v9 = vadd.f32 %v2890_v55, %v2889_v30  ;;  %v2904_v56 = vadd.f32 %v2903_v49, %v2902_v35 }
 0x747   : > { %v2917_v59 = vmul.f32 %v2910_v24, %v2891_v9  ;;  %v2918_v13 = vmul.f32 %v2915_v19, %v2904_v56 }
 0x749   : > { %v3175_v1 = vmul.f32 %v2917_v59, %v5955_v54  ;;  %v3176_v2 = vmul.f32 %v2917_v59, %v5965_v7  ;;  %v3177_v26 = vmul.f32 %v2917_v59, %v5953_v38  ;;  %v3178_v57 = vmul.f32 %v2917_v59, %v5962_v6 }
 0x74a   : > { %v3179_v48 = vmul.f32 %v2917_v59, %v5975_v27  ;;  %v3180_v60 = vmul.f32 %v2917_v59, %v5972_v40  ;;  %v3181_v44 = vmul.f32 %v2917_v59, %v5985_v23  ;;  %v3182_v3 = vmul.f32 %v2917_v59, %v5982_v50 }
 0x74b   : > { %v3775_v34 = vpack.c.bf16 %v3175_v1, %v3175_v1  ;;  %v3776_v54 = vpack.c.bf16 %v3176_v2, %v3176_v2  ;;  %v3777_v7 = vpack.c.bf16 %v3177_v26, %v3177_v26  ;;  %v3778_v16 = vpack.c.bf16 %v3178_v57, %v3178_v57 }
 0x74c   : > { %v3779_v38 = vpack.c.bf16 %v3179_v48, %v3179_v48  ;;  %v3780_v31 = vpack.c.bf16 %v3180_v60, %v3180_v60  ;;  %v3781_v6 = vpack.c.bf16 %v3181_v44, %v3181_v44  ;;  %v3782_v32 = vpack.c.bf16 %v3182_v3, %v3182_v3 }
 0x74d   : > { %3255 = vst [vmem:[%s5123_s13 + $0xc] sm:$0xf] %v3775_v34  ;;  %3256 = vst [vmem:[%s5123_s13 + $0x1c] sm:$0xf] %v3776_v54  ;;  %v3183_v40 = vmul.f32 %v2918_v13, %v5995_v25  ;;  %v3184_v27 = vmul.f32 %v2918_v13, %v5992_v36  ;;  %v3185_v50 = vmul.f32 %v2918_v13, %v6037_v5 }
 0x74e   : > { %3257 = vst [vmem:[%s5123_s13 + $0x2c] sm:$0xf] %v3777_v7  ;;  %3258 = vst [vmem:[%s5123_s13 + $0x3c] sm:$0xf] %v3778_v16  ;;  %v3186_v23 = vmul.f32 %v2918_v13, %v6035_v8  ;;  %v3187_v42 = vmul.f32 %v2918_v13, %v6047_v53  ;;  %v3188_v33 = vmul.f32 %v2918_v13, %v6044_v20 }
 0x74f   : > { %3259 = vst [vmem:[%s5123_s13 + $0x4c] sm:$0xf] %v3779_v38  ;;  %3260 = vst [vmem:[%s5123_s13 + $0x5c] sm:$0xf] %v3780_v31  ;;  %v3189_v36 = vmul.f32 %v2918_v13, %v6057_v4  ;;  %v3190_v25 = vmul.f32 %v2918_v13, %v6054_v63  ;;  %v3783_v8 = vpack.c.bf16 %v3183_v40, %v3183_v40 }
 0x750   : > { %3261 = vst [vmem:[%s5123_s13 + $0x6c] sm:$0xf] %v3781_v6  ;;  %3262 = vst [vmem:[%s5123_s13 + $0x7c] sm:$0xf] %v3782_v32  ;;  %v3784_v5 = vpack.c.bf16 %v3184_v27, %v3184_v27  ;;  %v3785_v61 = vpack.c.bf16 %v3185_v50, %v3185_v50  ;;  %v3786_v45 = vpack.c.bf16 %v3186_v23, %v3186_v23 }
 0x751   : > { %v3787_v37 = vpack.c.bf16 %v3187_v42, %v3187_v42  ;;  %v3788_v12 = vpack.c.bf16 %v3188_v33, %v3188_v33  ;;  %v3789_v18 = vpack.c.bf16 %v3189_v36, %v3189_v36  ;;  %v3790_v47 = vpack.c.bf16 %v3190_v25, %v3190_v25  ;;  %3263 = vst [vmem:[%s5123_s13 + $0x8c] sm:$0xf] %v3783_v8 }
 0x752   : > { %3264 = vst [vmem:[%s5123_s13 + $0x9c] sm:$0xf] %v3784_v5  ;;  %3265 = vst [vmem:[%s5123_s13 + $0xac] sm:$0xf] %v3785_v61 }
 0x753   : > { %3266 = vst [vmem:[%s5123_s13 + $0xbc] sm:$0xf] %v3786_v45  ;;  %3267 = vst [vmem:[%s5123_s13 + $0xcc] sm:$0xf] %v3787_v37 }
 0x754   : > { %3268 = vst [vmem:[%s5123_s13 + $0xdc] sm:$0xf] %v3788_v12  ;;  %3269 = vst [vmem:[%s5123_s13 + $0xec] sm:$0xf] %v3789_v18 }
 0x755   : > { %3270 = vst [vmem:[%s5123_s13 + $0xfc] sm:$0xf] %v3790_v47 }
 0x756 PF: > { %s6388_s29 = sld [smem:[#allocation28_spill]]  ;;  %s3291_s11 = sshll.u32 %s5123_s13, 4  ;;  %s6207_s11 = int_to_ptr.vmem [resolvable:$true] %s3291_s11 }
 0x757   : > { %s6389_s8 = sld [smem:[#allocation34_spill]]  ;;  %s4664_s26 = scalar_lea.vmem %s6207_s11, 4096 }
 0x758   : > { %s6390_s19 = sld [smem:[#allocation46_spill]]  ;;  %p4665_p6 = scmp.ne.s32.totalorder %s6207_s11, %s4664_s26 }
 0x759   : > { %s4816_s4 = smov [#allocation12]  }
 0x75a   : > { %s4668_s6 = sshll.u32 %s4816_s4, 4  ;;  %s4669_s6 = int_to_ptr.vmem [resolvable:$false] %s4668_s6 }
 0x75b   : > { %s4670_s13 = scalar_lea.vmem %s4669_s6, 8192  ;;  %p4671_p11 = scmp.lt.s32.totalorder %s6207_s11, %s4669_s6 }
 0x75c   : > { %s3792_s25 = sshll.u32 %s6388_s29, 12  ;;  %p4672_p8 = scmp.lt.s32.totalorder %s4670_s13, %s4664_s26 }
 0x75d   : > { %p6392_p7 = scmp.ne.s32.totalorder %s6389_s8, 0 }
 0x75e   : > { %s6391_s5 = smov %s6390_s19  ;;  %s6205_s16 = scalar_lea.hbm %s6390_s19, %s3792_s25 }
 0x75f   : > { %p4666_p12 = pnand %p4665_p6, %p6392_p7  ;;  %p4673_p0 = por %p4672_p8, %p4671_p11 }
 0x761   : > { %p4667_p2 = pneg %p4666_p12 }
 0x763   : > { %p4674_p3 = pnand %p4673_p0, %p4667_p2 }
 0x765   : > { %4677 = shalt.err (!%p4674_p3)
}
 0x766   : > { %s4678_s25 = scalar_lea.hbm %s6205_s16, 4096  ;;  %s4682_s19 = scalar_lea.hbm %s6391_s5, 8192 }
 0x767   : > { %p4679_p10 = scmp.ne.s32.totalorder %s6205_s16, %s4678_s25  ;;  %p4683_p5 = scmp.lt.s32.totalorder %s6205_s16, %s6391_s5 }
 0x768   : > { %p4684_p4 = scmp.lt.s32.totalorder %s4682_s19, %s4678_s25 }
 0x769   : > { %p4680_p1 = pnand %p4679_p10, %p6392_p7 }
 0x76a   : > { %p4685_p13 = por %p4684_p4, %p4683_p5 }
 0x76b   : > { %p4681_p9 = pneg %p4680_p1 }
 0x76d   : > { %p4686_p6 = pnand %p4685_p13, %p4681_p9 }
 0x76f   : > { %4689 = shalt.err (!%p4686_p6)
}
 0x770   : > { %s4817_s26 = smov 256   ;;  %s4818_s6 = smov 16  }
 0x771   : > { %s6393_s13 = scalar_lea.sflag [#allocation7], %s5094_s9  ;;  %s3277_s3 = scalar_lea.sflag [#allocation14], %s5106_s30 }
 0x772   : > { %4290 = dma.vmem_to_hbm [thread:$0]  (%p6392_p7), %s6207_s11, 4096, %s6205_s16, %s6393_s13, %s4817_s26, %s4817_s26, %s4818_s6  }
 0x773   : > { %s6394_s12 = sld [smem:[#allocation27_spill]]  ;;  %s3793_s19 = sshll.u32 %s6388_s29, 6 }
 0x774   : > { %s6395_s10 = sld [smem:[#allocation35_spill]]  ;;  %s3320_s0 = sshll.u32 %s5125_s20, 4  ;;  %s3321_s0 = int_to_ptr.vmem [resolvable:$true] %s3320_s0 }
 0x775   : > { %s6396_s11 = sld [smem:[#allocation47_spill]]  ;;  %s4819_s16 = smov 1024  }
 0x776   : > { %s4820_s26 = smov 2048   ;;  %s4821_s6 = smov 16  }
 0x777   : > { %s4822_s29 = smov 64   ;;  %s4823_s20 = smov 4  }
 0x778   : > { %s4824_s13 = smov 131072  }
 0x779   : > { %s3686_s25 = sshll.u32 %s6394_s12, 4  ;;  %s4825_s12 = smov 0  }
 0x77a   : > { %s3307_s4 = sadd.s32 %s3793_s19, %s3686_s25  ;;  %p6397_p7 = scmp.ne.s32.totalorder %s6395_s10, 0 }
 0x77b   : > { %s3688_s1 = sshll.u32 %s3307_s4, 6 }
 0x77c   : > { %s3309_s30 = scalar_lea.hbm %s6396_s11, %s3688_s1  ;;  %4291 = sst [smem:[#allocation18]] (%p6397_p7), %s4819_s16 }
 0x77d   : > { %4292 = sst [smem:[#allocation18 + $0x1]] (%p6397_p7), %s4820_s26 }
 0x77e   : > { %4293 = sst [smem:[#allocation18 + $0x2]] (%p6397_p7), %s4821_s6 }
 0x77f   : > { %4294 = sst [smem:[#allocation18 + $0x3]] (%p6397_p7), %s4822_s29 }
 0x780   : > { %4295 = sst [smem:[#allocation18 + $0x4]] (%p6397_p7), %s4822_s29 }
 0x781   : > { %4296 = sst [smem:[#allocation18 + $0x5]] (%p6397_p7), %s4823_s20 }
 0x782   : > { %4297 = dma.general (%p6397_p7), %s3321_s0, 2048, %s3309_s30, %s3277_s3, %s4824_s13, [#allocation18], %s4825_s12, 0  }
 0x783 PF: > { %s6398_s1 = sld [smem:[#allocation26_spill]]  ;;  %p4313_p12 = scmp.ge.s32.totalorder %s4796_s23, 2 }
 0x784   : > { %s6399_s25 = sld [smem:[#allocation36_spill]] }
 0x789   : > { %s3348_s19 = sand.u32 1, %s6398_s1  }
 0x78a   : > { %p6400_p2 = scmp.ne.s32.totalorder %s6399_s25, 0  ;;  %s3349_s4 = scalar_lea.sflag [#allocation7], %s3348_s19 }
 0x78c   : > { %p4305_p11 = pnand %p4313_p12, %p6400_p2 }
 0x78e   : > { %p4306_p8 = pneg %p4305_p11 }
 0x790   : > { %4747 = dma.done.wait (%p4306_p8), %s3349_s4, 4096  }
 0x791   : > { %4749 = vsyncadd (%p4306_p8), %s3349_s4, 4294963200  ;;  %s6401_s8 = sld [smem:[#allocation25_spill]] }
 0x792   : > { %s6402_s9 = sld [smem:[#allocation37_spill]] }
 0x797   : > { %s3357_s11 = sand.u32 1, %s6401_s8  }
 0x798   : > { %p6403_p0 = scmp.ne.s32.totalorder %s6402_s9, 0  ;;  %s3358_s10 = scalar_lea.sflag [#allocation14], %s3357_s11 }
 0x79a   : > { %p4308_p3 = pnand %p4313_p12, %p6403_p0 }
 0x79c   : > { %p4309_p10 = pneg %p4308_p3 }
 0x79e   : > { %4751 = dma.done.wait (%p4309_p10), %s3358_s10, 2048  }
 0x79f   : > { %4753 = vsyncadd (%p4309_p10), %s3358_s10, 4294965248  ;;  %s33_s23 = sadd.s32 1, %s4796_s23   ;;  %s6404_s0 = sld [smem:[#allocation32_spill]] }
 0x7a0   : > { %p30_p1 = scmp.ge.s32.totalorder %s33_s23, 6   ;;  %s6405_s3 = sld [smem:[#allocation31_spill]] }
 0x7a1   : > { %s6406_s30 = sld [smem:[#allocation29_spill]]  ;;  %s6408_s13 = smov %s4760_s14 }
 0x7a2   : > { %s6407_s26 = sld [smem:[#allocation30_spill]]  ;;  %s6409_s14 = smov %s4764_s15 }
 0x7a3   : > { %s6411_s16 = smov %s4772_s17  ;;  %s6412_s17 = smov %s4776_s18 }
 0x7a4   : > { %s6414_s19 = smov %s4788_s21  ;;  %s6415_s20 = smov %s4792_s22 }
 0x7a5   : > { %s6410_s15 = smov %s6404_s0  ;;  %32 = sbr.rel (!%p30_p1) target bundleno = 23 (0x17), region = 198 }
 0x7a6   : > { %s6413_s18 = smov %s6405_s3 }
 0x7a7   : > { %s6416_s21 = smov %s6406_s30 }
 0x7a8   : > { %s6417_s22 = smov %s6407_s26 }
 0x7aa   :  { %3363 = vsyncpa [#allocation6], 1 }
 0x7ab   :  { %3365 = vsyncpa [#allocation6 + $0x1], 1 }
 0x7ac   :  { %3366 = vsyncpa [#allocation9], 1 }
 0x7ad   :  { %3368 = vsyncpa [#allocation9 + $0x1], 1 }
 0x7ae   :  { %3369 = vsyncpa [#allocation7], 1 }
 0x7af   :  { %3371 = vsyncpa [#allocation7 + $0x1], 1 }
 0x7b0   :  { %3372 = vsyncpa [#allocation14], 1 }
 0x7b1   :  { %3374 = vsyncpa [#allocation14 + $0x1], 1 }

</bundles_post_ra>
